<compile_context>
chip_gen: v7x
topology: tpu7x:2x2x1
jax: 0.10.0
libtpu: 0.0.40
codegen_flags: <defaults>
</compile_context>

<pallas_src>
import numpy as np
import jax
import jax.numpy as jnp
from jax import lax
from jax.experimental import pallas as pl
from jax.experimental.pallas import tpu as pltpu  # noqa: F401  (kept for TPU backend)


def _round_up(x, m):
    return ((x + m - 1) // m) * m


# ---------------------------------------------------------------------------
# Pallas kernel: lane-dense transposed matmul + bias + ReLU (single block).
#   O_T[Cout, M] = relu(W2[Cout, K] @ A_T[K, M] + b[Cout, 1])
# ---------------------------------------------------------------------------
def _mmT_bias_relu_kernel(w_ref, a_ref, b_ref, o_ref):
    acc = jnp.dot(w_ref[...], a_ref[...], preferred_element_type=jnp.float32)
    o_ref[...] = jnp.maximum(acc + b_ref[...], 0.0)


def matmul_T_bias_relu(w2, a_t, b):
    """relu(w2 @ a_t + b): whole arrays as one VMEM block (largest instance
    here is (8,9)@(9,2048) ~ 100 KiB, so no tiling / grid needed)."""
    cout = w2.shape[0]
    m = a_t.shape[1]
    return pl.pallas_call(
        _mmT_bias_relu_kernel,
        out_shape=jax.ShapeDtypeStruct((cout, m), jnp.float32),
    )(w2, a_t, b)


# ---------------------------------------------------------------------------
# JAX wrapper glue: transposed im2col for 3x3 / stride-2 conv.
# ---------------------------------------------------------------------------
def _im2col_T(x_c, stride):
    """x_c: (Cin, N, H, W) -> A_T: (9*Cin, N*Ho*Wo), rows ordered (kh, kw, cin)."""
    cin, n, h, w = x_c.shape
    ho = (h + 2 - 3) // stride + 1
    wo = (w + 2 - 3) // stride + 1
    xp = jnp.pad(x_c, ((0, 0), (0, 0), (1, 1), (1, 1)))
    taps = []
    for kh in range(3):
        for kw in range(3):
            sl = lax.slice(
                xp, (0, 0, kh, kw),
                (cin, n, kh + stride * (ho - 1) + 1, kw + stride * (wo - 1) + 1),
                (1, 1, stride, stride))
            taps.append(sl.reshape(cin, n * ho * wo))
    return jnp.concatenate(taps, axis=0)


def _conv_w2(w):
    """torch Conv2d weight (Cout, Cin, 3, 3) -> (Cout, 9*Cin), tap-major columns."""
    cout, cin = w.shape[0], w.shape[1]
    return jnp.transpose(w, (0, 2, 3, 1)).reshape(cout, 9 * cin)


def _convT_w2(w):
    """torch ConvTranspose2d weight (Cin, Cout, 3, 3) -> (Cout, 9*Cin).

    Effective weight of the equivalent stride-1 conv on the zero-dilated,
    asymmetrically padded input (kernel flipped, cin/cout swapped)."""
    cin, cout = w.shape[0], w.shape[1]
    wf = jnp.flip(w, axis=(2, 3))
    return jnp.transpose(wf, (1, 2, 3, 0)).reshape(cout, 9 * cin)


# ---------------------------------------------------------------------------
# Constant 0/1 gather ("in-kernel im2col") matrices for the tiny fused layers.
# ---------------------------------------------------------------------------
def _build_gather_np(kind, n, h, w, p_pad, m_pad):
    """G[t, p, m] = 1 iff tap t of output column m reads input column p.

    Rows p >= n*h*w and columns m >= n*ho*wo stay all-zero, so garbage living
    in padded activation columns can never reach a real output."""
    if kind == "conv":  # Conv2d(k=3, stride=2, pad=1)
        ho, wo = (h + 2 - 3) // 2 + 1, (w + 2 - 3) // 2 + 1

        def src(io, jo, kh, kw):
            r, s = 2 * io + kh - 1, 2 * jo + kw - 1
            return (r, s) if (0 <= r < h and 0 <= s < w) else None
    else:               # ConvTranspose2d(k=3, stride=2, pad=1, output_pad=1)
        ho, wo = 2 * h, 2 * w

        def src(io, jo, kh, kw):
            p, q = io + kh - 1, jo + kw - 1
            if p < 0 or q < 0 or (p % 2) or (q % 2):
                return None
            r, s = p // 2, q // 2
            return (r, s) if (r < h and s < w) else None

    assert n * h * w <= p_pad and n * ho * wo <= m_pad
    g = np.zeros((9, p_pad, m_pad), np.float32)
    for kh in range(3):
        for kw in range(3):
            t = 3 * kh + kw
            for b in range(n):
                for io in range(ho):
                    for jo in range(wo):
                        rs = src(io, jo, kh, kw)
                        if rs is not None:
                            r, s = rs
                            g[t, b * h * w + r * w + s,
                              b * ho * wo + io * wo + jo] = 1.0
    active = tuple(t for t in range(9) if g[t].any())
    return g, active, ho, wo


# ---------------------------------------------------------------------------
# Full forward pass builder.
# ---------------------------------------------------------------------------
_GATHER_LAYERS = [
    ("encoder3", "conv"), ("encoder4", "conv"), ("encoder5", "conv"),
    ("decoder1", "convT"), ("decoder2", "convT"),
    ("encoder3", "conv"), ("encoder4", "conv"), ("encoder5", "conv"),
    ("outputLayer", "convT"),
]

_FUSED_WEIGHTS = ["encoder2", "encoder3", "encoder4", "encoder5",
                  "decoder1", "decoder2", "outputLayer"]


def make_autoencoder_forward(n, h, w):
    assert h % 8 == 0 and w % 8 == 0
    h1, w1 = h // 2, w // 2          # after inputLayer
    h2, w2 = h1 // 2, w1 // 2        # after encoder1
    h3, w3 = h2 // 2, w2 // 2        # after encoder2 (start of in-kernel chain)

    a3_m = n * h3 * w3               # columns of encoder2's (hoisted) im2col
    a3_m_pad = _round_up(a3_m, 8)

    n_w = len(_FUSED_WEIGHTS)
    w_idx = {name: i for i, name in enumerate(_FUSED_WEIGHTS)}

    # Static plan + deduplicated f32 0/1 gather constants.  P_pad of each layer
    # equals the previous layer's (padded) activation width; only the final
    # layer's M is padded to 128 lanes (lane-dense HBM store).
    g_arrays, g_cache, plan = [], {}, []
    hh, ww, prev_mpad = h3, w3, a3_m_pad
    for li, (name, kind) in enumerate(_GATHER_LAYERS):
        last = (li == len(_GATHER_LAYERS) - 1)
        if kind == "conv":
            ho, wo = (hh + 2 - 3) // 2 + 1, (ww + 2 - 3) // 2 + 1
        else:
            ho, wo = 2 * hh, 2 * ww
        m_real = n * ho * wo
        m_pad = _round_up(m_real, 128 if last else 8)
        key = (kind, hh, ww, prev_mpad, m_pad)
        if key not in g_cache:
            g_np, active, _, _ = _build_gather_np(kind, n, hh, ww, prev_mpad, m_pad)
            g_cache[key] = (len(g_arrays), active)
            g_arrays.append(jnp.asarray(g_np))       # f32 0/1: exact, no cast
        gi, active = g_cache[key]
        plan.append((w_idx[name], gi, active))
        hh, ww, prev_mpad = ho, wo, m_pad

    out_h, out_w = hh, ww
    m_out = n * out_h * out_w
    m_out_pad = prev_mpad
    n_g = len(g_arrays)
    cout_last = 3

    # Fused Pallas kernel: encoder2 (plain matmul) + 9 tiny conv/conv-transpose
    # layers, everything VMEM-resident, single block, single launch.
    def fused_kernel(*refs):
        a3_ref = refs[0]
        w_refs = refs[1:1 + n_w]
        b_refs = refs[1 + n_w:1 + 2 * n_w]
        g_refs = refs[1 + 2 * n_w:1 + 2 * n_w + n_g]
        o_ref = refs[1 + 2 * n_w + n_g]

        # encoder2: im2col was hoisted to the wrapper -> plain matmul here.
        e2 = w_idx["encoder2"]
        act = jnp.maximum(
            jnp.dot(w_refs[e2][...], a3_ref[...],
                    preferred_element_type=jnp.float32) + b_refs[e2][...],
            0.0)                                              # (8, a3_m_pad)

        for wi, gi, active in plan:                           # static unroll
            w2_ref, b_ref, g_ref = w_refs[wi], b_refs[wi], g_refs[gi]
            cout = w2_ref.shape[0]
            cin = w2_ref.shape[1] // 9
            m_pad = g_ref.shape[2]
            # Bias-initialized accumulator (saves one VPU add pass per layer).
            o = jnp.broadcast_to(b_ref[...], (cout, m_pad))
            for t in active:                                  # skip all-zero taps
                a_t = jnp.dot(act, g_ref[t],
                              preferred_element_type=jnp.float32)   # (cin, m_pad)
                o = o + jnp.dot(w2_ref[:, t * cin:(t + 1) * cin], a_t,
                                preferred_element_type=jnp.float32)
            act = jnp.maximum(o, 0.0)                         # (cout, m_pad)
        o_ref[...] = act

    fused_out_shape = jax.ShapeDtypeStruct((cout_last, m_out_pad), jnp.float32)

    def forward(params, x_nchw):
        x_c = jnp.transpose(x_nchw, (1, 0, 2, 3))             # (Cin=1, N, H, W)

        # inputLayer: single full-block lane-dense matmul (no tiling).
        w_in, b_in = params["inputLayer"]
        a1 = _im2col_T(x_c, stride=2)                         # (9, N*H1*W1)
        o1 = matmul_T_bias_relu(_conv_w2(w_in), a1, b_in.reshape(-1, 1))

        # encoder1: single full-block matmul.
        w_e1, b_e1 = params["encoder1"]
        a2 = _im2col_T(o1.reshape(8, n, h1, w1), stride=2)    # (72, N*H2*W2)
        o2 = matmul_T_bias_relu(_conv_w2(w_e1), a2, b_e1.reshape(-1, 1))

        # encoder2's im2col hoisted to the wrapper (cheap strided slices on a
        # 16 KiB tensor), so the fused kernel does no large gather matmuls.
        a3 = _im2col_T(o2.reshape(8, n, h2, w2), stride=2)    # (72, a3_m)
        if a3_m_pad != a3_m:
            a3 = jnp.pad(a3, ((0, 0), (0, a3_m_pad - a3_m)))

        wl, bl = [], []
        for name in _FUSED_WEIGHTS:
            wt, bt = params[name]
            if name.startswith("decoder") or name == "outputLayer":
                wl.append(_convT_w2(wt))
            else:
                wl.append(_conv_w2(wt))
            bl.append(bt.reshape(-1, 1))

        out_t = pl.pallas_call(fused_kernel, out_shape=fused_out_shape)(
            a3, *wl, *bl, *g_arrays)

        out = out_t[:, :m_out].reshape(cout_last, n, out_h, out_w)
        return jnp.transpose(out, (1, 0, 2, 3))               # NCHW

    return forward


# ---------------------------------------------------------------------------
# Deterministic parameter init (shapes from the module's __init__).
# ---------------------------------------------------------------------------
def _init_conv(key, cout, cin, k=3):
    wkey, bkey = jax.random.split(key)
    bound = 1.0 / float(cin * k * k) ** 0.5
    w = jax.random.uniform(wkey, (cout, cin, k, k), jnp.float32, -bound, bound)
    b = jax.random.uniform(bkey, (cout,), jnp.float32, -bound, bound)
    return w, b


def _init_convT(key, cin, cout, k=3):
    wkey, bkey = jax.random.split(key)
    bound = 1.0 / float(cout * k * k) ** 0.5
    w = jax.random.uniform(wkey, (cin, cout, k, k), jnp.float32, -bound, bound)
    b = jax.random.uniform(bkey, (cout,), jnp.float32, -bound, bound)
    return w, b


def init_params(key):
    keys = jax.random.split(key, 12)
    return {
        "inputLayer": _init_conv(keys[0], 8, 1),
        "encoder1": _init_conv(keys[1], 8, 8),
        "encoder2": _init_conv(keys[2], 8, 8),
        "encoder3": _init_conv(keys[3], 8, 8),
        "encoder4": _init_conv(keys[4], 8, 8),
        "encoder5": _init_conv(keys[5], 8, 8),
        "decoder1": _init_convT(keys[6], 8, 8),
        "decoder2": _init_convT(keys[7], 8, 8),
        "decoder3": _init_convT(keys[8], 8, 8),   # defined but unused (matches module)
        "decoder4": _init_convT(keys[9], 8, 8),   # defined but unused (matches module)
        "decoder5": _init_convT(keys[10], 8, 8),  # defined but unused (matches module)
        "outputLayer": _init_convT(keys[11], 8, 3),
    }


# ---------------------------------------------------------------------------
# Pure-JAX reference (lax convs) to validate the Pallas path.
# ---------------------------------------------------------------------------
def _ref_conv(x, w, b):
    y = jax.lax.conv_general_dilated(
        x, w, (2, 2), ((1, 1), (1, 1)),
        dimension_numbers=("NCHW", "OIHW", "NCHW"))
    return jax.nn.relu(y + b[None, :, None, None])


def _ref_convT(x, w, b):
    w_conv = jnp.transpose(jnp.flip(w, (2, 3)), (1, 0, 2, 3))     # (Cout, Cin, 3, 3)
    y = jax.lax.conv_general_dilated(
        x, w_conv, (1, 1), ((1, 2), (1, 2)), lhs_dilation=(2, 2),
        dimension_numbers=("NCHW", "OIHW", "NCHW"))
    return jax.nn.relu(y + b[None, :, None, None])


def reference_forward(params, x):
    out = _ref_conv(x, *params["inputLayer"])
    out = _ref_conv(out, *params["encoder1"])
    out = _ref_conv(out, *params["encoder2"])
    out = _ref_conv(out, *params["encoder3"])
    out = _ref_conv(out, *params["encoder4"])
    out = _ref_conv(out, *params["encoder5"])
    out = _ref_convT(out, *params["decoder1"])
    out = _ref_convT(out, *params["decoder2"])
    out = _ref_conv(out, *params["encoder3"])
    out = _ref_conv(out, *params["encoder4"])
    out = _ref_conv(out, *params["encoder5"])
    out = _ref_convT(out, *params["outputLayer"])
    return out


if __name__ == "__main__":
    key = jax.random.PRNGKey(0)
    pkey, xkey = jax.random.split(key)
    params = init_params(pkey)

    # Input: (N=2, C=1, H=64, W=64)  ->  output (2, 3, 2, 2)
    N, H, W = 2, 64, 64
    x = jax.random.normal(xkey, (N, 1, H, W), dtype=jnp.float32)

    forward = jax.jit(make_autoencoder_forward(N, H, W))
    out = jax.block_until_ready(forward(params, x))

    ref = jax.block_until_ready(reference_forward(params, x))
    assert out.shape == ref.shape == (N, 3, 2, 2), out.shape
    err = float(jnp.max(jnp.abs(out - ref)))
    assert jnp.allclose(out, ref, rtol=1e-4, atol=1e-4), err

    print("KERNEL_OK")
</pallas_src>

<mosaic_0001>
module attributes {stable_mosaic.version = 11 : i64} {
  func.func @_mmT_bias_relu_kernel(%arg0: memref<8x9xf32, #tpu.memory_space<vmem>>, %arg1: memref<9x2048xf32, #tpu.memory_space<vmem>>, %arg2: memref<8x1xf32, #tpu.memory_space<vmem>>, %arg3: memref<8x2048xf32, #tpu.memory_space<vmem>>) attributes {dimension_semantics = [], scalar_prefetch = 0 : i64, scratch_operands = 0 : i64, tpu.core_type = #tpu.core_type<tc>} {
    %c0 = arith.constant 0 : index
    %c0_0 = arith.constant 0 : index
    %0 = vector.load %arg0[%c0, %c0_0] : memref<8x9xf32, #tpu.memory_space<vmem>>, vector<8x9xf32>
    %c0_1 = arith.constant 0 : index
    %c0_2 = arith.constant 0 : index
    %1 = vector.load %arg1[%c0_1, %c0_2] : memref<9x2048xf32, #tpu.memory_space<vmem>>, vector<9x2048xf32>
    %cst = arith.constant dense<0.000000e+00> : vector<8x2048xf32>
    %2 = tpu.matmul %0, %1, %cst {dimension_numbers = #tpu.dot_dimension_numbers<[1], [0], [0], [1], [0, 0, 1, 1], [], []>} : vector<8x9xf32>, vector<9x2048xf32>, vector<8x2048xf32> -> vector<8x2048xf32>
    %c0_3 = arith.constant 0 : index
    %c0_4 = arith.constant 0 : index
    %3 = vector.load %arg2[%c0_3, %c0_4] : memref<8x1xf32, #tpu.memory_space<vmem>>, vector<8x1xf32>
    %4 = vector.broadcast %3 : vector<8x1xf32> to vector<8x2048xf32>
    %5 = arith.addf %2, %4 : vector<8x2048xf32>
    %cst_5 = arith.constant 0.000000e+00 : f32
    %6 = vector.broadcast %cst_5 : f32 to vector<8x2048xf32>
    %7 = arith.maximumf %5, %6 : vector<8x2048xf32>
    %c0_6 = arith.constant 0 : index
    %c0_7 = arith.constant 0 : index
    %8 = vector.load %arg3[%c0_6, %c0_7] : memref<8x2048xf32, #tpu.memory_space<vmem>>, vector<8x2048xf32>
    tpu.vector_store %arg3[%c0_6, %c0_7], %7 {strides = array<i32>} : memref<8x2048xf32, #tpu.memory_space<vmem>>, vector<8x2048xf32>,
    return
  }
}

module attributes {stable_mosaic.version = 11 : i64} {
  func.func @_mmT_bias_relu_kernel(%arg0: memref<8x72xf32, #tpu.memory_space<vmem>>, %arg1: memref<72x512xf32, #tpu.memory_space<vmem>>, %arg2: memref<8x1xf32, #tpu.memory_space<vmem>>, %arg3: memref<8x512xf32, #tpu.memory_space<vmem>>) attributes {dimension_semantics = [], scalar_prefetch = 0 : i64, scratch_operands = 0 : i64, tpu.core_type = #tpu.core_type<tc>} {
    %c0 = arith.constant 0 : index
    %c0_0 = arith.constant 0 : index
    %0 = vector.load %arg0[%c0, %c0_0] : memref<8x72xf32, #tpu.memory_space<vmem>>, vector<8x72xf32>
    %c0_1 = arith.constant 0 : index
    %c0_2 = arith.constant 0 : index
    %1 = vector.load %arg1[%c0_1, %c0_2] : memref<72x512xf32, #tpu.memory_space<vmem>>, vector<72x512xf32>
    %cst = arith.constant dense<0.000000e+00> : vector<8x512xf32>
    %2 = tpu.matmul %0, %1, %cst {dimension_numbers = #tpu.dot_dimension_numbers<[1], [0], [0], [1], [0, 0, 1, 1], [], []>} : vector<8x72xf32>, vector<72x512xf32>, vector<8x512xf32> -> vector<8x512xf32>
    %c0_3 = arith.constant 0 : index
    %c0_4 = arith.constant 0 : index
    %3 = vector.load %arg2[%c0_3, %c0_4] : memref<8x1xf32, #tpu.memory_space<vmem>>, vector<8x1xf32>
    %4 = vector.broadcast %3 : vector<8x1xf32> to vector<8x512xf32>
    %5 = arith.addf %2, %4 : vector<8x512xf32>
    %cst_5 = arith.constant 0.000000e+00 : f32
    %6 = vector.broadcast %cst_5 : f32 to vector<8x512xf32>
    %7 = arith.maximumf %5, %6 : vector<8x512xf32>
    %c0_6 = arith.constant 0 : index
    %c0_7 = arith.constant 0 : index
    %8 = vector.load %arg3[%c0_6, %c0_7] : memref<8x512xf32, #tpu.memory_space<vmem>>, vector<8x512xf32>
    tpu.vector_store %arg3[%c0_6, %c0_7], %7 {strides = array<i32>} : memref<8x512xf32, #tpu.memory_space<vmem>>, vector<8x512xf32>,
    return
  }
}

module attributes {stable_mosaic.version = 11 : i64} {
  func.func @fused_kernel(%arg0: memref<72x128xf32, #tpu.memory_space<vmem>>, %arg1: memref<8x72xf32, #tpu.memory_space<vmem>>, %arg2: memref<8x72xf32, #tpu.memory_space<vmem>>, %arg3: memref<8x72xf32, #tpu.memory_space<vmem>>, %arg4: memref<8x72xf32, #tpu.memory_space<vmem>>, %arg5: memref<8x72xf32, #tpu.memory_space<vmem>>, %arg6: memref<8x72xf32, #tpu.memory_space<vmem>>, %arg7: memref<3x72xf32, #tpu.memory_space<vmem>>, %arg8: memref<8x1xf32, #tpu.memory_space<vmem>>, %arg9: memref<8x1xf32, #tpu.memory_space<vmem>>, %arg10: memref<8x1xf32, #tpu.memory_space<vmem>>, %arg11: memref<8x1xf32, #tpu.memory_space<vmem>>, %arg12: memref<8x1xf32, #tpu.memory_space<vmem>>, %arg13: memref<8x1xf32, #tpu.memory_space<vmem>>, %arg14: memref<3x1xf32, #tpu.memory_space<vmem>>, %arg15: memref<9x128x32xf32, #tpu.memory_space<vmem>>, %arg16: memref<9x32x8xf32, #tpu.memory_space<vmem>>, %arg17: memref<9x8x8xf32, #tpu.memory_space<vmem>>, %arg18: memref<9x8x8xf32, #tpu.memory_space<vmem>>, %arg19: memref<9x8x32xf32, #tpu.memory_space<vmem>>, %arg20: memref<9x8x8xf32, #tpu.memory_space<vmem>>, %arg21: memref<9x8x128xf32, #tpu.memory_space<vmem>>, %arg22: memref<3x128xf32, #tpu.memory_space<vmem>>) attributes {dimension_semantics = [], scalar_prefetch = 0 : i64, scratch_operands = 0 : i64, tpu.core_type = #tpu.core_type<tc>} {
    %c0 = arith.constant 0 : index
    %c0_0 = arith.constant 0 : index
    %0 = vector.load %arg1[%c0, %c0_0] : memref<8x72xf32, #tpu.memory_space<vmem>>, vector<8x72xf32>
    %c0_1 = arith.constant 0 : index
    %c0_2 = arith.constant 0 : index
    %1 = vector.load %arg0[%c0_1, %c0_2] : memref<72x128xf32, #tpu.memory_space<vmem>>, vector<72x128xf32>
    %cst = arith.constant dense<0.000000e+00> : vector<8x128xf32>
    %2 = tpu.matmul %0, %1, %cst {dimension_numbers = #tpu.dot_dimension_numbers<[1], [0], [0], [1], [0, 0, 1, 1], [], []>} : vector<8x72xf32>, vector<72x128xf32>, vector<8x128xf32> -> vector<8x128xf32>
    %c0_3 = arith.constant 0 : index
    %c0_4 = arith.constant 0 : index
    %3 = vector.load %arg8[%c0_3, %c0_4] : memref<8x1xf32, #tpu.memory_space<vmem>>, vector<8x1xf32>
    %4 = vector.broadcast %3 : vector<8x1xf32> to vector<8x128xf32>
    %5 = arith.addf %2, %4 : vector<8x128xf32>
    %cst_5 = arith.constant 0.000000e+00 : f32
    %6 = vector.broadcast %cst_5 : f32 to vector<8x128xf32>
    %7 = arith.maximumf %5, %6 : vector<8x128xf32>
    %c0_6 = arith.constant 0 : index
    %c0_7 = arith.constant 0 : index
    %8 = vector.load %arg9[%c0_6, %c0_7] : memref<8x1xf32, #tpu.memory_space<vmem>>, vector<8x1xf32>
    %9 = vector.shape_cast %8 : vector<8x1xf32> to vector<8x1xf32>
    %10 = vector.broadcast %9 : vector<8x1xf32> to vector<8x32xf32>
    %c0_8 = arith.constant 0 : index
    %c0_9 = arith.constant 0 : index
    %c0_10 = arith.constant 0 : index
    %11 = vector.load %arg15[%c0_8, %c0_9, %c0_10] : memref<9x128x32xf32, #tpu.memory_space<vmem>>, vector<1x128x32xf32>
    %12 = vector.shape_cast %11 : vector<1x128x32xf32> to vector<128x32xf32>
    %cst_11 = arith.constant dense<0.000000e+00> : vector<8x32xf32>
    %13 = tpu.matmul %7, %12, %cst_11 {dimension_numbers = #tpu.dot_dimension_numbers<[1], [0], [0], [1], [0, 0, 1, 1], [], []>} : vector<8x128xf32>, vector<128x32xf32>, vector<8x32xf32> -> vector<8x32xf32>
    %c0_12 = arith.constant 0 : index
    %c0_13 = arith.constant 0 : index
    %14 = vector.load %arg2[%c0_12, %c0_13] : memref<8x72xf32, #tpu.memory_space<vmem>>, vector<8x8xf32>
    %cst_14 = arith.constant dense<0.000000e+00> : vector<8x32xf32>
    %15 = tpu.matmul %14, %13, %cst_14 {dimension_numbers = #tpu.dot_dimension_numbers<[1], [0], [0], [1], [0, 0, 1, 1], [], []>} : vector<8x8xf32>, vector<8x32xf32>, vector<8x32xf32> -> vector<8x32xf32>
    %16 = arith.addf %10, %15 : vector<8x32xf32>
    %c1 = arith.constant 1 : index
    %c0_15 = arith.constant 0 : index
    %c0_16 = arith.constant 0 : index
    %17 = vector.load %arg15[%c1, %c0_15, %c0_16] : memref<9x128x32xf32, #tpu.memory_space<vmem>>, vector<1x128x32xf32>
    %18 = vector.shape_cast %17 : vector<1x128x32xf32> to vector<128x32xf32>
    %cst_17 = arith.constant dense<0.000000e+00> : vector<8x32xf32>
    %19 = tpu.matmul %7, %18, %cst_17 {dimension_numbers = #tpu.dot_dimension_numbers<[1], [0], [0], [1], [0, 0, 1, 1], [], []>} : vector<8x128xf32>, vector<128x32xf32>, vector<8x32xf32> -> vector<8x32xf32>
    %c0_18 = arith.constant 0 : index
    %c8 = arith.constant 8 : index
    %20 = vector.load %arg2[%c0_18, %c8] : memref<8x72xf32, #tpu.memory_space<vmem>>, vector<8x8xf32>
    %cst_19 = arith.constant dense<0.000000e+00> : vector<8x32xf32>
    %21 = tpu.matmul %20, %19, %cst_19 {dimension_numbers = #tpu.dot_dimension_numbers<[1], [0], [0], [1], [0, 0, 1, 1], [], []>} : vector<8x8xf32>, vector<8x32xf32>, vector<8x32xf32> -> vector<8x32xf32>
    %22 = arith.addf %16, %21 : vector<8x32xf32>
    %c2 = arith.constant 2 : index
    %c0_20 = arith.constant 0 : index
    %c0_21 = arith.constant 0 : index
    %23 = vector.load %arg15[%c2, %c0_20, %c0_21] : memref<9x128x32xf32, #tpu.memory_space<vmem>>, vector<1x128x32xf32>
    %24 = vector.shape_cast %23 : vector<1x128x32xf32> to vector<128x32xf32>
    %cst_22 = arith.constant dense<0.000000e+00> : vector<8x32xf32>
    %25 = tpu.matmul %7, %24, %cst_22 {dimension_numbers = #tpu.dot_dimension_numbers<[1], [0], [0], [1], [0, 0, 1, 1], [], []>} : vector<8x128xf32>, vector<128x32xf32>, vector<8x32xf32> -> vector<8x32xf32>
    %c0_23 = arith.constant 0 : index
    %c16 = arith.constant 16 : index
    %26 = vector.load %arg2[%c0_23, %c16] : memref<8x72xf32, #tpu.memory_space<vmem>>, vector<8x8xf32>
    %cst_24 = arith.constant dense<0.000000e+00> : vector<8x32xf32>
    %27 = tpu.matmul %26, %25, %cst_24 {dimension_numbers = #tpu.dot_dimension_numbers<[1], [0], [0], [1], [0, 0, 1, 1], [], []>} : vector<8x8xf32>, vector<8x32xf32>, vector<8x32xf32> -> vector<8x32xf32>
    %28 = arith.addf %22, %27 : vector<8x32xf32>
    %c3 = arith.constant 3 : index
    %c0_25 = arith.constant 0 : index
    %c0_26 = arith.constant 0 : index
    %29 = vector.load %arg15[%c3, %c0_25, %c0_26] : memref<9x128x32xf32, #tpu.memory_space<vmem>>, vector<1x128x32xf32>
    %30 = vector.shape_cast %29 : vector<1x128x32xf32> to vector<128x32xf32>
    %cst_27 = arith.constant dense<0.000000e+00> : vector<8x32xf32>
    %31 = tpu.matmul %7, %30, %cst_27 {dimension_numbers = #tpu.dot_dimension_numbers<[1], [0], [0], [1], [0, 0, 1, 1], [], []>} : vector<8x128xf32>, vector<128x32xf32>, vector<8x32xf32> -> vector<8x32xf32>
    %c0_28 = arith.constant 0 : index
    %c24 = arith.constant 24 : index
    %32 = vector.load %arg2[%c0_28, %c24] : memref<8x72xf32, #tpu.memory_space<vmem>>, vector<8x8xf32>
    %cst_29 = arith.constant dense<0.000000e+00> : vector<8x32xf32>
    %33 = tpu.matmul %32, %31, %cst_29 {dimension_numbers = #tpu.dot_dimension_numbers<[1], [0], [0], [1], [0, 0, 1, 1], [], []>} : vector<8x8xf32>, vector<8x32xf32>, vector<8x32xf32> -> vector<8x32xf32>
    %34 = arith.addf %28, %33 : vector<8x32xf32>
    %c4 = arith.constant 4 : index
    %c0_30 = arith.constant 0 : index
    %c0_31 = arith.constant 0 : index
    %35 = vector.load %arg15[%c4, %c0_30, %c0_31] : memref<9x128x32xf32, #tpu.memory_space<vmem>>, vector<1x128x32xf32>
    %36 = vector.shape_cast %35 : vector<1x128x32xf32> to vector<128x32xf32>
    %cst_32 = arith.constant dense<0.000000e+00> : vector<8x32xf32>
    %37 = tpu.matmul %7, %36, %cst_32 {dimension_numbers = #tpu.dot_dimension_numbers<[1], [0], [0], [1], [0, 0, 1, 1], [], []>} : vector<8x128xf32>, vector<128x32xf32>, vector<8x32xf32> -> vector<8x32xf32>
    %c0_33 = arith.constant 0 : index
    %c32 = arith.constant 32 : index
    %38 = vector.load %arg2[%c0_33, %c32] : memref<8x72xf32, #tpu.memory_space<vmem>>, vector<8x8xf32>
    %cst_34 = arith.constant dense<0.000000e+00> : vector<8x32xf32>
    %39 = tpu.matmul %38, %37, %cst_34 {dimension_numbers = #tpu.dot_dimension_numbers<[1], [0], [0], [1], [0, 0, 1, 1], [], []>} : vector<8x8xf32>, vector<8x32xf32>, vector<8x32xf32> -> vector<8x32xf32>
    %40 = arith.addf %34, %39 : vector<8x32xf32>
    %c5 = arith.constant 5 : index
    %c0_35 = arith.constant 0 : index
    %c0_36 = arith.constant 0 : index
    %41 = vector.load %arg15[%c5, %c0_35, %c0_36] : memref<9x128x32xf32, #tpu.memory_space<vmem>>, vector<1x128x32xf32>
    %42 = vector.shape_cast %41 : vector<1x128x32xf32> to vector<128x32xf32>
    %cst_37 = arith.constant dense<0.000000e+00> : vector<8x32xf32>
    %43 = tpu.matmul %7, %42, %cst_37 {dimension_numbers = #tpu.dot_dimension_numbers<[1], [0], [0], [1], [0, 0, 1, 1], [], []>} : vector<8x128xf32>, vector<128x32xf32>, vector<8x32xf32> -> vector<8x32xf32>
    %c0_38 = arith.constant 0 : index
    %c40 = arith.constant 40 : index
    %44 = vector.load %arg2[%c0_38, %c40] : memref<8x72xf32, #tpu.memory_space<vmem>>, vector<8x8xf32>
    %cst_39 = arith.constant dense<0.000000e+00> : vector<8x32xf32>
    %45 = tpu.matmul %44, %43, %cst_39 {dimension_numbers = #tpu.dot_dimension_numbers<[1], [0], [0], [1], [0, 0, 1, 1], [], []>} : vector<8x8xf32>, vector<8x32xf32>, vector<8x32xf32> -> vector<8x32xf32>
    %46 = arith.addf %40, %45 : vector<8x32xf32>
    %c6 = arith.constant 6 : index
    %c0_40 = arith.constant 0 : index
    %c0_41 = arith.constant 0 : index
    %47 = vector.load %arg15[%c6, %c0_40, %c0_41] : memref<9x128x32xf32, #tpu.memory_space<vmem>>, vector<1x128x32xf32>
    %48 = vector.shape_cast %47 : vector<1x128x32xf32> to vector<128x32xf32>
    %cst_42 = arith.constant dense<0.000000e+00> : vector<8x32xf32>
    %49 = tpu.matmul %7, %48, %cst_42 {dimension_numbers = #tpu.dot_dimension_numbers<[1], [0], [0], [1], [0, 0, 1, 1], [], []>} : vector<8x128xf32>, vector<128x32xf32>, vector<8x32xf32> -> vector<8x32xf32>
    %c0_43 = arith.constant 0 : index
    %c48 = arith.constant 48 : index
    %50 = vector.load %arg2[%c0_43, %c48] : memref<8x72xf32, #tpu.memory_space<vmem>>, vector<8x8xf32>
    %cst_44 = arith.constant dense<0.000000e+00> : vector<8x32xf32>
    %51 = tpu.matmul %50, %49, %cst_44 {dimension_numbers = #tpu.dot_dimension_numbers<[1], [0], [0], [1], [0, 0, 1, 1], [], []>} : vector<8x8xf32>, vector<8x32xf32>, vector<8x32xf32> -> vector<8x32xf32>
    %52 = arith.addf %46, %51 : vector<8x32xf32>
    %c7 = arith.constant 7 : index
    %c0_45 = arith.constant 0 : index
    %c0_46 = arith.constant 0 : index
    %53 = vector.load %arg15[%c7, %c0_45, %c0_46] : memref<9x128x32xf32, #tpu.memory_space<vmem>>, vector<1x128x32xf32>
    %54 = vector.shape_cast %53 : vector<1x128x32xf32> to vector<128x32xf32>
    %cst_47 = arith.constant dense<0.000000e+00> : vector<8x32xf32>
    %55 = tpu.matmul %7, %54, %cst_47 {dimension_numbers = #tpu.dot_dimension_numbers<[1], [0], [0], [1], [0, 0, 1, 1], [], []>} : vector<8x128xf32>, vector<128x32xf32>, vector<8x32xf32> -> vector<8x32xf32>
    %c0_48 = arith.constant 0 : index
    %c56 = arith.constant 56 : index
    %56 = vector.load %arg2[%c0_48, %c56] : memref<8x72xf32, #tpu.memory_space<vmem>>, vector<8x8xf32>
    %cst_49 = arith.constant dense<0.000000e+00> : vector<8x32xf32>
    %57 = tpu.matmul %56, %55, %cst_49 {dimension_numbers = #tpu.dot_dimension_numbers<[1], [0], [0], [1], [0, 0, 1, 1], [], []>} : vector<8x8xf32>, vector<8x32xf32>, vector<8x32xf32> -> vector<8x32xf32>
    %58 = arith.addf %52, %57 : vector<8x32xf32>
    %c8_50 = arith.constant 8 : index
    %c0_51 = arith.constant 0 : index
    %c0_52 = arith.constant 0 : index
    %59 = vector.load %arg15[%c8_50, %c0_51, %c0_52] : memref<9x128x32xf32, #tpu.memory_space<vmem>>, vector<1x128x32xf32>
    %60 = vector.shape_cast %59 : vector<1x128x32xf32> to vector<128x32xf32>
    %cst_53 = arith.constant dense<0.000000e+00> : vector<8x32xf32>
    %61 = tpu.matmul %7, %60, %cst_53 {dimension_numbers = #tpu.dot_dimension_numbers<[1], [0], [0], [1], [0, 0, 1, 1], [], []>} : vector<8x128xf32>, vector<128x32xf32>, vector<8x32xf32> -> vector<8x32xf32>
    %c0_54 = arith.constant 0 : index
    %c64 = arith.constant 64 : index
    %62 = vector.load %arg2[%c0_54, %c64] : memref<8x72xf32, #tpu.memory_space<vmem>>, vector<8x8xf32>
    %cst_55 = arith.constant dense<0.000000e+00> : vector<8x32xf32>
    %63 = tpu.matmul %62, %61, %cst_55 {dimension_numbers = #tpu.dot_dimension_numbers<[1], [0], [0], [1], [0, 0, 1, 1], [], []>} : vector<8x8xf32>, vector<8x32xf32>, vector<8x32xf32> -> vector<8x32xf32>
    %64 = arith.addf %58, %63 : vector<8x32xf32>
    %cst_56 = arith.constant 0.000000e+00 : f32
    %65 = vector.broadcast %cst_56 : f32 to vector<8x32xf32>
    %66 = arith.maximumf %64, %65 : vector<8x32xf32>
    %c0_57 = arith.constant 0 : index
    %c0_58 = arith.constant 0 : index
    %67 = vector.load %arg10[%c0_57, %c0_58] : memref<8x1xf32, #tpu.memory_space<vmem>>, vector<8x1xf32>
    %68 = vector.shape_cast %67 : vector<8x1xf32> to vector<8x1xf32>
    %69 = vector.broadcast %68 : vector<8x1xf32> to vector<8x8xf32>
    %c0_59 = arith.constant 0 : index
    %c0_60 = arith.constant 0 : index
    %c0_61 = arith.constant 0 : index
    %70 = vector.load %arg16[%c0_59, %c0_60, %c0_61] : memref<9x32x8xf32, #tpu.memory_space<vmem>>, vector<1x32x8xf32>
    %71 = vector.shape_cast %70 : vector<1x32x8xf32> to vector<32x8xf32>
    %cst_62 = arith.constant dense<0.000000e+00> : vector<8x8xf32>
    %72 = tpu.matmul %66, %71, %cst_62 {dimension_numbers = #tpu.dot_dimension_numbers<[1], [0], [0], [1], [0, 0, 1, 1], [], []>} : vector<8x32xf32>, vector<32x8xf32>, vector<8x8xf32> -> vector<8x8xf32>
    %c0_63 = arith.constant 0 : index
    %c0_64 = arith.constant 0 : index
    %73 = vector.load %arg3[%c0_63, %c0_64] : memref<8x72xf32, #tpu.memory_space<vmem>>, vector<8x8xf32>
    %cst_65 = arith.constant dense<0.000000e+00> : vector<8x8xf32>
    %74 = tpu.matmul %73, %72, %cst_65 {dimension_numbers = #tpu.dot_dimension_numbers<[1], [0], [0], [1], [0, 0, 1, 1], [], []>} : vector<8x8xf32>, vector<8x8xf32>, vector<8x8xf32> -> vector<8x8xf32>
    %75 = arith.addf %69, %74 : vector<8x8xf32>
    %c1_66 = arith.constant 1 : index
    %c0_67 = arith.constant 0 : index
    %c0_68 = arith.constant 0 : index
    %76 = vector.load %arg16[%c1_66, %c0_67, %c0_68] : memref<9x32x8xf32, #tpu.memory_space<vmem>>, vector<1x32x8xf32>
    %77 = vector.shape_cast %76 : vector<1x32x8xf32> to vector<32x8xf32>
    %cst_69 = arith.constant dense<0.000000e+00> : vector<8x8xf32>
    %78 = tpu.matmul %66, %77, %cst_69 {dimension_numbers = #tpu.dot_dimension_numbers<[1], [0], [0], [1], [0, 0, 1, 1], [], []>} : vector<8x32xf32>, vector<32x8xf32>, vector<8x8xf32> -> vector<8x8xf32>
    %c0_70 = arith.constant 0 : index
    %c8_71 = arith.constant 8 : index
    %79 = vector.load %arg3[%c0_70, %c8_71] : memref<8x72xf32, #tpu.memory_space<vmem>>, vector<8x8xf32>
    %cst_72 = arith.constant dense<0.000000e+00> : vector<8x8xf32>
    %80 = tpu.matmul %79, %78, %cst_72 {dimension_numbers = #tpu.dot_dimension_numbers<[1], [0], [0], [1], [0, 0, 1, 1], [], []>} : vector<8x8xf32>, vector<8x8xf32>, vector<8x8xf32> -> vector<8x8xf32>
    %81 = arith.addf %75, %80 : vector<8x8xf32>
    %c2_73 = arith.constant 2 : index
    %c0_74 = arith.constant 0 : index
    %c0_75 = arith.constant 0 : index
    %82 = vector.load %arg16[%c2_73, %c0_74, %c0_75] : memref<9x32x8xf32, #tpu.memory_space<vmem>>, vector<1x32x8xf32>
    %83 = vector.shape_cast %82 : vector<1x32x8xf32> to vector<32x8xf32>
    %cst_76 = arith.constant dense<0.000000e+00> : vector<8x8xf32>
    %84 = tpu.matmul %66, %83, %cst_76 {dimension_numbers = #tpu.dot_dimension_numbers<[1], [0], [0], [1], [0, 0, 1, 1], [], []>} : vector<8x32xf32>, vector<32x8xf32>, vector<8x8xf32> -> vector<8x8xf32>
    %c0_77 = arith.constant 0 : index
    %c16_78 = arith.constant 16 : index
    %85 = vector.load %arg3[%c0_77, %c16_78] : memref<8x72xf32, #tpu.memory_space<vmem>>, vector<8x8xf32>
    %cst_79 = arith.constant dense<0.000000e+00> : vector<8x8xf32>
    %86 = tpu.matmul %85, %84, %cst_79 {dimension_numbers = #tpu.dot_dimension_numbers<[1], [0], [0], [1], [0, 0, 1, 1], [], []>} : vector<8x8xf32>, vector<8x8xf32>, vector<8x8xf32> -> vector<8x8xf32>
    %87 = arith.addf %81, %86 : vector<8x8xf32>
    %c3_80 = arith.constant 3 : index
    %c0_81 = arith.constant 0 : index
    %c0_82 = arith.constant 0 : index
    %88 = vector.load %arg16[%c3_80, %c0_81, %c0_82] : memref<9x32x8xf32, #tpu.memory_space<vmem>>, vector<1x32x8xf32>
    %89 = vector.shape_cast %88 : vector<1x32x8xf32> to vector<32x8xf32>
    %cst_83 = arith.constant dense<0.000000e+00> : vector<8x8xf32>
    %90 = tpu.matmul %66, %89, %cst_83 {dimension_numbers = #tpu.dot_dimension_numbers<[1], [0], [0], [1], [0, 0, 1, 1], [], []>} : vector<8x32xf32>, vector<32x8xf32>, vector<8x8xf32> -> vector<8x8xf32>
    %c0_84 = arith.constant 0 : index
    %c24_85 = arith.constant 24 : index
    %91 = vector.load %arg3[%c0_84, %c24_85] : memref<8x72xf32, #tpu.memory_space<vmem>>, vector<8x8xf32>
    %cst_86 = arith.constant dense<0.000000e+00> : vector<8x8xf32>
    %92 = tpu.matmul %91, %90, %cst_86 {dimension_numbers = #tpu.dot_dimension_numbers<[1], [0], [0], [1], [0, 0, 1, 1], [], []>} : vector<8x8xf32>, vector<8x8xf32>, vector<8x8xf32> -> vector<8x8xf32>
    %93 = arith.addf %87, %92 : vector<8x8xf32>
    %c4_87 = arith.constant 4 : index
    %c0_88 = arith.constant 0 : index
    %c0_89 = arith.constant 0 : index
    %94 = vector.load %arg16[%c4_87, %c0_88, %c0_89] : memref<9x32x8xf32, #tpu.memory_space<vmem>>, vector<1x32x8xf32>
    %95 = vector.shape_cast %94 : vector<1x32x8xf32> to vector<32x8xf32>
    %cst_90 = arith.constant dense<0.000000e+00> : vector<8x8xf32>
    %96 = tpu.matmul %66, %95, %cst_90 {dimension_numbers = #tpu.dot_dimension_numbers<[1], [0], [0], [1], [0, 0, 1, 1], [], []>} : vector<8x32xf32>, vector<32x8xf32>, vector<8x8xf32> -> vector<8x8xf32>
    %c0_91 = arith.constant 0 : index
    %c32_92 = arith.constant 32 : index
    %97 = vector.load %arg3[%c0_91, %c32_92] : memref<8x72xf32, #tpu.memory_space<vmem>>, vector<8x8xf32>
    %cst_93 = arith.constant dense<0.000000e+00> : vector<8x8xf32>
    %98 = tpu.matmul %97, %96, %cst_93 {dimension_numbers = #tpu.dot_dimension_numbers<[1], [0], [0], [1], [0, 0, 1, 1], [], []>} : vector<8x8xf32>, vector<8x8xf32>, vector<8x8xf32> -> vector<8x8xf32>
    %99 = arith.addf %93, %98 : vector<8x8xf32>
    %c5_94 = arith.constant 5 : index
    %c0_95 = arith.constant 0 : index
    %c0_96 = arith.constant 0 : index
    %100 = vector.load %arg16[%c5_94, %c0_95, %c0_96] : memref<9x32x8xf32, #tpu.memory_space<vmem>>, vector<1x32x8xf32>
    %101 = vector.shape_cast %100 : vector<1x32x8xf32> to vector<32x8xf32>
    %cst_97 = arith.constant dense<0.000000e+00> : vector<8x8xf32>
    %102 = tpu.matmul %66, %101, %cst_97 {dimension_numbers = #tpu.dot_dimension_numbers<[1], [0], [0], [1], [0, 0, 1, 1], [], []>} : vector<8x32xf32>, vector<32x8xf32>, vector<8x8xf32> -> vector<8x8xf32>
    %c0_98 = arith.constant 0 : index
    %c40_99 = arith.constant 40 : index
    %103 = vector.load %arg3[%c0_98, %c40_99] : memref<8x72xf32, #tpu.memory_space<vmem>>, vector<8x8xf32>
    %cst_100 = arith.constant dense<0.000000e+00> : vector<8x8xf32>
    %104 = tpu.matmul %103, %102, %cst_100 {dimension_numbers = #tpu.dot_dimension_numbers<[1], [0], [0], [1], [0, 0, 1, 1], [], []>} : vector<8x8xf32>, vector<8x8xf32>, vector<8x8xf32> -> vector<8x8xf32>
    %105 = arith.addf %99, %104 : vector<8x8xf32>
    %c6_101 = arith.constant 6 : index
    %c0_102 = arith.constant 0 : index
    %c0_103 = arith.constant 0 : index
    %106 = vector.load %arg16[%c6_101, %c0_102, %c0_103] : memref<9x32x8xf32, #tpu.memory_space<vmem>>, vector<1x32x8xf32>
    %107 = vector.shape_cast %106 : vector<1x32x8xf32> to vector<32x8xf32>
    %cst_104 = arith.constant dense<0.000000e+00> : vector<8x8xf32>
    %108 = tpu.matmul %66, %107, %cst_104 {dimension_numbers = #tpu.dot_dimension_numbers<[1], [0], [0], [1], [0, 0, 1, 1], [], []>} : vector<8x32xf32>, vector<32x8xf32>, vector<8x8xf32> -> vector<8x8xf32>
    %c0_105 = arith.constant 0 : index
    %c48_106 = arith.constant 48 : index
    %109 = vector.load %arg3[%c0_105, %c48_106] : memref<8x72xf32, #tpu.memory_space<vmem>>, vector<8x8xf32>
    %cst_107 = arith.constant dense<0.000000e+00> : vector<8x8xf32>
    %110 = tpu.matmul %109, %108, %cst_107 {dimension_numbers = #tpu.dot_dimension_numbers<[1], [0], [0], [1], [0, 0, 1, 1], [], []>} : vector<8x8xf32>, vector<8x8xf32>, vector<8x8xf32> -> vector<8x8xf32>
    %111 = arith.addf %105, %110 : vector<8x8xf32>
    %c7_108 = arith.constant 7 : index
    %c0_109 = arith.constant 0 : index
    %c0_110 = arith.constant 0 : index
    %112 = vector.load %arg16[%c7_108, %c0_109, %c0_110] : memref<9x32x8xf32, #tpu.memory_space<vmem>>, vector<1x32x8xf32>
    %113 = vector.shape_cast %112 : vector<1x32x8xf32> to vector<32x8xf32>
    %cst_111 = arith.constant dense<0.000000e+00> : vector<8x8xf32>
    %114 = tpu.matmul %66, %113, %cst_111 {dimension_numbers = #tpu.dot_dimension_numbers<[1], [0], [0], [1], [0, 0, 1, 1], [], []>} : vector<8x32xf32>, vector<32x8xf32>, vector<8x8xf32> -> vector<8x8xf32>
    %c0_112 = arith.constant 0 : index
    %c56_113 = arith.constant 56 : index
    %115 = vector.load %arg3[%c0_112, %c56_113] : memref<8x72xf32, #tpu.memory_space<vmem>>, vector<8x8xf32>
    %cst_114 = arith.constant dense<0.000000e+00> : vector<8x8xf32>
    %116 = tpu.matmul %115, %114, %cst_114 {dimension_numbers = #tpu.dot_dimension_numbers<[1], [0], [0], [1], [0, 0, 1, 1], [], []>} : vector<8x8xf32>, vector<8x8xf32>, vector<8x8xf32> -> vector<8x8xf32>
    %117 = arith.addf %111, %116 : vector<8x8xf32>
    %c8_115 = arith.constant 8 : index
    %c0_116 = arith.constant 0 : index
    %c0_117 = arith.constant 0 : index
    %118 = vector.load %arg16[%c8_115, %c0_116, %c0_117] : memref<9x32x8xf32, #tpu.memory_space<vmem>>, vector<1x32x8xf32>
    %119 = vector.shape_cast %118 : vector<1x32x8xf32> to vector<32x8xf32>
    %cst_118 = arith.constant dense<0.000000e+00> : vector<8x8xf32>
    %120 = tpu.matmul %66, %119, %cst_118 {dimension_numbers = #tpu.dot_dimension_numbers<[1], [0], [0], [1], [0, 0, 1, 1], [], []>} : vector<8x32xf32>, vector<32x8xf32>, vector<8x8xf32> -> vector<8x8xf32>
    %c0_119 = arith.constant 0 : index
    %c64_120 = arith.constant 64 : index
    %121 = vector.load %arg3[%c0_119, %c64_120] : memref<8x72xf32, #tpu.memory_space<vmem>>, vector<8x8xf32>
    %cst_121 = arith.constant dense<0.000000e+00> : vector<8x8xf32>
    %122 = tpu.matmul %121, %120, %cst_121 {dimension_numbers = #tpu.dot_dimension_numbers<[1], [0], [0], [1], [0, 0, 1, 1], [], []>} : vector<8x8xf32>, vector<8x8xf32>, vector<8x8xf32> -> vector<8x8xf32>
    %123 = arith.addf %117, %122 : vector<8x8xf32>
    %cst_122 = arith.constant 0.000000e+00 : f32
    %124 = vector.broadcast %cst_122 : f32 to vector<8x8xf32>
    %125 = arith.maximumf %123, %124 : vector<8x8xf32>
    %c0_123 = arith.constant 0 : index
    %c0_124 = arith.constant 0 : index
    %126 = vector.load %arg11[%c0_123, %c0_124] : memref<8x1xf32, #tpu.memory_space<vmem>>, vector<8x1xf32>
    %127 = vector.shape_cast %126 : vector<8x1xf32> to vector<8x1xf32>
    %128 = vector.broadcast %127 : vector<8x1xf32> to vector<8x8xf32>
    %c4_125 = arith.constant 4 : index
    %c0_126 = arith.constant 0 : index
    %c0_127 = arith.constant 0 : index
    %129 = vector.load %arg17[%c4_125, %c0_126, %c0_127] : memref<9x8x8xf32, #tpu.memory_space<vmem>>, vector<1x8x8xf32>
    %130 = vector.shape_cast %129 : vector<1x8x8xf32> to vector<8x8xf32>
    %cst_128 = arith.constant dense<0.000000e+00> : vector<8x8xf32>
    %131 = tpu.matmul %125, %130, %cst_128 {dimension_numbers = #tpu.dot_dimension_numbers<[1], [0], [0], [1], [0, 0, 1, 1], [], []>} : vector<8x8xf32>, vector<8x8xf32>, vector<8x8xf32> -> vector<8x8xf32>
    %c0_129 = arith.constant 0 : index
    %c32_130 = arith.constant 32 : index
    %132 = vector.load %arg4[%c0_129, %c32_130] : memref<8x72xf32, #tpu.memory_space<vmem>>, vector<8x8xf32>
    %cst_131 = arith.constant dense<0.000000e+00> : vector<8x8xf32>
    %133 = tpu.matmul %132, %131, %cst_131 {dimension_numbers = #tpu.dot_dimension_numbers<[1], [0], [0], [1], [0, 0, 1, 1], [], []>} : vector<8x8xf32>, vector<8x8xf32>, vector<8x8xf32> -> vector<8x8xf32>
    %134 = arith.addf %128, %133 : vector<8x8xf32>
    %c5_132 = arith.constant 5 : index
    %c0_133 = arith.constant 0 : index
    %c0_134 = arith.constant 0 : index
    %135 = vector.load %arg17[%c5_132, %c0_133, %c0_134] : memref<9x8x8xf32, #tpu.memory_space<vmem>>, vector<1x8x8xf32>
    %136 = vector.shape_cast %135 : vector<1x8x8xf32> to vector<8x8xf32>
    %cst_135 = arith.constant dense<0.000000e+00> : vector<8x8xf32>
    %137 = tpu.matmul %125, %136, %cst_135 {dimension_numbers = #tpu.dot_dimension_numbers<[1], [0], [0], [1], [0, 0, 1, 1], [], []>} : vector<8x8xf32>, vector<8x8xf32>, vector<8x8xf32> -> vector<8x8xf32>
    %c0_136 = arith.constant 0 : index
    %c40_137 = arith.constant 40 : index
    %138 = vector.load %arg4[%c0_136, %c40_137] : memref<8x72xf32, #tpu.memory_space<vmem>>, vector<8x8xf32>
    %cst_138 = arith.constant dense<0.000000e+00> : vector<8x8xf32>
    %139 = tpu.matmul %138, %137, %cst_138 {dimension_numbers = #tpu.dot_dimension_numbers<[1], [0], [0], [1], [0, 0, 1, 1], [], []>} : vector<8x8xf32>, vector<8x8xf32>, vector<8x8xf32> -> vector<8x8xf32>
    %140 = arith.addf %134, %139 : vector<8x8xf32>
    %c7_139 = arith.constant 7 : index
    %c0_140 = arith.constant 0 : index
    %c0_141 = arith.constant 0 : index
    %141 = vector.load %arg17[%c7_139, %c0_140, %c0_141] : memref<9x8x8xf32, #tpu.memory_space<vmem>>, vector<1x8x8xf32>
    %142 = vector.shape_cast %141 : vector<1x8x8xf32> to vector<8x8xf32>
    %cst_142 = arith.constant dense<0.000000e+00> : vector<8x8xf32>
    %143 = tpu.matmul %125, %142, %cst_142 {dimension_numbers = #tpu.dot_dimension_numbers<[1], [0], [0], [1], [0, 0, 1, 1], [], []>} : vector<8x8xf32>, vector<8x8xf32>, vector<8x8xf32> -> vector<8x8xf32>
    %c0_143 = arith.constant 0 : index
    %c56_144 = arith.constant 56 : index
    %144 = vector.load %arg4[%c0_143, %c56_144] : memref<8x72xf32, #tpu.memory_space<vmem>>, vector<8x8xf32>
    %cst_145 = arith.constant dense<0.000000e+00> : vector<8x8xf32>
    %145 = tpu.matmul %144, %143, %cst_145 {dimension_numbers = #tpu.dot_dimension_numbers<[1], [0], [0], [1], [0, 0, 1, 1], [], []>} : vector<8x8xf32>, vector<8x8xf32>, vector<8x8xf32> -> vector<8x8xf32>
    %146 = arith.addf %140, %145 : vector<8x8xf32>
    %c8_146 = arith.constant 8 : index
    %c0_147 = arith.constant 0 : index
    %c0_148 = arith.constant 0 : index
    %147 = vector.load %arg17[%c8_146, %c0_147, %c0_148] : memref<9x8x8xf32, #tpu.memory_space<vmem>>, vector<1x8x8xf32>
    %148 = vector.shape_cast %147 : vector<1x8x8xf32> to vector<8x8xf32>
    %cst_149 = arith.constant dense<0.000000e+00> : vector<8x8xf32>
    %149 = tpu.matmul %125, %148, %cst_149 {dimension_numbers = #tpu.dot_dimension_numbers<[1], [0], [0], [1], [0, 0, 1, 1], [], []>} : vector<8x8xf32>, vector<8x8xf32>, vector<8x8xf32> -> vector<8x8xf32>
    %c0_150 = arith.constant 0 : index
    %c64_151 = arith.constant 64 : index
    %150 = vector.load %arg4[%c0_150, %c64_151] : memref<8x72xf32, #tpu.memory_space<vmem>>, vector<8x8xf32>
    %cst_152 = arith.constant dense<0.000000e+00> : vector<8x8xf32>
    %151 = tpu.matmul %150, %149, %cst_152 {dimension_numbers = #tpu.dot_dimension_numbers<[1], [0], [0], [1], [0, 0, 1, 1], [], []>} : vector<8x8xf32>, vector<8x8xf32>, vector<8x8xf32> -> vector<8x8xf32>
    %152 = arith.addf %146, %151 : vector<8x8xf32>
    %cst_153 = arith.constant 0.000000e+00 : f32
    %153 = vector.broadcast %cst_153 : f32 to vector<8x8xf32>
    %154 = arith.maximumf %152, %153 : vector<8x8xf32>
    %c0_154 = arith.constant 0 : index
    %c0_155 = arith.constant 0 : index
    %155 = vector.load %arg12[%c0_154, %c0_155] : memref<8x1xf32, #tpu.memory_space<vmem>>, vector<8x1xf32>
    %156 = vector.shape_cast %155 : vector<8x1xf32> to vector<8x1xf32>
    %157 = vector.broadcast %156 : vector<8x1xf32> to vector<8x8xf32>
    %c0_156 = arith.constant 0 : index
    %c0_157 = arith.constant 0 : index
    %c0_158 = arith.constant 0 : index
    %158 = vector.load %arg18[%c0_156, %c0_157, %c0_158] : memref<9x8x8xf32, #tpu.memory_space<vmem>>, vector<1x8x8xf32>
    %159 = vector.shape_cast %158 : vector<1x8x8xf32> to vector<8x8xf32>
    %cst_159 = arith.constant dense<0.000000e+00> : vector<8x8xf32>
    %160 = tpu.matmul %154, %159, %cst_159 {dimension_numbers = #tpu.dot_dimension_numbers<[1], [0], [0], [1], [0, 0, 1, 1], [], []>} : vector<8x8xf32>, vector<8x8xf32>, vector<8x8xf32> -> vector<8x8xf32>
    %c0_160 = arith.constant 0 : index
    %c0_161 = arith.constant 0 : index
    %161 = vector.load %arg5[%c0_160, %c0_161] : memref<8x72xf32, #tpu.memory_space<vmem>>, vector<8x8xf32>
    %cst_162 = arith.constant dense<0.000000e+00> : vector<8x8xf32>
    %162 = tpu.matmul %161, %160, %cst_162 {dimension_numbers = #tpu.dot_dimension_numbers<[1], [0], [0], [1], [0, 0, 1, 1], [], []>} : vector<8x8xf32>, vector<8x8xf32>, vector<8x8xf32> -> vector<8x8xf32>
    %163 = arith.addf %157, %162 : vector<8x8xf32>
    %c1_163 = arith.constant 1 : index
    %c0_164 = arith.constant 0 : index
    %c0_165 = arith.constant 0 : index
    %164 = vector.load %arg18[%c1_163, %c0_164, %c0_165] : memref<9x8x8xf32, #tpu.memory_space<vmem>>, vector<1x8x8xf32>
    %165 = vector.shape_cast %164 : vector<1x8x8xf32> to vector<8x8xf32>
    %cst_166 = arith.constant dense<0.000000e+00> : vector<8x8xf32>
    %166 = tpu.matmul %154, %165, %cst_166 {dimension_numbers = #tpu.dot_dimension_numbers<[1], [0], [0], [1], [0, 0, 1, 1], [], []>} : vector<8x8xf32>, vector<8x8xf32>, vector<8x8xf32> -> vector<8x8xf32>
    %c0_167 = arith.constant 0 : index
    %c8_168 = arith.constant 8 : index
    %167 = vector.load %arg5[%c0_167, %c8_168] : memref<8x72xf32, #tpu.memory_space<vmem>>, vector<8x8xf32>
    %cst_169 = arith.constant dense<0.000000e+00> : vector<8x8xf32>
    %168 = tpu.matmul %167, %166, %cst_169 {dimension_numbers = #tpu.dot_dimension_numbers<[1], [0], [0], [1], [0, 0, 1, 1], [], []>} : vector<8x8xf32>, vector<8x8xf32>, vector<8x8xf32> -> vector<8x8xf32>
    %169 = arith.addf %163, %168 : vector<8x8xf32>
    %c3_170 = arith.constant 3 : index
    %c0_171 = arith.constant 0 : index
    %c0_172 = arith.constant 0 : index
    %170 = vector.load %arg18[%c3_170, %c0_171, %c0_172] : memref<9x8x8xf32, #tpu.memory_space<vmem>>, vector<1x8x8xf32>
    %171 = vector.shape_cast %170 : vector<1x8x8xf32> to vector<8x8xf32>
    %cst_173 = arith.constant dense<0.000000e+00> : vector<8x8xf32>
    %172 = tpu.matmul %154, %171, %cst_173 {dimension_numbers = #tpu.dot_dimension_numbers<[1], [0], [0], [1], [0, 0, 1, 1], [], []>} : vector<8x8xf32>, vector<8x8xf32>, vector<8x8xf32> -> vector<8x8xf32>
    %c0_174 = arith.constant 0 : index
    %c24_175 = arith.constant 24 : index
    %173 = vector.load %arg5[%c0_174, %c24_175] : memref<8x72xf32, #tpu.memory_space<vmem>>, vector<8x8xf32>
    %cst_176 = arith.constant dense<0.000000e+00> : vector<8x8xf32>
    %174 = tpu.matmul %173, %172, %cst_176 {dimension_numbers = #tpu.dot_dimension_numbers<[1], [0], [0], [1], [0, 0, 1, 1], [], []>} : vector<8x8xf32>, vector<8x8xf32>, vector<8x8xf32> -> vector<8x8xf32>
    %175 = arith.addf %169, %174 : vector<8x8xf32>
    %c4_177 = arith.constant 4 : index
    %c0_178 = arith.constant 0 : index
    %c0_179 = arith.constant 0 : index
    %176 = vector.load %arg18[%c4_177, %c0_178, %c0_179] : memref<9x8x8xf32, #tpu.memory_space<vmem>>, vector<1x8x8xf32>
    %177 = vector.shape_cast %176 : vector<1x8x8xf32> to vector<8x8xf32>
    %cst_180 = arith.constant dense<0.000000e+00> : vector<8x8xf32>
    %178 = tpu.matmul %154, %177, %cst_180 {dimension_numbers = #tpu.dot_dimension_numbers<[1], [0], [0], [1], [0, 0, 1, 1], [], []>} : vector<8x8xf32>, vector<8x8xf32>, vector<8x8xf32> -> vector<8x8xf32>
    %c0_181 = arith.constant 0 : index
    %c32_182 = arith.constant 32 : index
    %179 = vector.load %arg5[%c0_181, %c32_182] : memref<8x72xf32, #tpu.memory_space<vmem>>, vector<8x8xf32>
    %cst_183 = arith.constant dense<0.000000e+00> : vector<8x8xf32>
    %180 = tpu.matmul %179, %178, %cst_183 {dimension_numbers = #tpu.dot_dimension_numbers<[1], [0], [0], [1], [0, 0, 1, 1], [], []>} : vector<8x8xf32>, vector<8x8xf32>, vector<8x8xf32> -> vector<8x8xf32>
    %181 = arith.addf %175, %180 : vector<8x8xf32>
    %cst_184 = arith.constant 0.000000e+00 : f32
    %182 = vector.broadcast %cst_184 : f32 to vector<8x8xf32>
    %183 = arith.maximumf %181, %182 : vector<8x8xf32>
    %c0_185 = arith.constant 0 : index
    %c0_186 = arith.constant 0 : index
    %184 = vector.load %arg13[%c0_185, %c0_186] : memref<8x1xf32, #tpu.memory_space<vmem>>, vector<8x1xf32>
    %185 = vector.shape_cast %184 : vector<8x1xf32> to vector<8x1xf32>
    %186 = vector.broadcast %185 : vector<8x1xf32> to vector<8x32xf32>
    %c0_187 = arith.constant 0 : index
    %c0_188 = arith.constant 0 : index
    %c0_189 = arith.constant 0 : index
    %187 = vector.load %arg19[%c0_187, %c0_188, %c0_189] : memref<9x8x32xf32, #tpu.memory_space<vmem>>, vector<1x8x32xf32>
    %188 = vector.shape_cast %187 : vector<1x8x32xf32> to vector<8x32xf32>
    %cst_190 = arith.constant dense<0.000000e+00> : vector<8x32xf32>
    %189 = tpu.matmul %183, %188, %cst_190 {dimension_numbers = #tpu.dot_dimension_numbers<[1], [0], [0], [1], [0, 0, 1, 1], [], []>} : vector<8x8xf32>, vector<8x32xf32>, vector<8x32xf32> -> vector<8x32xf32>
    %c0_191 = arith.constant 0 : index
    %c0_192 = arith.constant 0 : index
    %190 = vector.load %arg6[%c0_191, %c0_192] : memref<8x72xf32, #tpu.memory_space<vmem>>, vector<8x8xf32>
    %cst_193 = arith.constant dense<0.000000e+00> : vector<8x32xf32>
    %191 = tpu.matmul %190, %189, %cst_193 {dimension_numbers = #tpu.dot_dimension_numbers<[1], [0], [0], [1], [0, 0, 1, 1], [], []>} : vector<8x8xf32>, vector<8x32xf32>, vector<8x32xf32> -> vector<8x32xf32>
    %192 = arith.addf %186, %191 : vector<8x32xf32>
    %c1_194 = arith.constant 1 : index
    %c0_195 = arith.constant 0 : index
    %c0_196 = arith.constant 0 : index
    %193 = vector.load %arg19[%c1_194, %c0_195, %c0_196] : memref<9x8x32xf32, #tpu.memory_space<vmem>>, vector<1x8x32xf32>
    %194 = vector.shape_cast %193 : vector<1x8x32xf32> to vector<8x32xf32>
    %cst_197 = arith.constant dense<0.000000e+00> : vector<8x32xf32>
    %195 = tpu.matmul %183, %194, %cst_197 {dimension_numbers = #tpu.dot_dimension_numbers<[1], [0], [0], [1], [0, 0, 1, 1], [], []>} : vector<8x8xf32>, vector<8x32xf32>, vector<8x32xf32> -> vector<8x32xf32>
    %c0_198 = arith.constant 0 : index
    %c8_199 = arith.constant 8 : index
    %196 = vector.load %arg6[%c0_198, %c8_199] : memref<8x72xf32, #tpu.memory_space<vmem>>, vector<8x8xf32>
    %cst_200 = arith.constant dense<0.000000e+00> : vector<8x32xf32>
    %197 = tpu.matmul %196, %195, %cst_200 {dimension_numbers = #tpu.dot_dimension_numbers<[1], [0], [0], [1], [0, 0, 1, 1], [], []>} : vector<8x8xf32>, vector<8x32xf32>, vector<8x32xf32> -> vector<8x32xf32>
    %198 = arith.addf %192, %197 : vector<8x32xf32>
    %c2_201 = arith.constant 2 : index
    %c0_202 = arith.constant 0 : index
    %c0_203 = arith.constant 0 : index
    %199 = vector.load %arg19[%c2_201, %c0_202, %c0_203] : memref<9x8x32xf32, #tpu.memory_space<vmem>>, vector<1x8x32xf32>
    %200 = vector.shape_cast %199 : vector<1x8x32xf32> to vector<8x32xf32>
    %cst_204 = arith.constant dense<0.000000e+00> : vector<8x32xf32>
    %201 = tpu.matmul %183, %200, %cst_204 {dimension_numbers = #tpu.dot_dimension_numbers<[1], [0], [0], [1], [0, 0, 1, 1], [], []>} : vector<8x8xf32>, vector<8x32xf32>, vector<8x32xf32> -> vector<8x32xf32>
    %c0_205 = arith.constant 0 : index
    %c16_206 = arith.constant 16 : index
    %202 = vector.load %arg6[%c0_205, %c16_206] : memref<8x72xf32, #tpu.memory_space<vmem>>, vector<8x8xf32>
    %cst_207 = arith.constant dense<0.000000e+00> : vector<8x32xf32>
    %203 = tpu.matmul %202, %201, %cst_207 {dimension_numbers = #tpu.dot_dimension_numbers<[1], [0], [0], [1], [0, 0, 1, 1], [], []>} : vector<8x8xf32>, vector<8x32xf32>, vector<8x32xf32> -> vector<8x32xf32>
    %204 = arith.addf %198, %203 : vector<8x32xf32>
    %c3_208 = arith.constant 3 : index
    %c0_209 = arith.constant 0 : index
    %c0_210 = arith.constant 0 : index
    %205 = vector.load %arg19[%c3_208, %c0_209, %c0_210] : memref<9x8x32xf32, #tpu.memory_space<vmem>>, vector<1x8x32xf32>
    %206 = vector.shape_cast %205 : vector<1x8x32xf32> to vector<8x32xf32>
    %cst_211 = arith.constant dense<0.000000e+00> : vector<8x32xf32>
    %207 = tpu.matmul %183, %206, %cst_211 {dimension_numbers = #tpu.dot_dimension_numbers<[1], [0], [0], [1], [0, 0, 1, 1], [], []>} : vector<8x8xf32>, vector<8x32xf32>, vector<8x32xf32> -> vector<8x32xf32>
    %c0_212 = arith.constant 0 : index
    %c24_213 = arith.constant 24 : index
    %208 = vector.load %arg6[%c0_212, %c24_213] : memref<8x72xf32, #tpu.memory_space<vmem>>, vector<8x8xf32>
    %cst_214 = arith.constant dense<0.000000e+00> : vector<8x32xf32>
    %209 = tpu.matmul %208, %207, %cst_214 {dimension_numbers = #tpu.dot_dimension_numbers<[1], [0], [0], [1], [0, 0, 1, 1], [], []>} : vector<8x8xf32>, vector<8x32xf32>, vector<8x32xf32> -> vector<8x32xf32>
    %210 = arith.addf %204, %209 : vector<8x32xf32>
    %c4_215 = arith.constant 4 : index
    %c0_216 = arith.constant 0 : index
    %c0_217 = arith.constant 0 : index
    %211 = vector.load %arg19[%c4_215, %c0_216, %c0_217] : memref<9x8x32xf32, #tpu.memory_space<vmem>>, vector<1x8x32xf32>
    %212 = vector.shape_cast %211 : vector<1x8x32xf32> to vector<8x32xf32>
    %cst_218 = arith.constant dense<0.000000e+00> : vector<8x32xf32>
    %213 = tpu.matmul %183, %212, %cst_218 {dimension_numbers = #tpu.dot_dimension_numbers<[1], [0], [0], [1], [0, 0, 1, 1], [], []>} : vector<8x8xf32>, vector<8x32xf32>, vector<8x32xf32> -> vector<8x32xf32>
    %c0_219 = arith.constant 0 : index
    %c32_220 = arith.constant 32 : index
    %214 = vector.load %arg6[%c0_219, %c32_220] : memref<8x72xf32, #tpu.memory_space<vmem>>, vector<8x8xf32>
    %cst_221 = arith.constant dense<0.000000e+00> : vector<8x32xf32>
    %215 = tpu.matmul %214, %213, %cst_221 {dimension_numbers = #tpu.dot_dimension_numbers<[1], [0], [0], [1], [0, 0, 1, 1], [], []>} : vector<8x8xf32>, vector<8x32xf32>, vector<8x32xf32> -> vector<8x32xf32>
    %216 = arith.addf %210, %215 : vector<8x32xf32>
    %c5_222 = arith.constant 5 : index
    %c0_223 = arith.constant 0 : index
    %c0_224 = arith.constant 0 : index
    %217 = vector.load %arg19[%c5_222, %c0_223, %c0_224] : memref<9x8x32xf32, #tpu.memory_space<vmem>>, vector<1x8x32xf32>
    %218 = vector.shape_cast %217 : vector<1x8x32xf32> to vector<8x32xf32>
    %cst_225 = arith.constant dense<0.000000e+00> : vector<8x32xf32>
    %219 = tpu.matmul %183, %218, %cst_225 {dimension_numbers = #tpu.dot_dimension_numbers<[1], [0], [0], [1], [0, 0, 1, 1], [], []>} : vector<8x8xf32>, vector<8x32xf32>, vector<8x32xf32> -> vector<8x32xf32>
    %c0_226 = arith.constant 0 : index
    %c40_227 = arith.constant 40 : index
    %220 = vector.load %arg6[%c0_226, %c40_227] : memref<8x72xf32, #tpu.memory_space<vmem>>, vector<8x8xf32>
    %cst_228 = arith.constant dense<0.000000e+00> : vector<8x32xf32>
    %221 = tpu.matmul %220, %219, %cst_228 {dimension_numbers = #tpu.dot_dimension_numbers<[1], [0], [0], [1], [0, 0, 1, 1], [], []>} : vector<8x8xf32>, vector<8x32xf32>, vector<8x32xf32> -> vector<8x32xf32>
    %222 = arith.addf %216, %221 : vector<8x32xf32>
    %c6_229 = arith.constant 6 : index
    %c0_230 = arith.constant 0 : index
    %c0_231 = arith.constant 0 : index
    %223 = vector.load %arg19[%c6_229, %c0_230, %c0_231] : memref<9x8x32xf32, #tpu.memory_space<vmem>>, vector<1x8x32xf32>
    %224 = vector.shape_cast %223 : vector<1x8x32xf32> to vector<8x32xf32>
    %cst_232 = arith.constant dense<0.000000e+00> : vector<8x32xf32>
    %225 = tpu.matmul %183, %224, %cst_232 {dimension_numbers = #tpu.dot_dimension_numbers<[1], [0], [0], [1], [0, 0, 1, 1], [], []>} : vector<8x8xf32>, vector<8x32xf32>, vector<8x32xf32> -> vector<8x32xf32>
    %c0_233 = arith.constant 0 : index
    %c48_234 = arith.constant 48 : index
    %226 = vector.load %arg6[%c0_233, %c48_234] : memref<8x72xf32, #tpu.memory_space<vmem>>, vector<8x8xf32>
    %cst_235 = arith.constant dense<0.000000e+00> : vector<8x32xf32>
    %227 = tpu.matmul %226, %225, %cst_235 {dimension_numbers = #tpu.dot_dimension_numbers<[1], [0], [0], [1], [0, 0, 1, 1], [], []>} : vector<8x8xf32>, vector<8x32xf32>, vector<8x32xf32> -> vector<8x32xf32>
    %228 = arith.addf %222, %227 : vector<8x32xf32>
    %c7_236 = arith.constant 7 : index
    %c0_237 = arith.constant 0 : index
    %c0_238 = arith.constant 0 : index
    %229 = vector.load %arg19[%c7_236, %c0_237, %c0_238] : memref<9x8x32xf32, #tpu.memory_space<vmem>>, vector<1x8x32xf32>
    %230 = vector.shape_cast %229 : vector<1x8x32xf32> to vector<8x32xf32>
    %cst_239 = arith.constant dense<0.000000e+00> : vector<8x32xf32>
    %231 = tpu.matmul %183, %230, %cst_239 {dimension_numbers = #tpu.dot_dimension_numbers<[1], [0], [0], [1], [0, 0, 1, 1], [], []>} : vector<8x8xf32>, vector<8x32xf32>, vector<8x32xf32> -> vector<8x32xf32>
    %c0_240 = arith.constant 0 : index
    %c56_241 = arith.constant 56 : index
    %232 = vector.load %arg6[%c0_240, %c56_241] : memref<8x72xf32, #tpu.memory_space<vmem>>, vector<8x8xf32>
    %cst_242 = arith.constant dense<0.000000e+00> : vector<8x32xf32>
    %233 = tpu.matmul %232, %231, %cst_242 {dimension_numbers = #tpu.dot_dimension_numbers<[1], [0], [0], [1], [0, 0, 1, 1], [], []>} : vector<8x8xf32>, vector<8x32xf32>, vector<8x32xf32> -> vector<8x32xf32>
    %234 = arith.addf %228, %233 : vector<8x32xf32>
    %c8_243 = arith.constant 8 : index
    %c0_244 = arith.constant 0 : index
    %c0_245 = arith.constant 0 : index
    %235 = vector.load %arg19[%c8_243, %c0_244, %c0_245] : memref<9x8x32xf32, #tpu.memory_space<vmem>>, vector<1x8x32xf32>
    %236 = vector.shape_cast %235 : vector<1x8x32xf32> to vector<8x32xf32>
    %cst_246 = arith.constant dense<0.000000e+00> : vector<8x32xf32>
    %237 = tpu.matmul %183, %236, %cst_246 {dimension_numbers = #tpu.dot_dimension_numbers<[1], [0], [0], [1], [0, 0, 1, 1], [], []>} : vector<8x8xf32>, vector<8x32xf32>, vector<8x32xf32> -> vector<8x32xf32>
    %c0_247 = arith.constant 0 : index
    %c64_248 = arith.constant 64 : index
    %238 = vector.load %arg6[%c0_247, %c64_248] : memref<8x72xf32, #tpu.memory_space<vmem>>, vector<8x8xf32>
    %cst_249 = arith.constant dense<0.000000e+00> : vector<8x32xf32>
    %239 = tpu.matmul %238, %237, %cst_249 {dimension_numbers = #tpu.dot_dimension_numbers<[1], [0], [0], [1], [0, 0, 1, 1], [], []>} : vector<8x8xf32>, vector<8x32xf32>, vector<8x32xf32> -> vector<8x32xf32>
    %240 = arith.addf %234, %239 : vector<8x32xf32>
    %cst_250 = arith.constant 0.000000e+00 : f32
    %241 = vector.broadcast %cst_250 : f32 to vector<8x32xf32>
    %242 = arith.maximumf %240, %241 : vector<8x32xf32>
    %c0_251 = arith.constant 0 : index
    %c0_252 = arith.constant 0 : index
    %243 = vector.load %arg9[%c0_251, %c0_252] : memref<8x1xf32, #tpu.memory_space<vmem>>, vector<8x1xf32>
    %244 = vector.shape_cast %243 : vector<8x1xf32> to vector<8x1xf32>
    %245 = vector.broadcast %244 : vector<8x1xf32> to vector<8x8xf32>
    %c0_253 = arith.constant 0 : index
    %c0_254 = arith.constant 0 : index
    %c0_255 = arith.constant 0 : index
    %246 = vector.load %arg16[%c0_253, %c0_254, %c0_255] : memref<9x32x8xf32, #tpu.memory_space<vmem>>, vector<1x32x8xf32>
    %247 = vector.shape_cast %246 : vector<1x32x8xf32> to vector<32x8xf32>
    %cst_256 = arith.constant dense<0.000000e+00> : vector<8x8xf32>
    %248 = tpu.matmul %242, %247, %cst_256 {dimension_numbers = #tpu.dot_dimension_numbers<[1], [0], [0], [1], [0, 0, 1, 1], [], []>} : vector<8x32xf32>, vector<32x8xf32>, vector<8x8xf32> -> vector<8x8xf32>
    %c0_257 = arith.constant 0 : index
    %c0_258 = arith.constant 0 : index
    %249 = vector.load %arg2[%c0_257, %c0_258] : memref<8x72xf32, #tpu.memory_space<vmem>>, vector<8x8xf32>
    %cst_259 = arith.constant dense<0.000000e+00> : vector<8x8xf32>
    %250 = tpu.matmul %249, %248, %cst_259 {dimension_numbers = #tpu.dot_dimension_numbers<[1], [0], [0], [1], [0, 0, 1, 1], [], []>} : vector<8x8xf32>, vector<8x8xf32>, vector<8x8xf32> -> vector<8x8xf32>
    %251 = arith.addf %245, %250 : vector<8x8xf32>
    %c1_260 = arith.constant 1 : index
    %c0_261 = arith.constant 0 : index
    %c0_262 = arith.constant 0 : index
    %252 = vector.load %arg16[%c1_260, %c0_261, %c0_262] : memref<9x32x8xf32, #tpu.memory_space<vmem>>, vector<1x32x8xf32>
    %253 = vector.shape_cast %252 : vector<1x32x8xf32> to vector<32x8xf32>
    %cst_263 = arith.constant dense<0.000000e+00> : vector<8x8xf32>
    %254 = tpu.matmul %242, %253, %cst_263 {dimension_numbers = #tpu.dot_dimension_numbers<[1], [0], [0], [1], [0, 0, 1, 1], [], []>} : vector<8x32xf32>, vector<32x8xf32>, vector<8x8xf32> -> vector<8x8xf32>
    %c0_264 = arith.constant 0 : index
    %c8_265 = arith.constant 8 : index
    %255 = vector.load %arg2[%c0_264, %c8_265] : memref<8x72xf32, #tpu.memory_space<vmem>>, vector<8x8xf32>
    %cst_266 = arith.constant dense<0.000000e+00> : vector<8x8xf32>
    %256 = tpu.matmul %255, %254, %cst_266 {dimension_numbers = #tpu.dot_dimension_numbers<[1], [0], [0], [1], [0, 0, 1, 1], [], []>} : vector<8x8xf32>, vector<8x8xf32>, vector<8x8xf32> -> vector<8x8xf32>
    %257 = arith.addf %251, %256 : vector<8x8xf32>
    %c2_267 = arith.constant 2 : index
    %c0_268 = arith.constant 0 : index
    %c0_269 = arith.constant 0 : index
    %258 = vector.load %arg16[%c2_267, %c0_268, %c0_269] : memref<9x32x8xf32, #tpu.memory_space<vmem>>, vector<1x32x8xf32>
    %259 = vector.shape_cast %258 : vector<1x32x8xf32> to vector<32x8xf32>
    %cst_270 = arith.constant dense<0.000000e+00> : vector<8x8xf32>
    %260 = tpu.matmul %242, %259, %cst_270 {dimension_numbers = #tpu.dot_dimension_numbers<[1], [0], [0], [1], [0, 0, 1, 1], [], []>} : vector<8x32xf32>, vector<32x8xf32>, vector<8x8xf32> -> vector<8x8xf32>
    %c0_271 = arith.constant 0 : index
    %c16_272 = arith.constant 16 : index
    %261 = vector.load %arg2[%c0_271, %c16_272] : memref<8x72xf32, #tpu.memory_space<vmem>>, vector<8x8xf32>
    %cst_273 = arith.constant dense<0.000000e+00> : vector<8x8xf32>
    %262 = tpu.matmul %261, %260, %cst_273 {dimension_numbers = #tpu.dot_dimension_numbers<[1], [0], [0], [1], [0, 0, 1, 1], [], []>} : vector<8x8xf32>, vector<8x8xf32>, vector<8x8xf32> -> vector<8x8xf32>
    %263 = arith.addf %257, %262 : vector<8x8xf32>
    %c3_274 = arith.constant 3 : index
    %c0_275 = arith.constant 0 : index
    %c0_276 = arith.constant 0 : index
    %264 = vector.load %arg16[%c3_274, %c0_275, %c0_276] : memref<9x32x8xf32, #tpu.memory_space<vmem>>, vector<1x32x8xf32>
    %265 = vector.shape_cast %264 : vector<1x32x8xf32> to vector<32x8xf32>
    %cst_277 = arith.constant dense<0.000000e+00> : vector<8x8xf32>
    %266 = tpu.matmul %242, %265, %cst_277 {dimension_numbers = #tpu.dot_dimension_numbers<[1], [0], [0], [1], [0, 0, 1, 1], [], []>} : vector<8x32xf32>, vector<32x8xf32>, vector<8x8xf32> -> vector<8x8xf32>
    %c0_278 = arith.constant 0 : index
    %c24_279 = arith.constant 24 : index
    %267 = vector.load %arg2[%c0_278, %c24_279] : memref<8x72xf32, #tpu.memory_space<vmem>>, vector<8x8xf32>
    %cst_280 = arith.constant dense<0.000000e+00> : vector<8x8xf32>
    %268 = tpu.matmul %267, %266, %cst_280 {dimension_numbers = #tpu.dot_dimension_numbers<[1], [0], [0], [1], [0, 0, 1, 1], [], []>} : vector<8x8xf32>, vector<8x8xf32>, vector<8x8xf32> -> vector<8x8xf32>
    %269 = arith.addf %263, %268 : vector<8x8xf32>
    %c4_281 = arith.constant 4 : index
    %c0_282 = arith.constant 0 : index
    %c0_283 = arith.constant 0 : index
    %270 = vector.load %arg16[%c4_281, %c0_282, %c0_283] : memref<9x32x8xf32, #tpu.memory_space<vmem>>, vector<1x32x8xf32>
    %271 = vector.shape_cast %270 : vector<1x32x8xf32> to vector<32x8xf32>
    %cst_284 = arith.constant dense<0.000000e+00> : vector<8x8xf32>
    %272 = tpu.matmul %242, %271, %cst_284 {dimension_numbers = #tpu.dot_dimension_numbers<[1], [0], [0], [1], [0, 0, 1, 1], [], []>} : vector<8x32xf32>, vector<32x8xf32>, vector<8x8xf32> -> vector<8x8xf32>
    %c0_285 = arith.constant 0 : index
    %c32_286 = arith.constant 32 : index
    %273 = vector.load %arg2[%c0_285, %c32_286] : memref<8x72xf32, #tpu.memory_space<vmem>>, vector<8x8xf32>
    %cst_287 = arith.constant dense<0.000000e+00> : vector<8x8xf32>
    %274 = tpu.matmul %273, %272, %cst_287 {dimension_numbers = #tpu.dot_dimension_numbers<[1], [0], [0], [1], [0, 0, 1, 1], [], []>} : vector<8x8xf32>, vector<8x8xf32>, vector<8x8xf32> -> vector<8x8xf32>
    %275 = arith.addf %269, %274 : vector<8x8xf32>
    %c5_288 = arith.constant 5 : index
    %c0_289 = arith.constant 0 : index
    %c0_290 = arith.constant 0 : index
    %276 = vector.load %arg16[%c5_288, %c0_289, %c0_290] : memref<9x32x8xf32, #tpu.memory_space<vmem>>, vector<1x32x8xf32>
    %277 = vector.shape_cast %276 : vector<1x32x8xf32> to vector<32x8xf32>
    %cst_291 = arith.constant dense<0.000000e+00> : vector<8x8xf32>
    %278 = tpu.matmul %242, %277, %cst_291 {dimension_numbers = #tpu.dot_dimension_numbers<[1], [0], [0], [1], [0, 0, 1, 1], [], []>} : vector<8x32xf32>, vector<32x8xf32>, vector<8x8xf32> -> vector<8x8xf32>
    %c0_292 = arith.constant 0 : index
    %c40_293 = arith.constant 40 : index
    %279 = vector.load %arg2[%c0_292, %c40_293] : memref<8x72xf32, #tpu.memory_space<vmem>>, vector<8x8xf32>
    %cst_294 = arith.constant dense<0.000000e+00> : vector<8x8xf32>
    %280 = tpu.matmul %279, %278, %cst_294 {dimension_numbers = #tpu.dot_dimension_numbers<[1], [0], [0], [1], [0, 0, 1, 1], [], []>} : vector<8x8xf32>, vector<8x8xf32>, vector<8x8xf32> -> vector<8x8xf32>
    %281 = arith.addf %275, %280 : vector<8x8xf32>
    %c6_295 = arith.constant 6 : index
    %c0_296 = arith.constant 0 : index
    %c0_297 = arith.constant 0 : index
    %282 = vector.load %arg16[%c6_295, %c0_296, %c0_297] : memref<9x32x8xf32, #tpu.memory_space<vmem>>, vector<1x32x8xf32>
    %283 = vector.shape_cast %282 : vector<1x32x8xf32> to vector<32x8xf32>
    %cst_298 = arith.constant dense<0.000000e+00> : vector<8x8xf32>
    %284 = tpu.matmul %242, %283, %cst_298 {dimension_numbers = #tpu.dot_dimension_numbers<[1], [0], [0], [1], [0, 0, 1, 1], [], []>} : vector<8x32xf32>, vector<32x8xf32>, vector<8x8xf32> -> vector<8x8xf32>
    %c0_299 = arith.constant 0 : index
    %c48_300 = arith.constant 48 : index
    %285 = vector.load %arg2[%c0_299, %c48_300] : memref<8x72xf32, #tpu.memory_space<vmem>>, vector<8x8xf32>
    %cst_301 = arith.constant dense<0.000000e+00> : vector<8x8xf32>
    %286 = tpu.matmul %285, %284, %cst_301 {dimension_numbers = #tpu.dot_dimension_numbers<[1], [0], [0], [1], [0, 0, 1, 1], [], []>} : vector<8x8xf32>, vector<8x8xf32>, vector<8x8xf32> -> vector<8x8xf32>
    %287 = arith.addf %281, %286 : vector<8x8xf32>
    %c7_302 = arith.constant 7 : index
    %c0_303 = arith.constant 0 : index
    %c0_304 = arith.constant 0 : index
    %288 = vector.load %arg16[%c7_302, %c0_303, %c0_304] : memref<9x32x8xf32, #tpu.memory_space<vmem>>, vector<1x32x8xf32>
    %289 = vector.shape_cast %288 : vector<1x32x8xf32> to vector<32x8xf32>
    %cst_305 = arith.constant dense<0.000000e+00> : vector<8x8xf32>
    %290 = tpu.matmul %242, %289, %cst_305 {dimension_numbers = #tpu.dot_dimension_numbers<[1], [0], [0], [1], [0, 0, 1, 1], [], []>} : vector<8x32xf32>, vector<32x8xf32>, vector<8x8xf32> -> vector<8x8xf32>
    %c0_306 = arith.constant 0 : index
    %c56_307 = arith.constant 56 : index
    %291 = vector.load %arg2[%c0_306, %c56_307] : memref<8x72xf32, #tpu.memory_space<vmem>>, vector<8x8xf32>
    %cst_308 = arith.constant dense<0.000000e+00> : vector<8x8xf32>
    %292 = tpu.matmul %291, %290, %cst_308 {dimension_numbers = #tpu.dot_dimension_numbers<[1], [0], [0], [1], [0, 0, 1, 1], [], []>} : vector<8x8xf32>, vector<8x8xf32>, vector<8x8xf32> -> vector<8x8xf32>
    %293 = arith.addf %287, %292 : vector<8x8xf32>
    %c8_309 = arith.constant 8 : index
    %c0_310 = arith.constant 0 : index
    %c0_311 = arith.constant 0 : index
    %294 = vector.load %arg16[%c8_309, %c0_310, %c0_311] : memref<9x32x8xf32, #tpu.memory_space<vmem>>, vector<1x32x8xf32>
    %295 = vector.shape_cast %294 : vector<1x32x8xf32> to vector<32x8xf32>
    %cst_312 = arith.constant dense<0.000000e+00> : vector<8x8xf32>
    %296 = tpu.matmul %242, %295, %cst_312 {dimension_numbers = #tpu.dot_dimension_numbers<[1], [0], [0], [1], [0, 0, 1, 1], [], []>} : vector<8x32xf32>, vector<32x8xf32>, vector<8x8xf32> -> vector<8x8xf32>
    %c0_313 = arith.constant 0 : index
    %c64_314 = arith.constant 64 : index
    %297 = vector.load %arg2[%c0_313, %c64_314] : memref<8x72xf32, #tpu.memory_space<vmem>>, vector<8x8xf32>
    %cst_315 = arith.constant dense<0.000000e+00> : vector<8x8xf32>
    %298 = tpu.matmul %297, %296, %cst_315 {dimension_numbers = #tpu.dot_dimension_numbers<[1], [0], [0], [1], [0, 0, 1, 1], [], []>} : vector<8x8xf32>, vector<8x8xf32>, vector<8x8xf32> -> vector<8x8xf32>
    %299 = arith.addf %293, %298 : vector<8x8xf32>
    %cst_316 = arith.constant 0.000000e+00 : f32
    %300 = vector.broadcast %cst_316 : f32 to vector<8x8xf32>
    %301 = arith.maximumf %299, %300 : vector<8x8xf32>
    %c0_317 = arith.constant 0 : index
    %c0_318 = arith.constant 0 : index
    %302 = vector.load %arg10[%c0_317, %c0_318] : memref<8x1xf32, #tpu.memory_space<vmem>>, vector<8x1xf32>
    %303 = vector.shape_cast %302 : vector<8x1xf32> to vector<8x1xf32>
    %304 = vector.broadcast %303 : vector<8x1xf32> to vector<8x8xf32>
    %c4_319 = arith.constant 4 : index
    %c0_320 = arith.constant 0 : index
    %c0_321 = arith.constant 0 : index
    %305 = vector.load %arg17[%c4_319, %c0_320, %c0_321] : memref<9x8x8xf32, #tpu.memory_space<vmem>>, vector<1x8x8xf32>
    %306 = vector.shape_cast %305 : vector<1x8x8xf32> to vector<8x8xf32>
    %cst_322 = arith.constant dense<0.000000e+00> : vector<8x8xf32>
    %307 = tpu.matmul %301, %306, %cst_322 {dimension_numbers = #tpu.dot_dimension_numbers<[1], [0], [0], [1], [0, 0, 1, 1], [], []>} : vector<8x8xf32>, vector<8x8xf32>, vector<8x8xf32> -> vector<8x8xf32>
    %c0_323 = arith.constant 0 : index
    %c32_324 = arith.constant 32 : index
    %308 = vector.load %arg3[%c0_323, %c32_324] : memref<8x72xf32, #tpu.memory_space<vmem>>, vector<8x8xf32>
    %cst_325 = arith.constant dense<0.000000e+00> : vector<8x8xf32>
    %309 = tpu.matmul %308, %307, %cst_325 {dimension_numbers = #tpu.dot_dimension_numbers<[1], [0], [0], [1], [0, 0, 1, 1], [], []>} : vector<8x8xf32>, vector<8x8xf32>, vector<8x8xf32> -> vector<8x8xf32>
    %310 = arith.addf %304, %309 : vector<8x8xf32>
    %c5_326 = arith.constant 5 : index
    %c0_327 = arith.constant 0 : index
    %c0_328 = arith.constant 0 : index
    %311 = vector.load %arg17[%c5_326, %c0_327, %c0_328] : memref<9x8x8xf32, #tpu.memory_space<vmem>>, vector<1x8x8xf32>
    %312 = vector.shape_cast %311 : vector<1x8x8xf32> to vector<8x8xf32>
    %cst_329 = arith.constant dense<0.000000e+00> : vector<8x8xf32>
    %313 = tpu.matmul %301, %312, %cst_329 {dimension_numbers = #tpu.dot_dimension_numbers<[1], [0], [0], [1], [0, 0, 1, 1], [], []>} : vector<8x8xf32>, vector<8x8xf32>, vector<8x8xf32> -> vector<8x8xf32>
    %c0_330 = arith.constant 0 : index
    %c40_331 = arith.constant 40 : index
    %314 = vector.load %arg3[%c0_330, %c40_331] : memref<8x72xf32, #tpu.memory_space<vmem>>, vector<8x8xf32>
    %cst_332 = arith.constant dense<0.000000e+00> : vector<8x8xf32>
    %315 = tpu.matmul %314, %313, %cst_332 {dimension_numbers = #tpu.dot_dimension_numbers<[1], [0], [0], [1], [0, 0, 1, 1], [], []>} : vector<8x8xf32>, vector<8x8xf32>, vector<8x8xf32> -> vector<8x8xf32>
    %316 = arith.addf %310, %315 : vector<8x8xf32>
    %c7_333 = arith.constant 7 : index
    %c0_334 = arith.constant 0 : index
    %c0_335 = arith.constant 0 : index
    %317 = vector.load %arg17[%c7_333, %c0_334, %c0_335] : memref<9x8x8xf32, #tpu.memory_space<vmem>>, vector<1x8x8xf32>
    %318 = vector.shape_cast %317 : vector<1x8x8xf32> to vector<8x8xf32>
    %cst_336 = arith.constant dense<0.000000e+00> : vector<8x8xf32>
    %319 = tpu.matmul %301, %318, %cst_336 {dimension_numbers = #tpu.dot_dimension_numbers<[1], [0], [0], [1], [0, 0, 1, 1], [], []>} : vector<8x8xf32>, vector<8x8xf32>, vector<8x8xf32> -> vector<8x8xf32>
    %c0_337 = arith.constant 0 : index
    %c56_338 = arith.constant 56 : index
    %320 = vector.load %arg3[%c0_337, %c56_338] : memref<8x72xf32, #tpu.memory_space<vmem>>, vector<8x8xf32>
    %cst_339 = arith.constant dense<0.000000e+00> : vector<8x8xf32>
    %321 = tpu.matmul %320, %319, %cst_339 {dimension_numbers = #tpu.dot_dimension_numbers<[1], [0], [0], [1], [0, 0, 1, 1], [], []>} : vector<8x8xf32>, vector<8x8xf32>, vector<8x8xf32> -> vector<8x8xf32>
    %322 = arith.addf %316, %321 : vector<8x8xf32>
    %c8_340 = arith.constant 8 : index
    %c0_341 = arith.constant 0 : index
    %c0_342 = arith.constant 0 : index
    %323 = vector.load %arg17[%c8_340, %c0_341, %c0_342] : memref<9x8x8xf32, #tpu.memory_space<vmem>>, vector<1x8x8xf32>
    %324 = vector.shape_cast %323 : vector<1x8x8xf32> to vector<8x8xf32>
    %cst_343 = arith.constant dense<0.000000e+00> : vector<8x8xf32>
    %325 = tpu.matmul %301, %324, %cst_343 {dimension_numbers = #tpu.dot_dimension_numbers<[1], [0], [0], [1], [0, 0, 1, 1], [], []>} : vector<8x8xf32>, vector<8x8xf32>, vector<8x8xf32> -> vector<8x8xf32>
    %c0_344 = arith.constant 0 : index
    %c64_345 = arith.constant 64 : index
    %326 = vector.load %arg3[%c0_344, %c64_345] : memref<8x72xf32, #tpu.memory_space<vmem>>, vector<8x8xf32>
    %cst_346 = arith.constant dense<0.000000e+00> : vector<8x8xf32>
    %327 = tpu.matmul %326, %325, %cst_346 {dimension_numbers = #tpu.dot_dimension_numbers<[1], [0], [0], [1], [0, 0, 1, 1], [], []>} : vector<8x8xf32>, vector<8x8xf32>, vector<8x8xf32> -> vector<8x8xf32>
    %328 = arith.addf %322, %327 : vector<8x8xf32>
    %cst_347 = arith.constant 0.000000e+00 : f32
    %329 = vector.broadcast %cst_347 : f32 to vector<8x8xf32>
    %330 = arith.maximumf %328, %329 : vector<8x8xf32>
    %c0_348 = arith.constant 0 : index
    %c0_349 = arith.constant 0 : index
    %331 = vector.load %arg11[%c0_348, %c0_349] : memref<8x1xf32, #tpu.memory_space<vmem>>, vector<8x1xf32>
    %332 = vector.shape_cast %331 : vector<8x1xf32> to vector<8x1xf32>
    %333 = vector.broadcast %332 : vector<8x1xf32> to vector<8x8xf32>
    %c4_350 = arith.constant 4 : index
    %c0_351 = arith.constant 0 : index
    %c0_352 = arith.constant 0 : index
    %334 = vector.load %arg20[%c4_350, %c0_351, %c0_352] : memref<9x8x8xf32, #tpu.memory_space<vmem>>, vector<1x8x8xf32>
    %335 = vector.shape_cast %334 : vector<1x8x8xf32> to vector<8x8xf32>
    %cst_353 = arith.constant dense<0.000000e+00> : vector<8x8xf32>
    %336 = tpu.matmul %330, %335, %cst_353 {dimension_numbers = #tpu.dot_dimension_numbers<[1], [0], [0], [1], [0, 0, 1, 1], [], []>} : vector<8x8xf32>, vector<8x8xf32>, vector<8x8xf32> -> vector<8x8xf32>
    %c0_354 = arith.constant 0 : index
    %c32_355 = arith.constant 32 : index
    %337 = vector.load %arg4[%c0_354, %c32_355] : memref<8x72xf32, #tpu.memory_space<vmem>>, vector<8x8xf32>
    %cst_356 = arith.constant dense<0.000000e+00> : vector<8x8xf32>
    %338 = tpu.matmul %337, %336, %cst_356 {dimension_numbers = #tpu.dot_dimension_numbers<[1], [0], [0], [1], [0, 0, 1, 1], [], []>} : vector<8x8xf32>, vector<8x8xf32>, vector<8x8xf32> -> vector<8x8xf32>
    %339 = arith.addf %333, %338 : vector<8x8xf32>
    %cst_357 = arith.constant 0.000000e+00 : f32
    %340 = vector.broadcast %cst_357 : f32 to vector<8x8xf32>
    %341 = arith.maximumf %339, %340 : vector<8x8xf32>
    %c0_358 = arith.constant 0 : index
    %c0_359 = arith.constant 0 : index
    %342 = vector.load %arg14[%c0_358, %c0_359] : memref<3x1xf32, #tpu.memory_space<vmem>>, vector<3x1xf32>
    %343 = vector.shape_cast %342 : vector<3x1xf32> to vector<3x1xf32>
    %344 = vector.broadcast %343 : vector<3x1xf32> to vector<3x128xf32>
    %c0_360 = arith.constant 0 : index
    %c0_361 = arith.constant 0 : index
    %c0_362 = arith.constant 0 : index
    %345 = vector.load %arg21[%c0_360, %c0_361, %c0_362] : memref<9x8x128xf32, #tpu.memory_space<vmem>>, vector<1x8x128xf32>
    %346 = vector.shape_cast %345 : vector<1x8x128xf32> to vector<8x128xf32>
    %cst_363 = arith.constant dense<0.000000e+00> : vector<8x128xf32>
    %347 = tpu.matmul %341, %346, %cst_363 {dimension_numbers = #tpu.dot_dimension_numbers<[1], [0], [0], [1], [0, 0, 1, 1], [], []>} : vector<8x8xf32>, vector<8x128xf32>, vector<8x128xf32> -> vector<8x128xf32>
    %c0_364 = arith.constant 0 : index
    %c0_365 = arith.constant 0 : index
    %348 = vector.load %arg7[%c0_364, %c0_365] : memref<3x72xf32, #tpu.memory_space<vmem>>, vector<3x8xf32>
    %cst_366 = arith.constant dense<0.000000e+00> : vector<3x128xf32>
    %349 = tpu.matmul %348, %347, %cst_366 {dimension_numbers = #tpu.dot_dimension_numbers<[1], [0], [0], [1], [0, 0, 1, 1], [], []>} : vector<3x8xf32>, vector<8x128xf32>, vector<3x128xf32> -> vector<3x128xf32>
    %350 = arith.addf %344, %349 : vector<3x128xf32>
    %c1_367 = arith.constant 1 : index
    %c0_368 = arith.constant 0 : index
    %c0_369 = arith.constant 0 : index
    %351 = vector.load %arg21[%c1_367, %c0_368, %c0_369] : memref<9x8x128xf32, #tpu.memory_space<vmem>>, vector<1x8x128xf32>
    %352 = vector.shape_cast %351 : vector<1x8x128xf32> to vector<8x128xf32>
    %cst_370 = arith.constant dense<0.000000e+00> : vector<8x128xf32>
    %353 = tpu.matmul %341, %352, %cst_370 {dimension_numbers = #tpu.dot_dimension_numbers<[1], [0], [0], [1], [0, 0, 1, 1], [], []>} : vector<8x8xf32>, vector<8x128xf32>, vector<8x128xf32> -> vector<8x128xf32>
    %c0_371 = arith.constant 0 : index
    %c8_372 = arith.constant 8 : index
    %354 = vector.load %arg7[%c0_371, %c8_372] : memref<3x72xf32, #tpu.memory_space<vmem>>, vector<3x8xf32>
    %cst_373 = arith.constant dense<0.000000e+00> : vector<3x128xf32>
    %355 = tpu.matmul %354, %353, %cst_373 {dimension_numbers = #tpu.dot_dimension_numbers<[1], [0], [0], [1], [0, 0, 1, 1], [], []>} : vector<3x8xf32>, vector<8x128xf32>, vector<3x128xf32> -> vector<3x128xf32>
    %356 = arith.addf %350, %355 : vector<3x128xf32>
    %c3_374 = arith.constant 3 : index
    %c0_375 = arith.constant 0 : index
    %c0_376 = arith.constant 0 : index
    %357 = vector.load %arg21[%c3_374, %c0_375, %c0_376] : memref<9x8x128xf32, #tpu.memory_space<vmem>>, vector<1x8x128xf32>
    %358 = vector.shape_cast %357 : vector<1x8x128xf32> to vector<8x128xf32>
    %cst_377 = arith.constant dense<0.000000e+00> : vector<8x128xf32>
    %359 = tpu.matmul %341, %358, %cst_377 {dimension_numbers = #tpu.dot_dimension_numbers<[1], [0], [0], [1], [0, 0, 1, 1], [], []>} : vector<8x8xf32>, vector<8x128xf32>, vector<8x128xf32> -> vector<8x128xf32>
    %c0_378 = arith.constant 0 : index
    %c24_379 = arith.constant 24 : index
    %360 = vector.load %arg7[%c0_378, %c24_379] : memref<3x72xf32, #tpu.memory_space<vmem>>, vector<3x8xf32>
    %cst_380 = arith.constant dense<0.000000e+00> : vector<3x128xf32>
    %361 = tpu.matmul %360, %359, %cst_380 {dimension_numbers = #tpu.dot_dimension_numbers<[1], [0], [0], [1], [0, 0, 1, 1], [], []>} : vector<3x8xf32>, vector<8x128xf32>, vector<3x128xf32> -> vector<3x128xf32>
    %362 = arith.addf %356, %361 : vector<3x128xf32>
    %c4_381 = arith.constant 4 : index
    %c0_382 = arith.constant 0 : index
    %c0_383 = arith.constant 0 : index
    %363 = vector.load %arg21[%c4_381, %c0_382, %c0_383] : memref<9x8x128xf32, #tpu.memory_space<vmem>>, vector<1x8x128xf32>
    %364 = vector.shape_cast %363 : vector<1x8x128xf32> to vector<8x128xf32>
    %cst_384 = arith.constant dense<0.000000e+00> : vector<8x128xf32>
    %365 = tpu.matmul %341, %364, %cst_384 {dimension_numbers = #tpu.dot_dimension_numbers<[1], [0], [0], [1], [0, 0, 1, 1], [], []>} : vector<8x8xf32>, vector<8x128xf32>, vector<8x128xf32> -> vector<8x128xf32>
    %c0_385 = arith.constant 0 : index
    %c32_386 = arith.constant 32 : index
    %366 = vector.load %arg7[%c0_385, %c32_386] : memref<3x72xf32, #tpu.memory_space<vmem>>, vector<3x8xf32>
    %cst_387 = arith.constant dense<0.000000e+00> : vector<3x128xf32>
    %367 = tpu.matmul %366, %365, %cst_387 {dimension_numbers = #tpu.dot_dimension_numbers<[1], [0], [0], [1], [0, 0, 1, 1], [], []>} : vector<3x8xf32>, vector<8x128xf32>, vector<3x128xf32> -> vector<3x128xf32>
    %368 = arith.addf %362, %367 : vector<3x128xf32>
    %cst_388 = arith.constant 0.000000e+00 : f32
    %369 = vector.broadcast %cst_388 : f32 to vector<3x128xf32>
    %370 = arith.maximumf %368, %369 : vector<3x128xf32>
    %c0_389 = arith.constant 0 : index
    %c0_390 = arith.constant 0 : index
    %371 = vector.load %arg22[%c0_389, %c0_390] : memref<3x128xf32, #tpu.memory_space<vmem>>, vector<3x128xf32>
    tpu.vector_store %arg22[%c0_389, %c0_390], %370 {strides = array<i32>} : memref<3x128xf32, #tpu.memory_space<vmem>>, vector<3x128xf32>,
    return
  }
}

</mosaic_0001>

<bundles_post_ra>
// kernel: forward.3
= control target key start
LH: loop header
LB: loop body
LE: loop exit
PB: predicated region body
PF: predicated region fallthrough
CT: control target
= control target key end

     0   :  { %vm57_vm0 = vcmask 1040384   ;;  %vm786_vm1 = vmmov 1   ;;  %v787_v3 = vmov 0.0   ;;  %v788_v8 = vmov 0   ;;  %s1021_s1 = inlined_call_operand.vmem [shape: f32[9,2048], index: 1, kind: input, shape index: {}]   ;;  %s1022_s0 = inlined_call_operand.vmem [shape: f32[8,9], index: 0, kind: input, shape index: {}]   ;;  %s1023_s2 = inlined_call_operand.vmem [shape: f32[8,1], index: 2, kind: input, shape index: {}]   ;;  %s1024_s3 = inlined_call_operand.vmem [shape: f32[8,2048], index: 3, kind: output, shape index: {}]  }
   0x1   :  { %v16_v0 = vld [vmem:[%s1021_s1 + $0x8] sm:$0xff]  ;;  %vm815_vm2 = vmpackc.low %vm57_vm0, %vm786_vm1  ;;  %170 = vmatprep.mubr.f32.mxu0 %v787_v3  ;;  %241 = vmatprep.mubr.f32.mxu1 %v787_v3  ;;  %v18_v5 = vld [vmem:[%s1021_s1 + $0x18] sm:$0xff]  ;;  %vm53_vm3 = vcmask 72704  }
   0x2   :  { %v32_v1 = vld [vmem:[%s1021_s1 + $0x88] sm:$0x1]  ;;  %v34_v6 = vld [vmem:[%s1021_s1 + $0x98] sm:$0x1]  ;;  %v15_v7 = vld [vmem:[%s1021_s1] sm:$0xff]  ;;  %785 = vset.pattern.permute.xlu0 %v788_v8 }
   0x3   :  { %v734_v4 = vpack.c.bf16 %v32_v1, %v16_v0  ;;  %v740_v9 = vpack.c.bf16 %v34_v6, %v18_v5  ;;  %v31_v10 = vld [vmem:[%s1021_s1 + $0x80] sm:$0x1]  ;;  %v17_v11 = vld [vmem:[%s1021_s1 + $0x10] sm:$0xff]  ;;  %v20_v16 = vld [vmem:[%s1021_s1 + $0x28] sm:$0xff] }
   0x4   :  { %v33_v12 = vld [vmem:[%s1021_s1 + $0x90] sm:$0x1]  ;;  %v737_v13 = vpack.c.bf16 %v31_v10, %v15_v7  ;;  %v844_v15 = vld [vmem:[%s1022_s0] sm:$0xff]  ;;  %v36_v17 = vld [vmem:[%s1021_s1 + $0xa8] sm:$0x1] }
   0x5   :  { %736 = vmatprep.subr.msk.bf16.mxu0 %vm815_vm2, %v734_v4  ;;  %v743_v14 = vpack.c.bf16 %v33_v12, %v17_v11  ;;  %742 = vmatprep.subr.msk.bf16.mxu1 %vm815_vm2, %v740_v9  ;;  %v746_v18 = vpack.c.bf16 %v36_v17, %v20_v16  ;;  %v22_v19 = vld [vmem:[%s1021_s1 + $0x38] sm:$0xff]  ;;  %v19_v21 = vld [vmem:[%s1021_s1 + $0x20] sm:$0xff]  ;;  %v21_v24 = vld [vmem:[%s1021_s1 + $0x30] sm:$0xff] }
   0x6   :  { %v38_v20 = vld [vmem:[%s1021_s1 + $0xb8] sm:$0x1]  ;;  %739 = vmatpush1.bf16.msk.msra.mxu0 %vm815_vm2, %v737_v13  ;;  %v35_v23 = vld [vmem:[%s1021_s1 + $0xa0] sm:$0x1]  ;;  %v37_v25 = vld [vmem:[%s1021_s1 + $0xb0] sm:$0x1] }
   0x7   :  { %745 = vmatpush1.bf16.msk.msra.mxu1 %vm815_vm2, %v743_v14  ;;  %v752_v22 = vpack.c.bf16 %v38_v20, %v22_v19  ;;  %748 = vmatprep.subr.msk.bf16.mxu0 %vm815_vm2, %v746_v18  ;;  %v749_v26 = vpack.c.bf16 %v35_v23, %v19_v21  ;;  %v755_v27 = vpack.c.bf16 %v37_v25, %v21_v24  ;;  %v24_v28 = vld [vmem:[%s1021_s1 + $0x48] sm:$0xff]  ;;  %v26_v30 = vld [vmem:[%s1021_s1 + $0x58] sm:$0xff]  ;;  %v23_v33 = vld [vmem:[%s1021_s1 + $0x40] sm:$0xff] }
   0x8   :  { %v40_v29 = vld [vmem:[%s1021_s1 + $0xc8] sm:$0x1]  ;;  %v42_v32 = vld [vmem:[%s1021_s1 + $0xd8] sm:$0x1]  ;;  %v39_v34 = vld [vmem:[%s1021_s1 + $0xc0] sm:$0x1] }
   0x9   :  { %754 = vmatprep.subr.msk.bf16.mxu1 %vm815_vm2, %v752_v22  ;;  %v758_v31 = vpack.c.bf16 %v40_v29, %v24_v28  ;;  %712 = vmatmul.mubr.msk.f32.vlgmr.msra.gmra.mrb[0].mxu0 %vm53_vm3, %v844_v15  ;;  %v764_v35 = vpack.c.bf16 %v42_v32, %v26_v30  ;;  %v25_v36 = vld [vmem:[%s1021_s1 + $0x50] sm:$0xff]  ;;  %v28_v38 = vld [vmem:[%s1021_s1 + $0x68] sm:$0xff]  ;;  %v761_v39 = vpack.c.bf16 %v39_v34, %v23_v33  ;;  %v30_v42 = vld [vmem:[%s1021_s1 + $0x78] sm:$0xff] }
   0xa   :  { %715 = vmatmul.mubr.msk.f32.vlgmr.msra.gmra.mrb[0].mxu1 %vm53_vm3, %v844_v15  ;;  %v41_v37 = vld [vmem:[%s1021_s1 + $0xd0] sm:$0x1]  ;;  %751 = vmatpush1.bf16.msk.msra.mxu0 %vm815_vm2, %v749_v26  ;;  %v44_v41 = vld [vmem:[%s1021_s1 + $0xe8] sm:$0x1]  ;;  %v46_v43 = vld [vmem:[%s1021_s1 + $0xf8] sm:$0x1] }
   0xb   :  { %757 = vmatpush1.bf16.msk.msra.mxu1 %vm815_vm2, %v755_v27  ;;  %v767_v40 = vpack.c.bf16 %v41_v37, %v25_v36  ;;  %312 = vmatprep.mubr.f32.mxu0 %v787_v3  ;;  %v27_v44 = vld [vmem:[%s1021_s1 + $0x60] sm:$0xff]  ;;  %v29_v46 = vld [vmem:[%s1021_s1 + $0x70] sm:$0xff]  ;;  %v770_v47 = vpack.c.bf16 %v44_v41, %v28_v38  ;;  %v776_v48 = vpack.c.bf16 %v46_v43, %v30_v42 }
   0xc   :  { %383 = vmatprep.mubr.f32.mxu1 %v787_v3  ;;  %v43_v45 = vld [vmem:[%s1021_s1 + $0xe0] sm:$0x1]  ;;  %760 = vmatprep.subr.msk.bf16.mxu0 %vm815_vm2, %v758_v31  ;;  %v45_v49 = vld [vmem:[%s1021_s1 + $0xf0] sm:$0x1] }
   0xd   :  { %766 = vmatprep.subr.msk.bf16.mxu1 %vm815_vm2, %v764_v35  ;;  %718 = vmatmul.mubr.msk.f32.vlgmr.msra.gmra.mrb[2].mxu0 %vm53_vm3, %v844_v15  ;;  %v773_v50 = vpack.c.bf16 %v43_v45, %v27_v44  ;;  %v779_v51 = vpack.c.bf16 %v45_v49, %v29_v46  ;;  %v47_v52 = vld [vmem:[%s1023_s2] sm:$0xff] }
   0xe   :  { %721 = vmatmul.mubr.msk.f32.vlgmr.msra.gmra.mrb[2].mxu1 %vm53_vm3, %v844_v15  ;;  %763 = vmatpush1.bf16.msk.msra.mxu0 %vm815_vm2, %v761_v39 }
   0xf   :  { %769 = vmatpush1.bf16.msk.msra.mxu1 %vm815_vm2, %v767_v40  ;;  %454 = vmatprep.mubr.f32.mxu0 %v787_v3 }
  0x10   :  { %525 = vmatprep.mubr.f32.mxu1 %v787_v3  ;;  %772 = vmatprep.subr.msk.bf16.mxu0 %vm815_vm2, %v770_v47 }
  0x11   :  { %778 = vmatprep.subr.msk.bf16.mxu1 %vm815_vm2, %v776_v48  ;;  %724 = vmatmul.mubr.msk.f32.vlgmr.msra.gmra.mrb[4].mxu0 %vm53_vm3, %v844_v15 }
  0x12   :  { %727 = vmatmul.mubr.msk.f32.vlgmr.msra.gmra.mrb[4].mxu1 %vm53_vm3, %v844_v15  ;;  %775 = vmatpush1.bf16.msk.msra.mxu0 %vm815_vm2, %v773_v50 }
  0x13   :  { %781 = vmatpush1.bf16.msk.msra.mxu1 %vm815_vm2, %v779_v51  ;;  %596 = vmatprep.mubr.f32.mxu0 %v787_v3 }
  0x14   :  { %667 = vmatprep.mubr.f32.mxu1 %v787_v3  ;;  %50 = vperm.xlu0 %785, %v47_v52  }
  0x15   :  { %730 = vmatmul.mubr.msk.f32.vlgmr.msra.gmra.mrb[6].mxu0 %vm53_vm3, %v844_v15 }
  0x16   :  { %733 = vmatmul.mubr.msk.f32.vlgmr.msra.gmra.mrb[6].mxu1 %vm53_vm3, %v844_v15 }
  0x93   :  { %v51_v53 = vpop.permute.xlu0 %50 }
  0xdc   :  { %v172_v54 = vpop.f32.mrb[0].mxu0 }
  0xdd   :  { %v243_v55 = vpop.f32.mrb[0].mxu1  ;;  %v173_v56 = vadd.f32 %v172_v54, %v51_v53  ;;  %v174_v58 = vpop.f32.mrb[1].mxu0 }
  0xde   :  { %v244_v57 = vadd.f32 %v243_v55, %v51_v53  ;;  %v245_v59 = vpop.f32.mrb[1].mxu1  ;;  %v175_v60 = vadd.f32 %v174_v58, %v51_v53 }
  0xdf   :  { %v246_v61 = vadd.f32 %v245_v59, %v51_v53  ;;  %v674_v62 = vmax.f32 %v173_v56, 0.0 }
  0xe0   :  { %v676_v63 = vmax.f32 %v244_v57, 0.0  ;;  %v675_v0 = vmax.f32 %v175_v60, 0.0  ;;  %v314_v2 = vpop.f32.mrb[2].mxu0 }
  0xe1   :  { %v677_v1 = vmax.f32 %v246_v61, 0.0  ;;  %v385_v3 = vpop.f32.mrb[2].mxu1  ;;  %690 = vst [vmem:[%s1024_s3] sm:$0xff] %v674_v62  ;;  %v315_v4 = vadd.f32 %v314_v2, %v51_v53  ;;  %v316_v6 = vpop.f32.mrb[3].mxu0 }
  0xe2   :  { %692 = vst [vmem:[%s1024_s3 + $0x10] sm:$0xff] %v676_v63  ;;  %v386_v5 = vadd.f32 %v385_v3, %v51_v53  ;;  %v387_v7 = vpop.f32.mrb[3].mxu1  ;;  %691 = vst [vmem:[%s1024_s3 + $0x8] sm:$0xff] %v675_v0  ;;  %v317_v8 = vadd.f32 %v316_v6, %v51_v53 }
  0xe3   :  { %693 = vst [vmem:[%s1024_s3 + $0x18] sm:$0xff] %v677_v1  ;;  %v388_v9 = vadd.f32 %v387_v7, %v51_v53  ;;  %v678_v10 = vmax.f32 %v315_v4, 0.0 }
  0xe4   :  { %v680_v11 = vmax.f32 %v386_v5, 0.0  ;;  %v679_v12 = vmax.f32 %v317_v8, 0.0  ;;  %v456_v14 = vpop.f32.mrb[4].mxu0 }
  0xe5   :  { %v681_v13 = vmax.f32 %v388_v9, 0.0  ;;  %v527_v15 = vpop.f32.mrb[4].mxu1  ;;  %694 = vst [vmem:[%s1024_s3 + $0x20] sm:$0xff] %v678_v10  ;;  %v457_v16 = vadd.f32 %v456_v14, %v51_v53  ;;  %v458_v18 = vpop.f32.mrb[5].mxu0 }
  0xe6   :  { %696 = vst [vmem:[%s1024_s3 + $0x30] sm:$0xff] %v680_v11  ;;  %v528_v17 = vadd.f32 %v527_v15, %v51_v53  ;;  %v529_v19 = vpop.f32.mrb[5].mxu1  ;;  %695 = vst [vmem:[%s1024_s3 + $0x28] sm:$0xff] %v679_v12  ;;  %v459_v20 = vadd.f32 %v458_v18, %v51_v53 }
  0xe7   :  { %697 = vst [vmem:[%s1024_s3 + $0x38] sm:$0xff] %v681_v13  ;;  %v530_v21 = vadd.f32 %v529_v19, %v51_v53  ;;  %v682_v22 = vmax.f32 %v457_v16, 0.0 }
  0xe8   :  { %v684_v23 = vmax.f32 %v528_v17, 0.0  ;;  %v683_v24 = vmax.f32 %v459_v20, 0.0  ;;  %v598_v26 = vpop.f32.mrb[6].mxu0 }
  0xe9   :  { %v685_v25 = vmax.f32 %v530_v21, 0.0  ;;  %v669_v27 = vpop.f32.mrb[6].mxu1  ;;  %698 = vst [vmem:[%s1024_s3 + $0x40] sm:$0xff] %v682_v22  ;;  %v599_v28 = vadd.f32 %v598_v26, %v51_v53  ;;  %v600_v30 = vpop.f32.mrb[7].mxu0 }
  0xea   :  { %700 = vst [vmem:[%s1024_s3 + $0x50] sm:$0xff] %v684_v23  ;;  %v670_v29 = vadd.f32 %v669_v27, %v51_v53  ;;  %v671_v31 = vpop.f32.mrb[7].mxu1  ;;  %699 = vst [vmem:[%s1024_s3 + $0x48] sm:$0xff] %v683_v24  ;;  %v601_v32 = vadd.f32 %v600_v30, %v51_v53 }
  0xeb   :  { %701 = vst [vmem:[%s1024_s3 + $0x58] sm:$0xff] %v685_v25  ;;  %v672_v33 = vadd.f32 %v671_v31, %v51_v53  ;;  %v686_v34 = vmax.f32 %v599_v28, 0.0 }
  0xec   :  { %v688_v35 = vmax.f32 %v670_v29, 0.0  ;;  %v687_v36 = vmax.f32 %v601_v32, 0.0 }
  0xed   :  { %v689_v37 = vmax.f32 %v672_v33, 0.0  ;;  %702 = vst [vmem:[%s1024_s3 + $0x60] sm:$0xff] %v686_v34 }
  0xee   :  { %704 = vst [vmem:[%s1024_s3 + $0x70] sm:$0xff] %v688_v35  ;;  %703 = vst [vmem:[%s1024_s3 + $0x68] sm:$0xff] %v687_v36 }
  0xef   :  { %705 = vst [vmem:[%s1024_s3 + $0x78] sm:$0xff] %v689_v37 }

// kernel: forward.4
= control target key start
LH: loop header
LB: loop body
LE: loop exit
PB: predicated region body
PF: predicated region fallthrough
CT: control target
= control target key end

     0   :  { %v252_v3 = vmov 0.0   ;;  %v253_v8 = vmov 0   ;;  %vm57_vm0 = vcmask 588800   ;;  %s400_s1 = inlined_call_operand.vmem [shape: f32[72,512], index: 1, kind: input, shape index: {}]   ;;  %s401_s2 = inlined_call_operand.vmem [shape: f32[8,1], index: 2, kind: input, shape index: {}]   ;;  %s402_s0 = inlined_call_operand.vmem [shape: f32[8,72], index: 0, kind: input, shape index: {}]   ;;  %s403_s3 = inlined_call_operand.vmem [shape: f32[8,512], index: 3, kind: output, shape index: {}]  }
   0x1   :  { %v16_v0 = vld [vmem:[%s400_s1 + $0x8] sm:$0xff]  ;;  %v18_v2 = vld [vmem:[%s400_s1 + $0x18] sm:$0xff]  ;;  %125 = vmatprep.mubr.f32.mxu0 %v252_v3  ;;  %196 = vmatprep.mubr.f32.mxu1 %v252_v3  ;;  %v15_v6 = vld [vmem:[%s400_s1] sm:$0xff] }
   0x2   :  { %v20_v1 = vld [vmem:[%s400_s1 + $0x28] sm:$0xff]  ;;  %v22_v5 = vld [vmem:[%s400_s1 + $0x38] sm:$0xff]  ;;  %v19_v7 = vld [vmem:[%s400_s1 + $0x20] sm:$0xff]  ;;  %251 = vset.pattern.permute.xlu0 %v253_v8 }
   0x3   :  { %v217_v4 = vpack.c.bf16 %v20_v1, %v16_v0  ;;  %v233_v9 = vpack.c.bf16 %v22_v5, %v18_v2  ;;  %v219_v10 = vpack.c.bf16 %v19_v7, %v15_v6  ;;  %v17_v11 = vld [vmem:[%s400_s1 + $0x10] sm:$0xff]  ;;  %v24_v13 = vld [vmem:[%s400_s1 + $0x48] sm:$0xff]  ;;  %v26_v16 = vld [vmem:[%s400_s1 + $0x58] sm:$0xff] }
   0x4   :  { %v21_v12 = vld [vmem:[%s400_s1 + $0x30] sm:$0xff]  ;;  %v28_v15 = vld [vmem:[%s400_s1 + $0x68] sm:$0xff]  ;;  %v30_v17 = vld [vmem:[%s400_s1 + $0x78] sm:$0xff] }
   0x5   :  { %218 = vmatprep.subr.bf16.mxu0 %v217_v4  ;;  %v235_v14 = vpack.c.bf16 %v21_v12, %v17_v11  ;;  %234 = vmatprep.subr.bf16.mxu1 %v233_v9  ;;  %v221_v18 = vpack.c.bf16 %v28_v15, %v24_v13  ;;  %v237_v19 = vpack.c.bf16 %v30_v17, %v26_v16  ;;  %v23_v20 = vld [vmem:[%s400_s1 + $0x40] sm:$0xff]  ;;  %v25_v22 = vld [vmem:[%s400_s1 + $0x50] sm:$0xff]  ;;  %v32_v25 = vld [vmem:[%s400_s1 + $0x88] sm:$0xff] }
   0x6   :  { %220 = vmatpush1.bf16.msra.mxu0 %v219_v10  ;;  %v27_v21 = vld [vmem:[%s400_s1 + $0x60] sm:$0xff]  ;;  %v29_v24 = vld [vmem:[%s400_s1 + $0x70] sm:$0xff]  ;;  %v36_v26 = vld [vmem:[%s400_s1 + $0xa8] sm:$0xff] }
   0x7   :  { %236 = vmatpush1.bf16.msra.mxu1 %v235_v14  ;;  %v223_v23 = vpack.c.bf16 %v27_v21, %v23_v20  ;;  %222 = vmatprep.subr.bf16.mxu0 %v221_v18  ;;  %v239_v27 = vpack.c.bf16 %v29_v24, %v25_v22  ;;  %v225_v28 = vpack.c.bf16 %v36_v26, %v32_v25  ;;  %v34_v29 = vld [vmem:[%s400_s1 + $0x98] sm:$0xff]  ;;  %v31_v31 = vld [vmem:[%s400_s1 + $0x80] sm:$0xff]  ;;  %v33_v34 = vld [vmem:[%s400_s1 + $0x90] sm:$0xff] }
   0x8   :  { %238 = vmatprep.subr.bf16.mxu1 %v237_v19  ;;  %v38_v30 = vld [vmem:[%s400_s1 + $0xb8] sm:$0xff]  ;;  %v35_v33 = vld [vmem:[%s400_s1 + $0xa0] sm:$0xff]  ;;  %v37_v35 = vld [vmem:[%s400_s1 + $0xb0] sm:$0xff] }
   0x9   :  { %v241_v32 = vpack.c.bf16 %v38_v30, %v34_v29  ;;  %v227_v36 = vpack.c.bf16 %v35_v33, %v31_v31  ;;  %v40_v37 = vld [vmem:[%s400_s1 + $0xc8] sm:$0xff]  ;;  %v42_v39 = vld [vmem:[%s400_s1 + $0xd8] sm:$0xff]  ;;  %v243_v40 = vpack.c.bf16 %v37_v35, %v33_v34  ;;  %v39_v43 = vld [vmem:[%s400_s1 + $0xc0] sm:$0xff] }
   0xa   :  { %224 = vmatpush1.bf16.msra.mxu0 %v223_v23  ;;  %v44_v38 = vld [vmem:[%s400_s1 + $0xe8] sm:$0xff]  ;;  %v46_v42 = vld [vmem:[%s400_s1 + $0xf8] sm:$0xff]  ;;  %v43_v44 = vld [vmem:[%s400_s1 + $0xe0] sm:$0xff] }
   0xb   :  { %240 = vmatpush1.bf16.msra.mxu1 %v239_v27  ;;  %226 = vmatprep.subr.bf16.mxu0 %v225_v28  ;;  %v229_v41 = vpack.c.bf16 %v44_v38, %v40_v37  ;;  %v245_v45 = vpack.c.bf16 %v46_v42, %v42_v39  ;;  %v41_v46 = vld [vmem:[%s400_s1 + $0xd0] sm:$0xff]  ;;  %v231_v48 = vpack.c.bf16 %v43_v44, %v39_v43  ;;  %v51_v49 = vld [vmem:[%s401_s2] sm:$0xff]  ;;  %v48_v51 = vld [vmem:[%s400_s1 + $0x108] sm:$0xff] }
   0xc   :  { %242 = vmatprep.subr.bf16.mxu1 %v241_v32  ;;  %v45_v47 = vld [vmem:[%s400_s1 + $0xf0] sm:$0xff]  ;;  %54 = vperm.xlu0 %251, %v51_v49   ;;  %v50_v52 = vld [vmem:[%s400_s1 + $0x118] sm:$0xff]  ;;  %v47_v53 = vld [vmem:[%s400_s1 + $0x100] sm:$0xff] }
   0xd   :  { %v247_v50 = vpack.c.bf16 %v45_v47, %v41_v46  ;;  %v49_v54 = vld [vmem:[%s400_s1 + $0x110] sm:$0xff]  ;;  %v14_v55 = vld [vmem:[%s402_s0] sm:$0xff] }
   0xe   :  { %228 = vmatpush1.bf16.msra.mxu0 %v227_v36 }
   0xf   :  { %244 = vmatpush1.bf16.msra.mxu1 %v243_v40  ;;  %230 = vmatprep.subr.bf16.mxu0 %v229_v41 }
  0x10   :  { %246 = vmatprep.subr.bf16.mxu1 %v245_v45 }
  0x12   :  { %232 = vmatpush1.bf16.msra.mxu0 %v231_v48 }
  0x13   :  { %248 = vmatpush1.bf16.msra.mxu1 %v247_v50  ;;  %77 = vmatprep.subr.mxu0 %v48_v51 }
  0x14   :  { %148 = vmatprep.subr.mxu1 %v50_v52 }
  0x16   :  { %78 = vmatpush1.msra.mxu0 %v47_v53 }
  0x17   :  { %149 = vmatpush1.msra.mxu1 %v49_v54  ;;  %215 = vmatmul.mubr.msk.f32.vlgmr.msra.gmra.mrb[0].mxu0 %vm57_vm0, %v14_v55 }
  0x18   :  { %216 = vmatmul.mubr.msk.f32.vlgmr.msra.gmra.mrb[0].mxu1 %vm57_vm0, %v14_v55 }
  0x8b   :  { %v55_v56 = vpop.permute.xlu0 %54 }
  0xea   :  { %v127_v57 = vpop.f32.mrb[0].mxu0 }
  0xeb   :  { %v128_v58 = vadd.f32 %v127_v57, %v55_v56  ;;  %v198_v59 = vpop.f32.mrb[0].mxu1  ;;  %v129_v60 = vpop.f32.mrb[1].mxu0 }
  0xec   :  { %v199_v61 = vadd.f32 %v198_v59, %v55_v56  ;;  %v130_v62 = vadd.f32 %v129_v60, %v55_v56  ;;  %v200_v63 = vpop.f32.mrb[1].mxu1 }
  0xed   :  { %v203_v0 = vmax.f32 %v128_v58, 0.0  ;;  %v201_v1 = vadd.f32 %v200_v63, %v55_v56 }
  0xee   :  { %v205_v2 = vmax.f32 %v199_v61, 0.0  ;;  %v204_v3 = vmax.f32 %v130_v62, 0.0 }
  0xef   :  { %207 = vst [vmem:[%s403_s3] sm:$0xff] %v203_v0  ;;  %v206_v4 = vmax.f32 %v201_v1, 0.0 }
  0xf0   :  { %209 = vst [vmem:[%s403_s3 + $0x10] sm:$0xff] %v205_v2  ;;  %208 = vst [vmem:[%s403_s3 + $0x8] sm:$0xff] %v204_v3 }
  0xf1   :  { %210 = vst [vmem:[%s403_s3 + $0x18] sm:$0xff] %v206_v4 }

// kernel: forward.5
= control target key start
LH: loop header
LB: loop body
LE: loop exit
PB: predicated region body
PF: predicated region fallthrough
CT: control target
= control target key end

     0   :  { %v10174_v0 = vmov 0.0|0.0   ;;  %vm10175_vm0 = vmmov 0   ;;  %v10176_v4 = vmov 0.0   ;;  %v10177_v7 = vmov 0   ;;  %s10178_s24 = smov 120   ;;  %s11805_s30 = smov 64   ;;  %s11775_s0 = inlined_call_operand.vmem [shape: f32[72,128], index: 0, kind: input, shape index: {}]   ;;  %s11776_s8 = inlined_call_operand.vmem [shape: f32[8,1], index: 8, kind: input, shape index: {}]   ;;  %s11777_s2 = inlined_call_operand.vmem [shape: f32[8,72], index: 2, kind: input, shape index: {}]   ;;  %s11778_s1 = inlined_call_operand.vmem [shape: f32[8,72], index: 1, kind: input, shape index: {}]   ;;  %s11779_s3 = inlined_call_operand.vmem [shape: f32[8,72], index: 3, kind: input, shape index: {}]   ;;  %s11780_s10 = inlined_call_operand.vmem [shape: f32[8,1], index: 10, kind: input, shape index: {}]   ;;  %s11781_s4 = inlined_call_operand.vmem [shape: f32[8,72], index: 4, kind: input, shape index: {}]   ;;  %s11782_s5 = inlined_call_operand.vmem [shape: f32[8,72], index: 5, kind: input, shape index: {}]   ;;  %s11783_s6 = inlined_call_operand.vmem [shape: f32[8,72], index: 6, kind: input, shape index: {}]   ;;  %s11784_s15 = inlined_call_operand.vmem [shape: f32[9,128,32], index: 15, kind: input, shape index: {}]   ;;  %s11785_s13 = inlined_call_operand.vmem [shape: f32[8,1], index: 13, kind: input, shape index: {}]   ;;  %s11786_s7 = inlined_call_operand.vmem [shape: f32[3,72], index: 7, kind: input, shape index: {}]   ;;  %s11787_s14 = inlined_call_operand.vmem [shape: f32[3,1], index: 14, kind: input, shape index: {}]   ;;  %s11788_s9 = inlined_call_operand.vmem [shape: f32[8,1], index: 9, kind: input, shape index: {}]   ;;  %s11789_s11 = inlined_call_operand.vmem [shape: f32[8,1], index: 11, kind: input, shape index: {}]   ;;  %s11790_s12 = inlined_call_operand.vmem [shape: f32[8,1], index: 12, kind: input, shape index: {}]   ;;  %s11791_s16 = inlined_call_operand.vmem [shape: f32[9,32,8], index: 16, kind: input, shape index: {}]   ;;  %s11792_s17 = inlined_call_operand.vmem [shape: f32[9,8,8], index: 17, kind: input, shape index: {}]   ;;  %s11793_s18 = inlined_call_operand.vmem [shape: f32[9,8,8], index: 18, kind: input, shape index: {}]   ;;  %s11794_s19 = inlined_call_operand.vmem [shape: f32[9,8,32], index: 19, kind: input, shape index: {}]   ;;  %s11795_s20 = inlined_call_operand.vmem [shape: f32[9,8,8], index: 20, kind: input, shape index: {}]   ;;  %s11796_s21 = inlined_call_operand.vmem [shape: f32[9,8,128], index: 21, kind: input, shape index: {}]   ;;  %s11797_s22 = inlined_call_operand.vmem [shape: f32[3,128], index: 22, kind: output, shape index: {}]  }
   0x1   :  { %11809 = sst [smem:[#allocation2_spill]] %s11775_s0  ;;  %9723 = vmatprep.subr.bf16.mxu0 %v10174_v0  ;;  %8812 = vmatprep.mubr.msk.f32.mxu0 %vm10175_vm0, %v10176_v4  ;;  %vm87_vm1 = vcmask 588800   ;;  %v10388_v22 = vld [vmem:[%s11782_s5] sm:$0xff]  ;;  %v169_v24 = vld [vmem:[%s11784_s15 + $0x8] sm:$0xff]  ;;  %v170_v27 = vld [vmem:[%s11784_s15 + $0x10] sm:$0xff]  ;;  %s11823_s0 = smov 104  }
   0x2   :  { %11810 = sst [smem:[#allocation3_spill]] %s11776_s8  ;;  %s11816_s29 = sld [smem:[#allocation2_spill]]  ;;  %10167 = vset.pattern.permute.xlu0 %v10177_v7  ;;  %9735 = vmatprep.subr.bf16.mxu1 %v10174_v0  ;;  %v168_v23 = vld [vmem:[%s11784_s15] sm:$0xff]  ;;  %v171_v28 = vld [vmem:[%s11784_s15 + $0x18] sm:$0xff]  ;;  %v173_v31 = vld [vmem:[%s11784_s15 + $0x28] sm:$0xff]  ;;  %vm255_vm2 = vcmask 64512  }
   0x3   :  { %11811 = sst [smem:[#allocation4_spill]] %s11777_s2  ;;  %8847 = vmatprep.mubr.msk.f32.mxu1 %vm10175_vm0, %v10176_v4  ;;  %10168 = vset.pattern.permute.xlu1 %v10177_v7  ;;  %s11817_s25 = sld [smem:[#allocation3_spill]]  ;;  %v10403_v25 = vld [vmem:[%s11783_s6] sm:$0xff]  ;;  %v9736_v26 = vpack.c.bf16 %v169_v24, %v168_v23  ;;  %v9739_v29 = vpack.c.bf16 %v171_v28, %v170_v27  ;;  %v174_v33 = vld [vmem:[%s11784_s15 + $0x30] sm:$0xff]  ;;  %v175_v34 = vld [vmem:[%s11784_s15 + $0x38] sm:$0xff]  ;;  %vm1637_vm3 = vcmask 261120  }
   0x4   :  { %11812 = sst [smem:[#allocation5_spill]] %s11778_s1  ;;  %s11801_s2 = smov 80   ;;  %v172_v30 = vld [vmem:[%s11784_s15 + $0x20] sm:$0xff]  ;;  %v9745_v35 = vpack.c.bf16 %v175_v34, %v174_v33  ;;  %v177_v37 = vld [vmem:[%s11784_s15 + $0x48] sm:$0xff]  ;;  %v178_v40 = vld [vmem:[%s11784_s15 + $0x50] sm:$0xff] }
   0x5   :  { %11813 = sst [smem:[#allocation6_spill]] %s11779_s3  ;;  %s11818_s3 = sld [smem:[#allocation4_spill]]  ;;  %9737 = vmatpush3.bf16.msra.mxu1 %v9736_v26  ;;  %v9742_v32 = vpack.c.bf16 %v173_v31, %v172_v30  ;;  %v176_v36 = vld [vmem:[%s11784_s15 + $0x40] sm:$0xff]  ;;  %v179_v41 = vld [vmem:[%s11784_s15 + $0x58] sm:$0xff]  ;;  %v181_v45 = vld [vmem:[%s11784_s15 + $0x68] sm:$0xff] }
   0x6   :  { %11814 = sst [smem:[#allocation7_spill]] %s11780_s10  ;;  %s11819_s28 = sld [smem:[#allocation5_spill]]  ;;  %9738 = vmatprep.subr.bf16.mxu1 %v10174_v0  ;;  %v9748_v38 = vpack.c.bf16 %v177_v37, %v176_v36  ;;  %v4184_v39 = vld [vmem:[%s11785_s13] sm:$0xff]  ;;  %v9751_v42 = vpack.c.bf16 %v179_v41, %v178_v40  ;;  %v182_v48 = vld [vmem:[%s11784_s15 + $0x70] sm:$0xff]  ;;  %v183_v49 = vld [vmem:[%s11784_s15 + $0x78] sm:$0xff] }
   0x7   :  { %11815 = sst [smem:[#allocation8_spill]] %s11781_s4  ;;  %s11807_s4 = smov 96   ;;  %v10454_v43 = vld [vmem:[%s11786_s7] sm:$0x7]  ;;  %v9757_v50 = vpack.c.bf16 %v183_v49, %v182_v48  ;;  %v8126_v52 = vld [vmem:[%s11784_s15 + $0x108] sm:$0xff]  ;;  %v8127_v59 = vld [vmem:[%s11784_s15 + $0x110] sm:$0xff] }
   0x8   :  { %v72_v1 = vld [vmem:[%s11816_s29] sm:$0xff]  ;;  %v73_v2 = vld [vmem:[%s11816_s29 + $0x8] sm:$0xff]  ;;  %v74_v3 = vld [vmem:[%s11816_s29 + $0x10] sm:$0xff]  ;;  %s11820_s8 = sld [smem:[#allocation6_spill]]  ;;  %s10183_s10 = smov 88  }
   0x9   :  { %v9724_v5 = vpack.c.bf16 %v73_v2, %v72_v1  ;;  %v75_v6 = vld [vmem:[%s11816_s29 + $0x18] sm:$0xff]  ;;  %v81_v9 = vld [vmem:[%s11817_s25] sm:$0xff]  ;;  %v77_v11 = vld [vmem:[%s11816_s29 + $0x28] sm:$0xff]  ;;  %s10184_s25 = smov 72   ;;  %s11821_s1 = sld [smem:[#allocation7_spill]]  ;;  %9740 = vmatpush3.bf16.msra.mxu1 %v9739_v29 }
   0xa   :  { %v9727_v8 = vpack.c.bf16 %v75_v6, %v74_v3  ;;  %v76_v10 = vld [vmem:[%s11816_s29 + $0x20] sm:$0xff]  ;;  %84 = vperm.xlu0 %10167, %v81_v9   ;;  %v78_v14 = vld [vmem:[%s11816_s29 + $0x30] sm:$0xff]  ;;  %v79_v15 = vld [vmem:[%s11816_s29 + $0x38] sm:$0xff]  ;;  %s11822_s23 = sld [smem:[#allocation8_spill]]  ;;  %9741 = vmatprep.subr.bf16.mxu1 %v10174_v0 }
   0xb   :  { %9725 = vmatpush3.bf16.msra.mxu0 %v9724_v5  ;;  %v10332_v12 = vld [vmem:[%s11818_s3] sm:$0xff]  ;;  %v9730_v13 = vpack.c.bf16 %v77_v11, %v76_v10  ;;  %v9733_v16 = vpack.c.bf16 %v79_v15, %v78_v14  ;;  %v8128_v60 = vld [vmem:[%s11784_s15 + $0x118] sm:$0xff]  ;;  %v8130_v63 = vld [vmem:[%s11784_s15 + $0x128] sm:$0xff] }
   0xc   :  { %9726 = vmatprep.subr.bf16.mxu0 %v10174_v0  ;;  %v80_v17 = vld [vmem:[%s11816_s29 + $0x40] sm:$0xff]  ;;  %s11803_s29 = smov 104   ;;  %v9787_v61 = vpack.c.bf16 %v8128_v60, %v8127_v59  ;;  %v8131_v2 = vld [vmem:[%s11784_s15 + $0x130] sm:$0xff]  ;;  %v8132_v3 = vld [vmem:[%s11784_s15 + $0x138] sm:$0xff] }
   0xd   :  { %v71_v18 = vld [vmem:[%s11819_s28] sm:$0xff]  ;;  %9743 = vmatpush3.bf16.msra.mxu1 %v9742_v32  ;;  %v9793_v5 = vpack.c.bf16 %v8132_v3, %v8131_v2  ;;  %v8134_v7 = vld [vmem:[%s11784_s15 + $0x148] sm:$0xff]  ;;  %v8135_v9 = vld [vmem:[%s11784_s15 + $0x150] sm:$0xff] }
   0xe   :  { %417 = vrot.lane.b32.xlu0 %v10332_v12, %s10178_s24  ;;  %v10360_v19 = vld [vmem:[%s11820_s8] sm:$0xff]  ;;  %9744 = vmatprep.subr.bf16.mxu1 %v10174_v0  ;;  %v8136_v10 = vld [vmem:[%s11784_s15 + $0x158] sm:$0xff]  ;;  %v8138_v14 = vld [vmem:[%s11784_s15 + $0x168] sm:$0xff] }
   0xf   :  { %9728 = vmatpush3.bf16.msra.mxu0 %v9727_v8  ;;  %v1627_v20 = vld [vmem:[%s11821_s1] sm:$0xff]  ;;  %v9799_v11 = vpack.c.bf16 %v8136_v10, %v8135_v9  ;;  %v8160_v23 = vld [vmem:[%s11784_s15 + $0x208] sm:$0xff]  ;;  %v8161_v26 = vld [vmem:[%s11784_s15 + $0x210] sm:$0xff] }
  0x10   :  { %9729 = vmatprep.subr.bf16.mxu0 %v10174_v0  ;;  %v10379_v21 = vld [vmem:[%s11822_s23] sm:$0xff]  ;;  %v8162_v27 = vld [vmem:[%s11784_s15 + $0x218] sm:$0xff]  ;;  %v8164_v30 = vld [vmem:[%s11784_s15 + $0x228] sm:$0xff]  ;;  %s11825_s23 = smov 80  }
  0x11   :  { %9746 = vmatpush3.bf16.msra.mxu1 %v9745_v35  ;;  %v180_v44 = vld [vmem:[%s11784_s15 + $0x60] sm:$0xff]  ;;  %v9835_v28 = vpack.c.bf16 %v8162_v27, %v8161_v26  ;;  %v8165_v32 = vld [vmem:[%s11784_s15 + $0x230] sm:$0xff]  ;;  %v8166_v33 = vld [vmem:[%s11784_s15 + $0x238] sm:$0xff] }
  0x12   :  { %903 = vrot.lane.b32.xlu0 %v10332_v12, %s11807_s4  ;;  %9747 = vmatprep.subr.bf16.mxu1 %v10174_v0  ;;  %v9754_v46 = vpack.c.bf16 %v181_v45, %v180_v44  ;;  %v7504_v47 = vld [vmem:[%s11787_s14] sm:$0x7]  ;;  %v9841_v34 = vpack.c.bf16 %v8166_v33, %v8165_v32  ;;  %v8168_v36 = vld [vmem:[%s11784_s15 + $0x248] sm:$0xff]  ;;  %v8173_v45 = vld [vmem:[%s11784_s15 + $0x270] sm:$0xff] }
  0x13   :  { %9731 = vmatpush3.bf16.msra.mxu0 %v9730_v13  ;;  %v8125_v51 = vld [vmem:[%s11784_s15 + $0x100] sm:$0xff]  ;;  %v8177_v49 = vld [vmem:[%s11784_s15 + $0x288] sm:$0xff]  ;;  %v8183_v59 = vld [vmem:[%s11784_s15 + $0x2b8] sm:$0xff] }
  0x14   :  { %9732 = vmatprep.subr.bf16.mxu0 %v10174_v0  ;;  %v9784_v57 = vpack.c.bf16 %v8126_v52, %v8125_v51  ;;  %v8129_v62 = vld [vmem:[%s11784_s15 + $0x120] sm:$0xff]  ;;  %v8178_v51 = vld [vmem:[%s11784_s15 + $0x290] sm:$0xff]  ;;  %v8179_v52 = vld [vmem:[%s11784_s15 + $0x298] sm:$0xff] }
  0x15   :  { %9749 = vmatpush3.bf16.msra.mxu1 %v9748_v38  ;;  %v9790_v1 = vpack.c.bf16 %v8130_v63, %v8129_v62  ;;  %v8133_v6 = vld [vmem:[%s11784_s15 + $0x140] sm:$0xff]  ;;  %v8169_v38 = vld [vmem:[%s11784_s15 + $0x250] sm:$0xff]  ;;  %v8185_v62 = vld [vmem:[%s11784_s15 + $0x2c8] sm:$0xff] }
  0x16   :  { %1227 = vrot.lane.b32.xlu0 %v10332_v12, %s11801_s2  ;;  %9750 = vmatprep.subr.bf16.mxu1 %v10174_v0  ;;  %v9796_v8 = vpack.c.bf16 %v8134_v7, %v8133_v6  ;;  %v8137_v13 = vld [vmem:[%s11784_s15 + $0x160] sm:$0xff]  ;;  %v8187_v2 = vld [vmem:[%s11784_s15 + $0x2d8] sm:$0xff]  ;;  %v8189_v6 = vld [vmem:[%s11784_s15 + $0x2e8] sm:$0xff]  ;;  %s11826_s2 = smov 64  }
  0x17   :  { %9734 = vmatpush3.bf16.msra.mxu0 %v9733_v16  ;;  %v9802_v15 = vpack.c.bf16 %v8138_v14, %v8137_v13  ;;  %v8139_v16 = vld [vmem:[%s11784_s15 + $0x170] sm:$0xff]  ;;  %v8163_v29 = vld [vmem:[%s11784_s15 + $0x220] sm:$0xff]  ;;  %v8191_v9 = vld [vmem:[%s11784_s15 + $0x2f8] sm:$0xff] }
  0x18   :  { %8810 = vmatprep.subr.mxu0 %v10176_v4  ;;  %v9838_v31 = vpack.c.bf16 %v8164_v30, %v8163_v29  ;;  %v8167_v35 = vld [vmem:[%s11784_s15 + $0x240] sm:$0xff]  ;;  %v8211_v13 = vld [vmem:[%s11784_s15 + $0x388] sm:$0xff]  ;;  %v8217_v26 = vld [vmem:[%s11784_s15 + $0x3b8] sm:$0xff] }
  0x19   :  { %9752 = vmatpush3.bf16.msra.mxu1 %v9751_v42  ;;  %v9844_v37 = vpack.c.bf16 %v8168_v36, %v8167_v35  ;;  %v8171_v41 = vld [vmem:[%s11784_s15 + $0x260] sm:$0xff]  ;;  %v8172_v42 = vld [vmem:[%s11784_s15 + $0x268] sm:$0xff]  ;;  %v8221_v32 = vld [vmem:[%s11784_s15 + $0x3d8] sm:$0xff] }
  0x1a   :  { %1551 = vrot.lane.b32.xlu0 %v10332_v12, %s11805_s30  ;;  %9753 = vmatprep.subr.bf16.mxu1 %v10174_v0  ;;  %v9850_v44 = vpack.c.bf16 %v8172_v42, %v8171_v41  ;;  %v8176_v48 = vld [vmem:[%s11784_s15 + $0x280] sm:$0xff]  ;;  %v8219_v29 = vld [vmem:[%s11784_s15 + $0x3c8] sm:$0xff] }
  0x1b   :  { %8811 = vmatpush3.msra.mxu0 %v80_v17  ;;  %v8140_v17 = vld [vmem:[%s11784_s15 + $0x178] sm:$0xff]  ;;  %v8223_v35 = vld [vmem:[%s11784_s15 + $0x3e8] sm:$0xff] }
  0x1c   :  { %8813 = vmatmul.mubr.msk.f32.vlgmr.msra.gmra.mrb[0].mxu0 %vm87_vm1, %v71_v18  ;;  %8850 = vmatprep.subr.mxu0 %v10176_v4  ;;  %v9805_v18 = vpack.c.bf16 %v8140_v17, %v8139_v16  ;;  %v8213_v16 = vld [vmem:[%s11784_s15 + $0x398] sm:$0xff]  ;;  %v8109_v41 = vld [vmem:[%s11784_s15 + $0x88] sm:$0xff] }
  0x1d   :  { %8852 = vmatprep.mubr.msk.f32.mxu0 %vm10175_vm0, %v10176_v4  ;;  %9755 = vmatpush3.bf16.msra.mxu1 %v9754_v46  ;;  %v8174_v46 = vld [vmem:[%s11784_s15 + $0x278] sm:$0xff] }
  0x1e   :  { %1861 = vrot.lane.b32.xlu0 %v10360_v19, %s10178_s24  ;;  %9756 = vmatprep.subr.bf16.mxu1 %v10174_v0 }
  0x21   :  { %9758 = vmatpush3.bf16.msra.mxu1 %v9757_v50  ;;  %v9856_v50 = vpack.c.bf16 %v8177_v49, %v8176_v48  ;;  %v8112_v49 = vld [vmem:[%s11784_s15 + $0xa0] sm:$0xff] }
  0x22   :  { %2161 = vrot.lane.b32.xlu0 %v10360_v19, %s11803_s29  ;;  %9783 = vmatprep.subr.bf16.mxu1 %v10174_v0  ;;  %s10185_s29 = smov 112  }
  0x23   :  { %579 = vrot.lane.b32.xlu1 %v10332_v12, %s10185_s29 }
  0x26   :  { %2461 = vrot.lane.b32.xlu0 %v10360_v19, %s10183_s10 }
  0x27   :  { %741 = vrot.lane.b32.xlu1 %v10332_v12, %s11823_s0 }
  0x2a   :  { %2761 = vrot.lane.b32.xlu0 %v10360_v19, %s10184_s25 }
  0x2b   :  { %1065 = vrot.lane.b32.xlu1 %v10332_v12, %s10183_s10 }
  0x2e   :  { %1630 = vperm.xlu0 %10167, %v1627_v20   ;;  %v8159_v20 = vld [vmem:[%s11784_s15 + $0x200] sm:$0xff] }
  0x2f   :  { %v9832_v24 = vpack.c.bf16 %v8160_v23, %v8159_v20  ;;  %v8215_v20 = vld [vmem:[%s11784_s15 + $0x3a8] sm:$0xff]  ;;  %1389 = vrot.lane.b32.xlu1 %v10332_v12, %s10184_s25 }
  0x32   :  { %3217 = vrot.lane.b32.xlu0 %v10379_v21, %s10183_s10 }
  0x36   :  { %3511 = vrot.lane.b32.xlu0 %v10379_v21, %s11805_s30 }
  0x3a   :  { %3814 = vrot.lane.b32.xlu0 %v10388_v22, %s10178_s24 }
  0x3e   :  { %4108 = vrot.lane.b32.xlu0 %v10388_v22, %s11807_s4 }
  0x42   :  { %4411 = vrot.lane.b32.xlu0 %v10403_v25, %s10178_s24 }
  0x46   :  { %4705 = vrot.lane.b32.xlu0 %v10403_v25, %s11823_s0 }
  0x4a   :  { %4999 = vrot.lane.b32.xlu0 %v10403_v25, %s10183_s10 }
  0x4e   :  { %5293 = vrot.lane.b32.xlu0 %v10403_v25, %s10184_s25 }
  0x52   :  { %4187 = vperm.xlu0 %10167, %v4184_v39   ;;  %v8170_v39 = vld [vmem:[%s11784_s15 + $0x258] sm:$0xff] }
  0x53   :  { %v9847_v40 = vpack.c.bf16 %v8170_v39, %v8169_v38  ;;  %v8225_v38 = vld [vmem:[%s11784_s15 + $0x3f8] sm:$0xff] }
  0x56   :  { %7878 = vrot.lane.b32.xlu0 %v10454_v43, %s11823_s0 }
  0x5a   :  { %7507 = vperm.xlu0 %10167, %v7504_v47   ;;  %v9853_v47 = vpack.c.bf16 %v8174_v46, %v8173_v45  ;;  %v8110_v45 = vld [vmem:[%s11784_s15 + $0x90] sm:$0xff]  ;;  %v8111_v46 = vld [vmem:[%s11784_s15 + $0x98] sm:$0xff] }
  0x5b   :  { %v9763_v48 = vpack.c.bf16 %v8111_v46, %v8110_v45  ;;  %v8157_v45 = vld [vmem:[%s11784_s15 + $0x1f8] sm:$0xff] }
  0x89   :  { %v85_v53 = vpop.permute.xlu0 %84 }
  0xef   :  { %v157_v54 = vpop.f32.mrb[0].mxu0 }
  0xf0   :  { %v158_v55 = vadd.f32 %v157_v54, %v85_v53  ;;  %v8814_v56 = vpop.f32.mrb[1].mxu0  ;;  %v9859_v53 = vpack.c.bf16 %v8179_v52, %v8178_v51  ;;  %v8180_v54 = vld [vmem:[%s11784_s15 + $0x2a0] sm:$0xff]  ;;  %v8114_v52 = vld [vmem:[%s11784_s15 + $0xb0] sm:$0xff] }
  0xf2   :  { %v10482_v58 = vmax.f32 %v158_v55, 0.0  ;;  %v8181_v55 = vld [vmem:[%s11784_s15 + $0x2a8] sm:$0xff] }
  0xf3   :  { %v9862_v56 = vpack.c.bf16 %v8181_v55, %v8180_v54  ;;  %v8116_v55 = vld [vmem:[%s11784_s15 + $0xc0] sm:$0xff] }
  0xf4   :  { %8848 = vmatmul.mubr.f32.vlgmr.msra.gmra.mrb[0].mxu1 %v10482_v58 }
  0xf5   :  { %9785 = vmatpush3.bf16.msra.mxu1 %v9784_v57  ;;  %8927 = vmatprep.mubr.msk.f32.mxu1 %vm10175_vm0, %v10176_v4  ;;  %v8182_v57 = vld [vmem:[%s11784_s15 + $0x2b0] sm:$0xff] }
  0xf6   :  { %9786 = vmatprep.subr.bf16.mxu1 %v10174_v0  ;;  %v9865_v60 = vpack.c.bf16 %v8183_v59, %v8182_v57  ;;  %v8118_v59 = vld [vmem:[%s11784_s15 + $0xd0] sm:$0xff] }
  0xf9   :  { %9788 = vmatpush3.bf16.msra.mxu1 %v9787_v61  ;;  %v8184_v61 = vld [vmem:[%s11784_s15 + $0x2c0] sm:$0xff] }
  0xfa   :  { %9789 = vmatprep.subr.bf16.mxu1 %v10174_v0  ;;  %v9868_v63 = vpack.c.bf16 %v8185_v62, %v8184_v61  ;;  %v8120_v62 = vld [vmem:[%s11784_s15 + $0xe0] sm:$0xff] }
  0xfd   :  { %9791 = vmatpush3.bf16.msra.mxu1 %v9790_v1  ;;  %v8186_v1 = vld [vmem:[%s11784_s15 + $0x2d0] sm:$0xff] }
  0xfe   :  { %9792 = vmatprep.subr.bf16.mxu1 %v10174_v0  ;;  %v9871_v3 = vpack.c.bf16 %v8187_v2, %v8186_v1  ;;  %v8123_v2 = vld [vmem:[%s11784_s15 + $0xf8] sm:$0xff] }
 0x101   :  { %9794 = vmatpush3.bf16.msra.mxu1 %v9793_v5  ;;  %v8188_v5 = vld [vmem:[%s11784_s15 + $0x2e0] sm:$0xff] }
 0x102   :  { %9795 = vmatprep.subr.bf16.mxu1 %v10174_v0  ;;  %v9874_v7 = vpack.c.bf16 %v8189_v6, %v8188_v5 }
 0x105   :  { %9797 = vmatpush3.bf16.msra.mxu1 %v9796_v8  ;;  %v8190_v8 = vld [vmem:[%s11784_s15 + $0x2f0] sm:$0xff] }
 0x106   :  { %9798 = vmatprep.subr.bf16.mxu1 %v10174_v0  ;;  %v9877_v10 = vpack.c.bf16 %v8191_v9, %v8190_v8 }
 0x109   :  { %9800 = vmatpush3.bf16.msra.mxu1 %v9799_v11  ;;  %v8210_v11 = vld [vmem:[%s11784_s15 + $0x380] sm:$0xff] }
 0x10a   :  { %9801 = vmatprep.subr.bf16.mxu1 %v10174_v0  ;;  %v9904_v14 = vpack.c.bf16 %v8211_v13, %v8210_v11 }
 0x10d   :  { %9803 = vmatpush3.bf16.msra.mxu1 %v9802_v15  ;;  %v8212_v15 = vld [vmem:[%s11784_s15 + $0x390] sm:$0xff] }
 0x10e   :  { %9804 = vmatprep.subr.bf16.mxu1 %v10174_v0  ;;  %v9907_v17 = vpack.c.bf16 %v8213_v16, %v8212_v15  ;;  %v10795_v15 = vpop.permute.xlu0 %417 }
 0x111   :  { %9806 = vmatpush3.bf16.msra.mxu1 %v9805_v18  ;;  %v8214_v18 = vld [vmem:[%s11784_s15 + $0x3a0] sm:$0xff] }
 0x112   :  { %9831 = vmatprep.subr.bf16.mxu1 %v10174_v0  ;;  %v9910_v23 = vpack.c.bf16 %v8215_v20, %v8214_v18  ;;  %v8143_v18 = vld [vmem:[%s11784_s15 + $0x188] sm:$0xff]  ;;  %v10809_v20 = vpop.permute.xlu1 %579 }
 0x114   :  { %8928 = vmatmul.mubr.f32.vlgmr.msra.gmra.mrb[2].mxu1 %v10482_v58 }
 0x115   :  { %9833 = vmatpush3.bf16.msra.mxu1 %v9832_v24  ;;  %9007 = vmatprep.mubr.msk.f32.mxu1 %vm10175_vm0, %v10176_v4  ;;  %v8216_v24 = vld [vmem:[%s11784_s15 + $0x3b0] sm:$0xff] }
 0x116   :  { %9834 = vmatprep.subr.bf16.mxu1 %v10174_v0  ;;  %v9913_v27 = vpack.c.bf16 %v8217_v26, %v8216_v24  ;;  %v8144_v24 = vld [vmem:[%s11784_s15 + $0x190] sm:$0xff]  ;;  %v8145_v26 = vld [vmem:[%s11784_s15 + $0x198] sm:$0xff] }
 0x119   :  { %9836 = vmatpush3.bf16.msra.mxu1 %v9835_v28  ;;  %v8218_v28 = vld [vmem:[%s11784_s15 + $0x3c0] sm:$0xff] }
 0x11a   :  { %9837 = vmatprep.subr.bf16.mxu1 %v10174_v0  ;;  %v9916_v30 = vpack.c.bf16 %v8219_v29, %v8218_v28  ;;  %v8146_v28 = vld [vmem:[%s11784_s15 + $0x1a0] sm:$0xff]  ;;  %v8147_v29 = vld [vmem:[%s11784_s15 + $0x1a8] sm:$0xff] }
 0x11d   :  { %9839 = vmatpush3.bf16.msra.mxu1 %v9838_v31  ;;  %v8220_v31 = vld [vmem:[%s11784_s15 + $0x3d0] sm:$0xff] }
 0x11e   :  { %9840 = vmatprep.subr.bf16.mxu1 %v10174_v0  ;;  %v9919_v33 = vpack.c.bf16 %v8221_v32, %v8220_v31  ;;  %v8148_v31 = vld [vmem:[%s11784_s15 + $0x1b0] sm:$0xff]  ;;  %v8149_v32 = vld [vmem:[%s11784_s15 + $0x1b8] sm:$0xff] }
 0x121   :  { %9842 = vmatpush3.bf16.msra.mxu1 %v9841_v34  ;;  %v8222_v34 = vld [vmem:[%s11784_s15 + $0x3e0] sm:$0xff] }
 0x122   :  { %9843 = vmatprep.subr.bf16.mxu1 %v10174_v0  ;;  %v9922_v36 = vpack.c.bf16 %v8223_v35, %v8222_v34  ;;  %v8150_v34 = vld [vmem:[%s11784_s15 + $0x1c0] sm:$0xff]  ;;  %v8151_v35 = vld [vmem:[%s11784_s15 + $0x1c8] sm:$0xff] }
 0x125   :  { %9845 = vmatpush3.bf16.msra.mxu1 %v9844_v37  ;;  %v8224_v37 = vld [vmem:[%s11784_s15 + $0x3f0] sm:$0xff] }
 0x126   :  { %9846 = vmatprep.subr.bf16.mxu1 %v10174_v0  ;;  %v9925_v39 = vpack.c.bf16 %v8225_v38, %v8224_v37  ;;  %v8152_v37 = vld [vmem:[%s11784_s15 + $0x1d0] sm:$0xff]  ;;  %v8153_v38 = vld [vmem:[%s11784_s15 + $0x1d8] sm:$0xff] }
 0x129   :  { %9848 = vmatpush3.bf16.msra.mxu1 %v9847_v40  ;;  %v8108_v40 = vld [vmem:[%s11784_s15 + $0x80] sm:$0xff] }
 0x12a   :  { %9849 = vmatprep.subr.bf16.mxu1 %v10174_v0  ;;  %v9760_v42 = vpack.c.bf16 %v8109_v41, %v8108_v40  ;;  %v8154_v40 = vld [vmem:[%s11784_s15 + $0x1e0] sm:$0xff]  ;;  %v8155_v41 = vld [vmem:[%s11784_s15 + $0x1e8] sm:$0xff] }
 0x12d   :  { %9851 = vmatpush3.bf16.msra.mxu1 %v9850_v44 }
 0x12e   :  { %9852 = vmatprep.subr.bf16.mxu1 %v10174_v0 }
 0x131   :  { %9854 = vmatpush3.bf16.msra.mxu1 %v9853_v47 }
 0x132   :  { %9855 = vmatprep.subr.bf16.mxu1 %v10174_v0 }
 0x134   :  { %9008 = vmatmul.mubr.f32.vlgmr.msra.gmra.mrb[4].mxu1 %v10482_v58 }
 0x135   :  { %9857 = vmatpush3.bf16.msra.mxu1 %v9856_v50  ;;  %9047 = vmatprep.mubr.msk.f32.mxu1 %vm10175_vm0, %v10176_v4  ;;  %v8113_v50 = vld [vmem:[%s11784_s15 + $0xa8] sm:$0xff] }
 0x136   :  { %9858 = vmatprep.subr.bf16.mxu1 %v10174_v0  ;;  %v9766_v51 = vpack.c.bf16 %v8113_v50, %v8112_v49  ;;  %v10877_v50 = vpop.permute.xlu0 %903 }
 0x139   :  { %9860 = vmatpush3.bf16.msra.mxu1 %v9859_v53  ;;  %v8115_v53 = vld [vmem:[%s11784_s15 + $0xb8] sm:$0xff] }
 0x13a   :  { %9861 = vmatprep.subr.bf16.mxu1 %v10174_v0  ;;  %v9769_v54 = vpack.c.bf16 %v8115_v53, %v8114_v52  ;;  %v8194_v52 = vld [vmem:[%s11784_s15 + $0x308] sm:$0xff] }
 0x13d   :  { %9863 = vmatpush3.bf16.msra.mxu1 %v9862_v56  ;;  %v8117_v56 = vld [vmem:[%s11784_s15 + $0xc8] sm:$0xff] }
 0x13e   :  { %9864 = vmatprep.subr.bf16.mxu1 %v10174_v0  ;;  %v9772_v57 = vpack.c.bf16 %v8117_v56, %v8116_v55  ;;  %v8195_v55 = vld [vmem:[%s11784_s15 + $0x310] sm:$0xff]  ;;  %v8196_v56 = vld [vmem:[%s11784_s15 + $0x318] sm:$0xff] }
 0x141   :  { %9866 = vmatpush3.bf16.msra.mxu1 %v9865_v60  ;;  %v8119_v60 = vld [vmem:[%s11784_s15 + $0xd8] sm:$0xff] }
 0x142   :  { %9867 = vmatprep.subr.bf16.mxu1 %v10174_v0  ;;  %v9775_v61 = vpack.c.bf16 %v8119_v60, %v8118_v59  ;;  %v8197_v59 = vld [vmem:[%s11784_s15 + $0x320] sm:$0xff]  ;;  %v8198_v60 = vld [vmem:[%s11784_s15 + $0x328] sm:$0xff] }
 0x145   :  { %9869 = vmatpush3.bf16.msra.mxu1 %v9868_v63  ;;  %v8121_v63 = vld [vmem:[%s11784_s15 + $0xe8] sm:$0xff] }
 0x146   :  { %9870 = vmatprep.subr.bf16.mxu1 %v10174_v0  ;;  %v9778_v1 = vpack.c.bf16 %v8121_v63, %v8120_v62  ;;  %v8199_v62 = vld [vmem:[%s11784_s15 + $0x330] sm:$0xff]  ;;  %v8200_v63 = vld [vmem:[%s11784_s15 + $0x338] sm:$0xff] }
 0x149   :  { %9872 = vmatpush3.bf16.msra.mxu1 %v9871_v3 }
 0x14a   :  { %9873 = vmatprep.subr.bf16.mxu1 %v10174_v0 }
 0x14d   :  { %9875 = vmatpush3.bf16.msra.mxu1 %v9874_v7 }
 0x14e   :  { %9876 = vmatprep.subr.bf16.mxu1 %v10174_v0 }
 0x151   :  { %9878 = vmatpush3.bf16.msra.mxu1 %v9877_v10 }
 0x152   :  { %9903 = vmatprep.subr.bf16.mxu1 %v10174_v0 }
 0x154   :  { %9048 = vmatmul.mubr.f32.vlgmr.msra.gmra.mrb[6].mxu1 %v10482_v58 }
 0x155   :  { %9905 = vmatpush3.bf16.msra.mxu1 %v9904_v14  ;;  %9127 = vmatprep.mubr.msk.f32.mxu1 %vm10175_vm0, %v10176_v4 }
 0x156   :  { %9906 = vmatprep.subr.bf16.mxu1 %v10174_v0 }
 0x159   :  { %9908 = vmatpush3.bf16.msra.mxu1 %v9907_v17  ;;  %v8142_v17 = vld [vmem:[%s11784_s15 + $0x180] sm:$0xff] }
 0x15a   :  { %9909 = vmatprep.subr.bf16.mxu1 %v10174_v0 }
 0x15d   :  { %9911 = vmatpush3.bf16.msra.mxu1 %v9910_v23  ;;  %v9808_v23 = vpack.c.bf16 %v8143_v18, %v8142_v17  ;;  %v10950_v18 = vpop.permute.xlu0 %1227 }
 0x15e   :  { %9912 = vmatprep.subr.bf16.mxu1 %v10174_v0 }
 0x161   :  { %9914 = vmatpush3.bf16.msra.mxu1 %v9913_v27  ;;  %v9811_v27 = vpack.c.bf16 %v8145_v26, %v8144_v24  ;;  %v8227_v24 = vld [vmem:[%s11784_s15 + $0x400] sm:$0xff]  ;;  %v8228_v26 = vld [vmem:[%s11784_s15 + $0x408] sm:$0xff] }
 0x162   :  { %9915 = vmatprep.subr.bf16.mxu1 %v10174_v0 }
 0x165   :  { %9917 = vmatpush3.bf16.msra.mxu1 %v9916_v30  ;;  %v9814_v30 = vpack.c.bf16 %v8147_v29, %v8146_v28  ;;  %v9928_v28 = vpack.c.bf16 %v8228_v26, %v8227_v24  ;;  %v8230_v29 = vld [vmem:[%s11784_s15 + $0x418] sm:$0xff]  ;;  %v8272_v26 = vld [vmem:[%s11791_s16 + $0xb0] sm:$0xff] }
 0x166   :  { %9918 = vmatprep.subr.bf16.mxu1 %v10174_v0 }
 0x169   :  { %9920 = vmatpush3.bf16.msra.mxu1 %v9919_v33  ;;  %v9817_v33 = vpack.c.bf16 %v8149_v32, %v8148_v31  ;;  %v8231_v31 = vld [vmem:[%s11784_s15 + $0x420] sm:$0xff]  ;;  %v8232_v32 = vld [vmem:[%s11784_s15 + $0x428] sm:$0xff] }
 0x16a   :  { %9921 = vmatprep.subr.bf16.mxu1 %v10174_v0 }
 0x16d   :  { %9923 = vmatpush3.bf16.msra.mxu1 %v9922_v36  ;;  %v9820_v36 = vpack.c.bf16 %v8151_v35, %v8150_v34  ;;  %v8233_v34 = vld [vmem:[%s11784_s15 + $0x430] sm:$0xff]  ;;  %v8234_v35 = vld [vmem:[%s11784_s15 + $0x438] sm:$0xff] }
 0x16e   :  { %9924 = vmatprep.subr.bf16.mxu1 %v10174_v0 }
 0x171   :  { %9926 = vmatpush3.bf16.msra.mxu1 %v9925_v39  ;;  %v9823_v39 = vpack.c.bf16 %v8153_v38, %v8152_v37  ;;  %v8235_v37 = vld [vmem:[%s11784_s15 + $0x440] sm:$0xff]  ;;  %v8236_v38 = vld [vmem:[%s11784_s15 + $0x448] sm:$0xff] }
 0x172   :  { %9951 = vmatprep.subr.bf16.mxu1 %v10174_v0 }
 0x174   :  { %9128 = vmatmul.mubr.f32.vlgmr.msra.gmra.mrb[8].mxu1 %v10482_v58 }
 0x175   :  { %9183 = vmatprep.mubr.msk.f32.mxu1 %vm10175_vm0, %v10176_v4 }
 0x1c7   :  { %v250_v44 = vpop.f32.mrb[0].mxu1 }
 0x1c8   :  { %v8849_v47 = vpop.f32.mrb[1].mxu1  ;;  %8851 = vmatpush3.msra.mxu0 %v250_v44  ;;  %v8156_v44 = vld [vmem:[%s11784_s15 + $0x1f0] sm:$0xff] }
 0x1c9   :  { %9759 = vmatprep.subr.bf16.mxu0 %v10174_v0  ;;  %8853 = vmatmul.mubr.msk.f32.vlgmr.msra.gmra.mrb[2].mxu0 %vm255_vm2, %v10332_v12  ;;  %v8122_v12 = vld [vmem:[%s11784_s15 + $0xf0] sm:$0xff]  ;;  %v9829_v46 = vpack.c.bf16 %v8157_v45, %v8156_v44  ;;  %v10868_v47 = vpop.permute.xlu1 %741  ;;  %v8239_v44 = vld [vmem:[%s11784_s15 + $0x460] sm:$0xff]  ;;  %v8240_v45 = vld [vmem:[%s11784_s15 + $0x468] sm:$0xff] }
 0x1ca   :  { %9761 = vmatpush3.bf16.msra.mxu0 %v9760_v42  ;;  %8887 = vmatprep.mubr.msk.f32.mxu0 %vm10175_vm0, %v10176_v4  ;;  %v9781_v3 = vpack.c.bf16 %v8123_v2, %v8122_v12  ;;  %v9826_v42 = vpack.c.bf16 %v8155_v41, %v8154_v40  ;;  %v8201_v12 = vld [vmem:[%s11784_s15 + $0x340] sm:$0xff]  ;;  %v8202_v2 = vld [vmem:[%s11784_s15 + $0x348] sm:$0xff]  ;;  %v8237_v40 = vld [vmem:[%s11784_s15 + $0x450] sm:$0xff] }
 0x1cb   :  { %9762 = vmatprep.subr.bf16.mxu0 %v10174_v0  ;;  %v8238_v41 = vld [vmem:[%s11784_s15 + $0x458] sm:$0xff] }
 0x1cd   :  { %v10891_v53 = vpop.permute.xlu1 %1065 }
 0x1ce   :  { %9764 = vmatpush3.bf16.msra.mxu0 %v9763_v48 }
 0x1cf   :  { %9765 = vmatprep.subr.bf16.mxu0 %v10174_v0 }
 0x1d2   :  { %9767 = vmatpush3.bf16.msra.mxu0 %v9766_v51  ;;  %v8193_v51 = vld [vmem:[%s11784_s15 + $0x300] sm:$0xff] }
 0x1d3   :  { %9768 = vmatprep.subr.bf16.mxu0 %v10174_v0 }
 0x1d6   :  { %9770 = vmatpush3.bf16.msra.mxu0 %v9769_v54  ;;  %v9880_v54 = vpack.c.bf16 %v8194_v52, %v8193_v51  ;;  %v162_v52 = vld [vmem:[%s11788_s9] sm:$0xff] }
 0x1d7   :  { %9771 = vmatprep.subr.bf16.mxu0 %v10174_v0  ;;  %165 = vperm.xlu1 %10168, %v162_v52  }
 0x1da   :  { %9773 = vmatpush3.bf16.msra.mxu0 %v9772_v57  ;;  %v9883_v57 = vpack.c.bf16 %v8196_v56, %v8195_v55  ;;  %v8253_v56 = vld [vmem:[%s11791_s16 + $0x48] sm:$0xff] }
 0x1db   :  { %9774 = vmatprep.subr.bf16.mxu0 %v10174_v0  ;;  %2011 = vrot.lane.b32.xlu1 %v10360_v19, %s10185_s29 }
 0x1de   :  { %9776 = vmatpush3.bf16.msra.mxu0 %v9775_v61  ;;  %v9886_v61 = vpack.c.bf16 %v8198_v60, %v8197_v59  ;;  %v11077_v60 = vpop.permute.xlu0 %1551 }
 0x1df   :  { %9777 = vmatprep.subr.bf16.mxu0 %v10174_v0 }
 0x1e2   :  { %9779 = vmatpush3.bf16.msra.mxu0 %v9778_v1  ;;  %v9889_v1 = vpack.c.bf16 %v8200_v63, %v8199_v62  ;;  %v1635_v63 = vld [vmem:[%s11791_s16 + $0x10] sm:$0xff] }
 0x1e3   :  { %9780 = vmatprep.subr.bf16.mxu0 %v10174_v0 }
 0x1e6   :  { %9782 = vmatpush3.bf16.msra.mxu0 %v9781_v3  ;;  %v9892_v3 = vpack.c.bf16 %v8202_v2, %v8201_v12  ;;  %v8264_v2 = vld [vmem:[%s11791_s16 + $0x80] sm:$0xff] }
 0x1e7   :  { %v575_v5 = vpop.f32.mrb[2].mxu1  ;;  %8890 = vmatprep.subr.mxu0 %v10176_v4 }
 0x1e8   :  { %v8929_v6 = vpop.f32.mrb[3].mxu1 }
 0x1e9   :  { %8888 = vmatmul.mubr.f32.vlgmr.msra.gmra.mrb[4].mxu0 %v10482_v58  ;;  %v8204_v6 = vld [vmem:[%s11784_s15 + $0x358] sm:$0xff] }
 0x1ea   :  { %8892 = vmatprep.mubr.msk.f32.mxu0 %vm10175_vm0, %v10176_v4 }
 0x207   :  { %v10789_v7 = vpop.f32.mrb[4].mxu1 }
 0x208   :  { %v9009_v8 = vpop.f32.mrb[5].mxu1 }
 0x209   :  { %v8205_v8 = vld [vmem:[%s11784_s15 + $0x360] sm:$0xff] }
 0x227   :  { %v10791_v9 = vpop.f32.mrb[6].mxu1 }
 0x228   :  { %v9049_v10 = vpop.f32.mrb[7].mxu1 }
 0x247   :  { %v10793_v11 = vpop.f32.mrb[8].mxu1 }
 0x248   :  { %v9129_v13 = vpop.f32.mrb[9].mxu1 }
 0x249   :  { %v8207_v13 = vld [vmem:[%s11784_s15 + $0x370] sm:$0xff] }
 0x2bc   :  { %v413_v14 = vpop.f32.mrb[4].mxu0 }
 0x2bd   :  { %v8889_v16 = vpop.f32.mrb[5].mxu0  ;;  %8891 = vmatpush3.msra.mxu0 %v413_v14  ;;  %v8208_v14 = vld [vmem:[%s11784_s15 + $0x378] sm:$0xff] }
 0x2be   :  { %8893 = vmatmul.mubr.msk.f32.vlgmr.msra.gmra.mrb[2].mxu0 %vm255_vm2, %v10795_v15  ;;  %8930 = vmatprep.subr.mxu0 %v10176_v4  ;;  %v9901_v16 = vpack.c.bf16 %v8208_v14, %v8207_v13  ;;  %v8266_v13 = vld [vmem:[%s11791_s16 + $0x90] sm:$0xff]  ;;  %v8267_v14 = vld [vmem:[%s11791_s16 + $0x98] sm:$0xff] }
 0x2bf   :  { %8931 = vmatpush3.msra.mxu0 %v575_v5  ;;  %8932 = vmatprep.mubr.msk.f32.mxu0 %vm10175_vm0, %v10176_v4  ;;  %v8203_v5 = vld [vmem:[%s11784_s15 + $0x350] sm:$0xff] }
 0x2c0   :  { %9807 = vmatprep.subr.bf16.mxu0 %v10174_v0 }
 0x2c6   :  { %8933 = vmatmul.mubr.msk.f32.vlgmr.msra.gmra.mrb[2].mxu0 %vm255_vm2, %v10809_v20 }
 0x2c7   :  { %9809 = vmatpush3.bf16.msra.mxu0 %v9808_v23  ;;  %8967 = vmatprep.mubr.msk.f32.mxu0 %vm10175_vm0, %v10176_v4 }
 0x2c8   :  { %9810 = vmatprep.subr.bf16.mxu0 %v10174_v0 }
 0x2cb   :  { %9812 = vmatpush3.bf16.msra.mxu0 %v9811_v27  ;;  %v10965_v27 = vpop.permute.xlu1 %1389 }
 0x2cc   :  { %9813 = vmatprep.subr.bf16.mxu0 %v10174_v0 }
 0x2cf   :  { %9815 = vmatpush3.bf16.msra.mxu0 %v9814_v30 }
 0x2d0   :  { %9816 = vmatprep.subr.bf16.mxu0 %v10174_v0 }
 0x2d3   :  { %9818 = vmatpush3.bf16.msra.mxu0 %v9817_v33  ;;  %v9934_v33 = vpack.c.bf16 %v8232_v32, %v8231_v31  ;;  %v8278_v32 = vld [vmem:[%s11791_s16 + $0xd0] sm:$0xff] }
 0x2d4   :  { %9819 = vmatprep.subr.bf16.mxu0 %v10174_v0 }
 0x2d7   :  { %9821 = vmatpush3.bf16.msra.mxu0 %v9820_v36  ;;  %v9937_v36 = vpack.c.bf16 %v8234_v35, %v8233_v34  ;;  %v8288_v35 = vld [vmem:[%s11791_s16 + $0x100] sm:$0xff] }
 0x2d8   :  { %9822 = vmatprep.subr.bf16.mxu0 %v10174_v0 }
 0x2db   :  { %9824 = vmatpush3.bf16.msra.mxu0 %v9823_v39  ;;  %v9940_v39 = vpack.c.bf16 %v8236_v38, %v8235_v37  ;;  %v8290_v38 = vld [vmem:[%s11791_s16 + $0x110] sm:$0xff] }
 0x2dc   :  { %9825 = vmatprep.subr.bf16.mxu0 %v10174_v0 }
 0x2df   :  { %9827 = vmatpush3.bf16.msra.mxu0 %v9826_v42  ;;  %v9943_v42 = vpack.c.bf16 %v8238_v41, %v8237_v40  ;;  %v8246_v41 = vld [vmem:[%s11791_s16 + $0x20] sm:$0xff] }
 0x2e0   :  { %9828 = vmatprep.subr.bf16.mxu0 %v10174_v0 }
 0x2e3   :  { %9830 = vmatpush3.bf16.msra.mxu0 %v9829_v46  ;;  %v9946_v46 = vpack.c.bf16 %v8240_v45, %v8239_v44 }
 0x2e4   :  { %8970 = vmatprep.subr.mxu0 %v10176_v4 }
 0x2e6   :  { %8968 = vmatmul.mubr.f32.vlgmr.msra.gmra.mrb[6].mxu0 %v10482_v58 }
 0x2e7   :  { %8972 = vmatprep.mubr.msk.f32.mxu0 %vm10175_vm0, %v10176_v4 }
 0x3b9   :  { %v737_v48 = vpop.f32.mrb[6].mxu0 }
 0x3ba   :  { %v8969_v49 = vpop.f32.mrb[7].mxu0  ;;  %8971 = vmatpush3.msra.mxu0 %v737_v48  ;;  %v8241_v48 = vld [vmem:[%s11784_s15 + $0x470] sm:$0xff] }
 0x3bb   :  { %8973 = vmatmul.mubr.msk.f32.vlgmr.msra.gmra.mrb[2].mxu0 %vm255_vm2, %v10868_v47  ;;  %9010 = vmatprep.subr.mxu0 %v10176_v4  ;;  %v8242_v49 = vld [vmem:[%s11784_s15 + $0x478] sm:$0xff] }
 0x3bc   :  { %9011 = vmatpush3.msra.mxu0 %v10789_v7  ;;  %9012 = vmatprep.mubr.msk.f32.mxu0 %vm10175_vm0, %v10176_v4  ;;  %v9895_v7 = vpack.c.bf16 %v8204_v6, %v8203_v5  ;;  %v9949_v51 = vpack.c.bf16 %v8242_v49, %v8241_v48  ;;  %v11112_v5 = vpop.permute.xlu1 %165  ;;  %v8248_v48 = vld [vmem:[%s11791_s16 + $0x30] sm:$0xff]  ;;  %v8249_v49 = vld [vmem:[%s11791_s16 + $0x38] sm:$0xff] }
 0x3bd   :  { %9050 = vmatprep.subr.mxu0 %v10176_v4 }
 0x3c3   :  { %9013 = vmatmul.mubr.msk.f32.vlgmr.msra.gmra.mrb[2].mxu0 %vm255_vm2, %v10877_v50 }
 0x3c4   :  { %9051 = vmatpush3.msra.mxu0 %v10791_v9  ;;  %9052 = vmatprep.mubr.msk.f32.mxu0 %vm10175_vm0, %v10176_v4  ;;  %v8206_v9 = vld [vmem:[%s11784_s15 + $0x368] sm:$0xff] }
 0x3c5   :  { %9879 = vmatprep.subr.bf16.mxu0 %v10174_v0  ;;  %v9898_v10 = vpack.c.bf16 %v8206_v9, %v8205_v8 }
 0x3cb   :  { %9053 = vmatmul.mubr.msk.f32.vlgmr.msra.gmra.mrb[2].mxu0 %vm255_vm2, %v10891_v53 }
 0x3cc   :  { %9881 = vmatpush3.bf16.msra.mxu0 %v9880_v54  ;;  %9087 = vmatprep.mubr.msk.f32.mxu0 %vm10175_vm0, %v10176_v4  ;;  %v1633_v54 = vld [vmem:[%s11791_s16] sm:$0xff] }
 0x3cd   :  { %9882 = vmatprep.subr.bf16.mxu0 %v10174_v0 }
 0x3d0   :  { %9884 = vmatpush3.bf16.msra.mxu0 %v9883_v57 }
 0x3d1   :  { %9885 = vmatprep.subr.bf16.mxu0 %v10174_v0 }
 0x3d4   :  { %9887 = vmatpush3.bf16.msra.mxu0 %v9886_v61  ;;  %v8255_v61 = vld [vmem:[%s11791_s16 + $0x58] sm:$0xff] }
 0x3d5   :  { %9888 = vmatprep.subr.bf16.mxu0 %v10174_v0 }
 0x3d8   :  { %9890 = vmatpush3.bf16.msra.mxu0 %v9889_v1  ;;  %v1636_v1 = vld [vmem:[%s11791_s16 + $0x18] sm:$0xff] }
 0x3d9   :  { %9891 = vmatprep.subr.bf16.mxu0 %v10174_v0  ;;  %v11100_v12 = vpack.c.bf16 %v1636_v1, %v1635_v63  ;;  %v1862_v1 = vpop.permute.xlu0 %1861 }
 0x3dc   :  { %9893 = vmatpush3.bf16.msra.mxu0 %v9892_v3  ;;  %v8265_v3 = vld [vmem:[%s11791_s16 + $0x88] sm:$0xff] }
 0x3dd   :  { %9894 = vmatprep.subr.bf16.mxu0 %v10174_v0  ;;  %v11115_v9 = vpack.c.bf16 %v8265_v3, %v8264_v2  ;;  %v8258_v3 = vld [vmem:[%s11791_s16 + $0x60] sm:$0xff] }
 0x3e0   :  { %9896 = vmatpush3.bf16.msra.mxu0 %v9895_v7 }
 0x3e1   :  { %9897 = vmatprep.subr.bf16.mxu0 %v10174_v0 }
 0x3e4   :  { %9899 = vmatpush3.bf16.msra.mxu0 %v9898_v10 }
 0x3e5   :  { %9900 = vmatprep.subr.bf16.mxu0 %v10174_v0 }
 0x3e8   :  { %9902 = vmatpush3.bf16.msra.mxu0 %v9901_v16  ;;  %v11130_v16 = vpack.c.bf16 %v8267_v14, %v8266_v13  ;;  %v8261_v13 = vld [vmem:[%s11791_s16 + $0x78] sm:$0xff]  ;;  %v2012_v14 = vpop.permute.xlu1 %2011 }
 0x3e9   :  { %9090 = vmatprep.subr.mxu0 %v10176_v4 }
 0x3eb   :  { %9088 = vmatmul.mubr.f32.vlgmr.msra.gmra.mrb[8].mxu0 %v10482_v58 }
 0x3ec   :  { %9092 = vmatprep.mubr.msk.f32.mxu0 %vm10175_vm0, %v10176_v4 }
 0x4be   :  { %v1223_v17 = vpop.f32.mrb[8].mxu0 }
 0x4bf   :  { %v9089_v23 = vpop.f32.mrb[9].mxu0  ;;  %9091 = vmatpush3.msra.mxu0 %v1223_v17  ;;  %v8270_v17 = vld [vmem:[%s11791_s16 + $0xa0] sm:$0xff] }
 0x4c0   :  { %9093 = vmatmul.mubr.msk.f32.vlgmr.msra.gmra.mrb[2].mxu0 %vm255_vm2, %v10950_v18  ;;  %9130 = vmatprep.subr.mxu0 %v10176_v4  ;;  %v8271_v23 = vld [vmem:[%s11791_s16 + $0xa8] sm:$0xff] }
 0x4c1   :  { %9131 = vmatpush3.msra.mxu0 %v10793_v11  ;;  %9132 = vmatprep.mubr.msk.f32.mxu0 %vm10175_vm0, %v10176_v4  ;;  %v8229_v11 = vld [vmem:[%s11784_s15 + $0x410] sm:$0xff]  ;;  %s11824_s15 = smov 96   ;;  %v11144_v24 = vpack.c.bf16 %v8271_v23, %v8270_v17 }
 0x4c2   :  { %9927 = vmatprep.subr.bf16.mxu0 %v10174_v0  ;;  %v9931_v30 = vpack.c.bf16 %v8230_v29, %v8229_v11  ;;  %2311 = vrot.lane.b32.xlu1 %v10360_v19, %s11824_s15  ;;  %v8276_v29 = vld [vmem:[%s11791_s16 + $0xc0] sm:$0xff] }
 0x4c6   :  { %2611 = vrot.lane.b32.xlu1 %v10360_v19, %s11825_s23 }
 0x4c8   :  { %9133 = vmatmul.mubr.msk.f32.vlgmr.msra.gmra.mrb[2].mxu0 %vm255_vm2, %v10965_v27 }
 0x4c9   :  { %9929 = vmatpush3.bf16.msra.mxu0 %v9928_v28  ;;  %9167 = vmatprep.mubr.msk.f32.mxu0 %vm10175_vm0, %v10176_v4  ;;  %v8273_v28 = vld [vmem:[%s11791_s16 + $0xb8] sm:$0xff] }
 0x4ca   :  { %9930 = vmatprep.subr.bf16.mxu0 %v10174_v0  ;;  %2911 = vrot.lane.b32.xlu1 %v10360_v19, %s11826_s2  ;;  %v3587_v19 = vld [vmem:[%s11790_s12] sm:$0xff]  ;;  %v11156_v11 = vpack.c.bf16 %v8273_v28, %v8272_v26  ;;  %v2162_v26 = vpop.permute.xlu0 %2161 }
 0x4cd   :  { %9932 = vmatpush3.bf16.msra.mxu0 %v9931_v30  ;;  %v8277_v30 = vld [vmem:[%s11791_s16 + $0xc8] sm:$0xff] }
 0x4ce   :  { %9933 = vmatprep.subr.bf16.mxu0 %v10174_v0  ;;  %3070 = vrot.lane.b32.xlu1 %v10379_v21, %s11824_s15  ;;  %v11168_v31 = vpack.c.bf16 %v8277_v30, %v8276_v29  ;;  %v11292_v30 = vpop.permute.xlu0 %2461 }
 0x4d1   :  { %9935 = vmatpush3.bf16.msra.mxu0 %v9934_v33  ;;  %v8279_v33 = vld [vmem:[%s11791_s16 + $0xd8] sm:$0xff] }
 0x4d2   :  { %9936 = vmatprep.subr.bf16.mxu0 %v10174_v0  ;;  %3364 = vrot.lane.b32.xlu1 %v10379_v21, %s10184_s25  ;;  %v1634_v21 = vld [vmem:[%s11791_s16 + $0x8] sm:$0xff]  ;;  %v11180_v34 = vpack.c.bf16 %v8279_v33, %v8278_v32  ;;  %v8282_v32 = vld [vmem:[%s11791_s16 + $0xe0] sm:$0xff] }
 0x4d3   :  { %v11053_v55 = vpack.c.bf16 %v1634_v21, %v1633_v54  ;;  %v11235_v54 = vpack.c.bf16 %v8249_v49, %v8248_v48  ;;  %v8283_v33 = vld [vmem:[%s11791_s16 + $0xe8] sm:$0xff]  ;;  %v11344_v48 = vld [vmem:[%s11792_s17 + $0x20] sm:$0xff] }
 0x4d4   :  { %v11349_v49 = vld [vmem:[%s11792_s17 + $0x28] sm:$0xff] }
 0x4d5   :  { %9938 = vmatpush3.bf16.msra.mxu0 %v9937_v36  ;;  %9953 = vmatpush3.bf16.msra.mxu1 %v11053_v55  ;;  %v8289_v36 = vld [vmem:[%s11791_s16 + $0x108] sm:$0xff] }
 0x4d6   :  { %9939 = vmatprep.subr.bf16.mxu0 %v10174_v0  ;;  %9954 = vmatprep.subr.bf16.mxu1 %v10174_v0  ;;  %v11192_v37 = vpack.c.bf16 %v8289_v36, %v8288_v35  ;;  %v11305_v35 = vpack.c.bf16 %v8283_v33, %v8282_v32  ;;  %v8284_v36 = vld [vmem:[%s11791_s16 + $0xf0] sm:$0xff] }
 0x4d9   :  { %9941 = vmatpush3.bf16.msra.mxu0 %v9940_v39  ;;  %9956 = vmatpush3.bf16.msra.mxu1 %v11100_v12  ;;  %v8291_v39 = vld [vmem:[%s11791_s16 + $0x118] sm:$0xff] }
 0x4da   :  { %9942 = vmatprep.subr.bf16.mxu0 %v10174_v0  ;;  %9186 = vmatprep.subr.mxu1 %v10176_v4  ;;  %v11204_v40 = vpack.c.bf16 %v8291_v39, %v8290_v38  ;;  %v8285_v38 = vld [vmem:[%s11791_s16 + $0xf8] sm:$0xff] }
 0x4dd   :  { %9944 = vmatpush3.bf16.msra.mxu0 %v9943_v42  ;;  %v8247_v42 = vld [vmem:[%s11791_s16 + $0x28] sm:$0xff] }
 0x4de   :  { %9945 = vmatprep.subr.bf16.mxu0 %v10174_v0  ;;  %v11221_v44 = vpack.c.bf16 %v8247_v42, %v8246_v41  ;;  %v11315_v41 = vpack.c.bf16 %v8285_v38, %v8284_v36  ;;  %v8308_v38 = vld [vmem:[%s11793_s18 + $0x8] sm:$0xff] }
 0x4e1   :  { %9947 = vmatpush3.bf16.msra.mxu0 %v9946_v46 }
 0x4e2   :  { %9948 = vmatprep.subr.bf16.mxu0 %v10174_v0 }
 0x4e5   :  { %9950 = vmatpush3.bf16.msra.mxu0 %v9949_v51 }
 0x4e6   :  { %9170 = vmatprep.subr.mxu0 %v10176_v4 }
 0x4e8   :  { %9168 = vmatmul.mubr.f32.vlgmr.msra.gmra.mrb[10].mxu0 %v10482_v58  ;;  %v2987_v58 = vld [vmem:[%s11789_s11] sm:$0xff] }
 0x4e9   :  { %9172 = vmatprep.mubr.msk.f32.mxu0 %vm10175_vm0, %v10176_v4  ;;  %2990 = vperm.xlu1 %10168, %v2987_v58   ;;  %v10169_v58 = vld [vmem:[%s11820_s8] sm:$0xff] }
 0x4ed   :  { %3961 = vrot.lane.b32.xlu1 %v10388_v22, %s11823_s0  ;;  %v8252_v22 = vld [vmem:[%s11791_s16 + $0x40] sm:$0xff] }
 0x4ee   :  { %v11075_v57 = vpack.c.bf16 %v8253_v56, %v8252_v22 }
 0x4f1   :  { %3590 = vperm.xlu1 %10168, %v3587_v19  }
 0x4f5   :  { %4558 = vrot.lane.b32.xlu1 %v10403_v25, %s10185_s29 }
 0x4f9   :  { %4852 = vrot.lane.b32.xlu1 %v10403_v25, %s11824_s15 }
 0x4fd   :  { %5146 = vrot.lane.b32.xlu1 %v10403_v25, %s11825_s23 }
 0x501   :  { %5440 = vrot.lane.b32.xlu1 %v10403_v25, %s11826_s2 }
 0x505   :  { %7731 = vrot.lane.b32.xlu1 %v10454_v43, %s10178_s24 }
 0x509   :  { %8025 = vrot.lane.b32.xlu1 %v10454_v43, %s11824_s15  ;;  %v8254_v43 = vld [vmem:[%s11791_s16 + $0x50] sm:$0xff] }
 0x50a   :  { %v11092_v62 = vpack.c.bf16 %v8255_v61, %v8254_v43 }
 0x534   :  { %v11285_v29 = vpop.permute.xlu1 %2311 }
 0x538   :  { %v2612_v39 = vpop.permute.xlu1 %2611 }
 0x5bb   :  { %v1547_v59 = vpop.f32.mrb[10].mxu0 }
 0x5bc   :  { %v9169_v25 = vpop.f32.mrb[11].mxu0  ;;  %9171 = vmatpush3.msra.mxu0 %v1547_v59 }
 0x5bd   :  { %9173 = vmatmul.mubr.msk.f32.vlgmr.msra.gmra.mrb[2].mxu0 %vm255_vm2, %v11077_v60  ;;  %9963 = vmatprep.subr.bf16.mxu0 %v10174_v0 }
 0x5be   :  { %9965 = vmatpush3.bf16.msra.mxu0 %v11075_v57  ;;  %9215 = vmatprep.mubr.msk.f32.mxu0 %vm10175_vm0, %v10176_v4 }
 0x5bf   :  { %9966 = vmatprep.subr.bf16.mxu0 %v10174_v0 }
 0x5c2   :  { %9968 = vmatpush3.bf16.msra.mxu0 %v11092_v62 }
 0x5c3   :  { %9975 = vmatprep.subr.bf16.mxu0 %v10174_v0 }
 0x690   :  { %v1621_v6 = vpop.f32.mrb[2].mxu0 }
 0x691   :  { %v10059_v7 = vadd.f32 %v1621_v6, %v11112_v5  ;;  %v9174_v8 = vpop.f32.mrb[3].mxu0  ;;  %v8259_v6 = vld [vmem:[%s11791_s16 + $0x68] sm:$0xff] }
 0x692   :  { %v8260_v8 = vld [vmem:[%s11791_s16 + $0x70] sm:$0xff] }
 0x693   :  { %v11117_v10 = vmax.f32 %v10059_v7, 0.0  ;;  %v11259_v7 = vpack.c.bf16 %v8259_v6, %v8258_v3  ;;  %v11269_v17 = vpack.c.bf16 %v8261_v13, %v8260_v8 }
 0x695   :  { %9184 = vmatmul.mubr.msk.f32.vlgmr.msra.gmra.mrb[10].mxu1 %vm1637_vm3, %v11117_v10  ;;  %9216 = vmatmul.mubr.msk.f32.vlgmr.msra.gmra.mrb[12].mxu0 %vm1637_vm3, %v11117_v10 }
 0x696   :  { %9977 = vmatpush3.bf16.msra.mxu0 %v11115_v9  ;;  %9247 = vmatprep.mubr.msk.f32.mxu0 %vm10175_vm0, %v10176_v4 }
 0x697   :  { %9978 = vmatprep.subr.bf16.mxu0 %v10174_v0  ;;  %9188 = vmatprep.mubr.msk.f32.mxu1 %vm10175_vm0, %v10176_v4 }
 0x69a   :  { %9980 = vmatpush3.bf16.msra.mxu0 %v11130_v16 }
 0x69b   :  { %9981 = vmatprep.subr.bf16.mxu0 %v10174_v0 }
 0x69d   :  { %9248 = vmatmul.mubr.msk.f32.vlgmr.msra.gmra.mrb[14].mxu0 %vm1637_vm3, %v11117_v10 }
 0x69e   :  { %9983 = vmatpush3.bf16.msra.mxu0 %v11144_v24  ;;  %9263 = vmatprep.mubr.msk.f32.mxu0 %vm10175_vm0, %v10176_v4 }
 0x69f   :  { %9984 = vmatprep.subr.bf16.mxu0 %v10174_v0 }
 0x6a2   :  { %9986 = vmatpush3.bf16.msra.mxu0 %v11156_v11 }
 0x6a3   :  { %9987 = vmatprep.subr.bf16.mxu0 %v10174_v0 }
 0x6a5   :  { %9264 = vmatmul.mubr.msk.f32.vlgmr.msra.gmra.mrb[16].mxu0 %vm1637_vm3, %v11117_v10 }
 0x6a6   :  { %9989 = vmatpush3.bf16.msra.mxu0 %v11168_v31  ;;  %9279 = vmatprep.mubr.msk.f32.mxu0 %vm10175_vm0, %v10176_v4 }
 0x6a7   :  { %9990 = vmatprep.subr.bf16.mxu0 %v10174_v0 }
 0x6aa   :  { %9992 = vmatpush3.bf16.msra.mxu0 %v11180_v34 }
 0x6ab   :  { %9999 = vmatprep.subr.bf16.mxu0 %v10174_v0 }
 0x6ad   :  { %9280 = vmatmul.mubr.msk.f32.vlgmr.msra.gmra.mrb[18].mxu0 %vm1637_vm3, %v11117_v10 }
 0x6ae   :  { %10001 = vmatpush3.bf16.msra.mxu0 %v11192_v37  ;;  %9311 = vmatprep.mubr.msk.f32.mxu0 %vm10175_vm0, %v10176_v4 }
 0x6af   :  { %10002 = vmatprep.subr.bf16.mxu0 %v10174_v0 }
 0x6b2   :  { %10004 = vmatpush3.bf16.msra.mxu0 %v11204_v40 }
 0x6b3   :  { %9319 = vmatprep.subr.mxu0 %v10176_v4 }
 0x6b5   :  { %9312 = vmatmul.mubr.msk.f32.vlgmr.msra.gmra.mrb[20].mxu0 %vm1637_vm3, %v11117_v10 }
 0x6b6   :  { %9321 = vmatprep.mubr.msk.f32.mxu0 %vm10175_vm0, %v10176_v4  ;;  %9320 = vmatpush3.msra.mxu0 %v11344_v48 }
 0x6b7   :  { %9324 = vmatprep.subr.mxu0 %v10176_v4 }
 0x768   :  { %v1707_v45 = vpop.f32.mrb[10].mxu1  ;;  %v2007_v46 = vpop.f32.mrb[12].mxu0 }
 0x769   :  { %v9185_v51 = vpop.f32.mrb[11].mxu1  ;;  %9187 = vmatpush3.msra.mxu1 %v1707_v45  ;;  %v9217_v52 = vpop.f32.mrb[13].mxu0 }
 0x76a   :  { %9957 = vmatprep.subr.bf16.mxu1 %v10174_v0  ;;  %9189 = vmatmul.mubr.msk.f32.vlgmr.msra.gmra.mrb[12].mxu1 %vm255_vm2, %v10169_v58  ;;  %v11326_v45 = vpop.permute.xlu0 %2761 }
 0x76b   :  { %9959 = vmatpush3.bf16.msra.mxu1 %v11221_v44  ;;  %9199 = vmatprep.mubr.msk.f32.mxu1 %vm10175_vm0, %v10176_v4 }
 0x76c   :  { %9960 = vmatprep.subr.bf16.mxu1 %v10174_v0 }
 0x76e   :  { %v11355_v51 = vpop.permute.xlu0 %1630 }
 0x76f   :  { %9962 = vmatpush3.bf16.msra.mxu1 %v11235_v54 }
 0x770   :  { %v2307_v19 = vpop.f32.mrb[14].mxu0  ;;  %9202 = vmatprep.subr.mxu1 %v10176_v4 }
 0x771   :  { %v9249_v21 = vpop.f32.mrb[15].mxu0 }
 0x772   :  { %9200 = vmatmul.mubr.msk.f32.vlgmr.msra.gmra.mrb[14].mxu1 %vm1637_vm3, %v11117_v10  ;;  %v3218_v6 = vpop.permute.xlu0 %3217 }
 0x773   :  { %9204 = vmatprep.mubr.msk.f32.mxu1 %vm10175_vm0, %v10176_v4 }
 0x778   :  { %v2457_v22 = vpop.f32.mrb[16].mxu0 }
 0x779   :  { %v9265_v56 = vpop.f32.mrb[17].mxu0 }
 0x77a   :  { %v11372_v56 = vld [vmem:[%s11792_s17 + $0x40] sm:$0xff] }
 0x780   :  { %v2607_v59 = vpop.f32.mrb[18].mxu0 }
 0x781   :  { %v9281_v25 = vpop.f32.mrb[19].mxu0 }
 0x788   :  { %v11246_v43 = vpop.f32.mrb[20].mxu0 }
 0x789   :  { %v9313_v61 = vpop.f32.mrb[21].mxu0 }
 0x845   :  { %v1857_v63 = vpop.f32.mrb[14].mxu1 }
 0x846   :  { %v9201_v2 = vpop.f32.mrb[15].mxu1  ;;  %9203 = vmatpush3.msra.mxu1 %v1857_v63 }
 0x847   :  { %9205 = vmatmul.mubr.msk.f32.vlgmr.msra.gmra.mrb[12].mxu1 %vm255_vm2, %v1862_v1  ;;  %9218 = vmatprep.subr.mxu1 %v10176_v4 }
 0x848   :  { %9219 = vmatpush3.msra.mxu1 %v2007_v46  ;;  %9220 = vmatprep.mubr.msk.f32.mxu1 %vm10175_vm0, %v10176_v4 }
 0x849   :  { %9969 = vmatprep.subr.bf16.mxu1 %v10174_v0 }
 0x84f   :  { %9221 = vmatmul.mubr.msk.f32.vlgmr.msra.gmra.mrb[12].mxu1 %vm255_vm2, %v2012_v14  ;;  %v3512_v14 = vpop.permute.xlu0 %3511 }
 0x850   :  { %9971 = vmatpush3.bf16.msra.mxu1 %v11259_v7  ;;  %9231 = vmatprep.mubr.msk.f32.mxu1 %vm10175_vm0, %v10176_v4 }
 0x851   :  { %9972 = vmatprep.subr.bf16.mxu1 %v10174_v0 }
 0x854   :  { %9974 = vmatpush3.bf16.msra.mxu1 %v11269_v17 }
 0x855   :  { %9234 = vmatprep.subr.mxu1 %v10176_v4 }
 0x857   :  { %9232 = vmatmul.mubr.msk.f32.vlgmr.msra.gmra.mrb[16].mxu1 %vm1637_vm3, %v11117_v10 }
 0x858   :  { %9236 = vmatprep.mubr.msk.f32.mxu1 %vm10175_vm0, %v10176_v4 }
 0x92a   :  { %v2157_v23 = vpop.f32.mrb[16].mxu1 }
 0x92b   :  { %v9233_v28 = vpop.f32.mrb[17].mxu1  ;;  %9235 = vmatpush3.msra.mxu1 %v2157_v23  ;;  %v3593_v23 = vld [vmem:[%s11793_s18] sm:$0xff] }
 0x92c   :  { %9237 = vmatmul.mubr.msk.f32.vlgmr.msra.gmra.mrb[12].mxu1 %vm255_vm2, %v2162_v26  ;;  %9250 = vmatprep.subr.mxu1 %v10176_v4 }
 0x92d   :  { %9251 = vmatpush3.msra.mxu1 %v2307_v19  ;;  %9252 = vmatprep.mubr.msk.f32.mxu1 %vm10175_vm0, %v10176_v4 }
 0x92e   :  { %9266 = vmatprep.subr.mxu1 %v10176_v4 }
 0x934   :  { %9253 = vmatmul.mubr.msk.f32.vlgmr.msra.gmra.mrb[12].mxu1 %vm255_vm2, %v11285_v29 }
 0x935   :  { %9267 = vmatpush3.msra.mxu1 %v2457_v22  ;;  %9268 = vmatprep.mubr.msk.f32.mxu1 %vm10175_vm0, %v10176_v4  ;;  %v11361_v22 = vld [vmem:[%s11792_s17 + $0x38] sm:$0xff] }
 0x936   :  { %9282 = vmatprep.subr.mxu1 %v10176_v4 }
 0x93c   :  { %9269 = vmatmul.mubr.msk.f32.vlgmr.msra.gmra.mrb[12].mxu1 %vm255_vm2, %v11292_v30 }
 0x93d   :  { %9283 = vmatpush3.msra.mxu1 %v2607_v59  ;;  %9284 = vmatprep.mubr.msk.f32.mxu1 %vm10175_vm0, %v10176_v4 }
 0x93e   :  { %9993 = vmatprep.subr.bf16.mxu1 %v10174_v0 }
 0x944   :  { %9285 = vmatmul.mubr.msk.f32.vlgmr.msra.gmra.mrb[12].mxu1 %vm255_vm2, %v2612_v39  ;;  %v8311_v39 = vld [vmem:[%s11793_s18 + $0x18] sm:$0xff] }
 0x945   :  { %9995 = vmatpush3.bf16.msra.mxu1 %v11305_v35  ;;  %9295 = vmatprep.mubr.msk.f32.mxu1 %vm10175_vm0, %v10176_v4 }
 0x946   :  { %9996 = vmatprep.subr.bf16.mxu1 %v10174_v0 }
 0x949   :  { %9998 = vmatpush3.bf16.msra.mxu1 %v11315_v41 }
 0x94a   :  { %9298 = vmatprep.subr.mxu1 %v10176_v4 }
 0x94c   :  { %9296 = vmatmul.mubr.msk.f32.vlgmr.msra.gmra.mrb[18].mxu1 %vm1637_vm3, %v11117_v10  ;;  %v11335_v10 = vpop.permute.xlu1 %2911 }
 0x94d   :  { %9300 = vmatprep.mubr.msk.f32.mxu1 %vm10175_vm0, %v10176_v4 }
 0x950   :  { %v11384_v59 = vpop.permute.xlu1 %3070 }
 0x954   :  { %v3365_v13 = vpop.permute.xlu1 %3364 }
 0x958   :  { %v11407_v26 = vpop.permute.xlu1 %2990 }
 0xa1f   :  { %v2757_v42 = vpop.f32.mrb[18].mxu1 }
 0xa20   :  { %v9297_v46 = vpop.f32.mrb[19].mxu1  ;;  %9299 = vmatpush3.msra.mxu1 %v2757_v42  ;;  %v8314_v42 = vld [vmem:[%s11793_s18 + $0x20] sm:$0xff] }
 0xa21   :  { %9301 = vmatmul.mubr.msk.f32.vlgmr.msra.gmra.mrb[12].mxu1 %vm255_vm2, %v11326_v45  ;;  %9314 = vmatprep.subr.mxu1 %v10176_v4 }
 0xa22   :  { %9315 = vmatpush3.msra.mxu1 %v11246_v43  ;;  %9316 = vmatprep.mubr.msk.f32.mxu1 %vm10175_vm0, %v10176_v4 }
 0xa23   :  { %9329 = vmatprep.subr.mxu1 %v10176_v4 }
 0xa29   :  { %9317 = vmatmul.mubr.msk.f32.vlgmr.msra.gmra.mrb[12].mxu1 %vm255_vm2, %v11335_v10 }
 0xa2a   :  { %9331 = vmatprep.mubr.msk.f32.mxu1 %vm10175_vm0, %v10176_v4  ;;  %9330 = vmatpush3.msra.mxu1 %v11349_v49 }
 0xa2b   :  { %9339 = vmatprep.subr.mxu1 %v10176_v4 }
 0xafc   :  { %v2981_v52 = vpop.f32.mrb[12].mxu1 }
 0xafd   :  { %v10060_v58 = vadd.f32 %v2981_v52, %v11355_v51  ;;  %v9318_v19 = vpop.f32.mrb[13].mxu1 }
 0xaff   :  { %v2986_v21 = vmax.f32 %v10060_v58, 0.0  ;;  %v10170_v58 = vld [vmem:[%s11782_s5] sm:$0xff] }
 0xb01   :  { %9322 = vmatmul.mubr.msk.f32.vlgmr.msra.gmra.mrb[22].mxu0 %vm255_vm2, %v2986_v21  ;;  %9332 = vmatmul.mubr.msk.f32.vlgmr.msra.gmra.mrb[20].mxu1 %vm255_vm2, %v2986_v21 }
 0xb02   :  { %9340 = vmatpush3.msra.mxu1 %v11361_v22  ;;  %9341 = vmatprep.mubr.msk.f32.mxu1 %vm10175_vm0, %v10176_v4 }
 0xb03   :  { %9349 = vmatprep.subr.mxu1 %v10176_v4  ;;  %9326 = vmatprep.mubr.msk.f32.mxu0 %vm10175_vm0, %v10176_v4 }
 0xb05   :  { %9342 = vmatmul.mubr.msk.f32.vlgmr.msra.gmra.mrb[22].mxu1 %vm255_vm2, %v2986_v21 }
 0xb06   :  { %9350 = vmatpush3.msra.mxu1 %v11372_v56  ;;  %9351 = vmatprep.mubr.msk.f32.mxu1 %vm10175_vm0, %v10176_v4 }
 0xb07   :  { %9359 = vmatprep.subr.mxu1 %v10176_v4 }
 0xb09   :  { %9352 = vmatmul.mubr.msk.f32.vlgmr.msra.gmra.mrb[24].mxu1 %vm255_vm2, %v2986_v21 }
 0xb0a   :  { %9361 = vmatprep.mubr.msk.f32.mxu1 %vm10175_vm0, %v10176_v4  ;;  %9360 = vmatpush3.msra.mxu1 %v3593_v23 }
 0xb0b   :  { %9369 = vmatprep.subr.mxu1 %v10176_v4 }
 0xbd4   :  { %v3064_v25 = vpop.f32.mrb[22].mxu0  ;;  %v3213_v43 = vpop.f32.mrb[20].mxu1 }
 0xbd5   :  { %v9323_v61 = vpop.f32.mrb[23].mxu0  ;;  %9325 = vmatpush3.msra.mxu0 %v3064_v25  ;;  %v9333_v63 = vpop.f32.mrb[21].mxu1 }
 0xbd6   :  { %9327 = vmatmul.mubr.msk.f32.vlgmr.msra.gmra.mrb[24].mxu0 %vm255_vm2, %v11384_v59  ;;  %9334 = vmatprep.subr.mxu0 %v10176_v4 }
 0xbd7   :  { %9335 = vmatpush3.msra.mxu0 %v3213_v43  ;;  %9336 = vmatprep.mubr.msk.f32.mxu0 %vm10175_vm0, %v10176_v4  ;;  %v3815_v43 = vpop.permute.xlu0 %3814 }
 0xbd8   :  { %v3360_v1 = vpop.f32.mrb[22].mxu1  ;;  %9344 = vmatprep.subr.mxu0 %v10176_v4 }
 0xbd9   :  { %v9343_v2 = vpop.f32.mrb[23].mxu1 }
 0xbda   :  { %v3962_v2 = vpop.permute.xlu1 %3961 }
 0xbdc   :  { %v3507_v3 = vpop.f32.mrb[24].mxu1 }
 0xbdd   :  { %v9353_v8 = vpop.f32.mrb[25].mxu1 }
 0xbde   :  { %9337 = vmatmul.mubr.msk.f32.vlgmr.msra.gmra.mrb[24].mxu0 %vm255_vm2, %v3218_v6  ;;  %v4190_v6 = vld [vmem:[%s11794_s19] sm:$0xff]  ;;  %v3591_v8 = vpop.permute.xlu1 %3590 }
 0xbdf   :  { %9345 = vmatpush3.msra.mxu0 %v3360_v1  ;;  %9346 = vmatprep.mubr.msk.f32.mxu0 %vm10175_vm0, %v10176_v4 }
 0xbe0   :  { %9354 = vmatprep.subr.mxu0 %v10176_v4 }
 0xbe6   :  { %9347 = vmatmul.mubr.msk.f32.vlgmr.msra.gmra.mrb[24].mxu0 %vm255_vm2, %v3365_v13 }
 0xbe7   :  { %9355 = vmatpush3.msra.mxu0 %v3507_v3  ;;  %9356 = vmatprep.mubr.msk.f32.mxu0 %vm10175_vm0, %v10176_v4  ;;  %v4109_v3 = vpop.permute.xlu0 %4108 }
 0xbe8   :  { %9364 = vmatprep.subr.mxu0 %v10176_v4 }
 0xbee   :  { %9357 = vmatmul.mubr.msk.f32.vlgmr.msra.gmra.mrb[24].mxu0 %vm255_vm2, %v3512_v14 }
 0xbef   :  { %9366 = vmatprep.mubr.msk.f32.mxu0 %vm10175_vm0, %v10176_v4 }
 0xcc1   :  { %v3581_v28 = vpop.f32.mrb[24].mxu0 }
 0xcc2   :  { %v10061_v32 = vadd.f32 %v3581_v28, %v11407_v26  ;;  %v9358_v33 = vpop.f32.mrb[25].mxu0 }
 0xcc3   :  { %v8322_v33 = vld [vmem:[%s11794_s19 + $0x10] sm:$0xff] }
 0xcc4   :  { %v3586_v36 = vmax.f32 %v10061_v32, 0.0  ;;  %v8319_v32 = vld [vmem:[%s11794_s19 + $0x8] sm:$0xff] }
 0xcc6   :  { %9362 = vmatmul.mubr.msk.f32.vlgmr.msra.gmra.mrb[26].mxu1 %vm255_vm2, %v3586_v36 }
 0xcc7   :  { %9370 = vmatpush3.msra.mxu1 %v8308_v38  ;;  %9371 = vmatprep.mubr.msk.f32.mxu1 %vm10175_vm0, %v10176_v4  ;;  %v8328_v38 = vld [vmem:[%s11794_s19 + $0x20] sm:$0xff] }
 0xcc8   :  { %9379 = vmatprep.subr.mxu1 %v10176_v4 }
 0xcca   :  { %9372 = vmatmul.mubr.msk.f32.vlgmr.msra.gmra.mrb[28].mxu1 %vm255_vm2, %v3586_v36 }
 0xccb   :  { %9380 = vmatpush3.msra.mxu1 %v8311_v39  ;;  %9381 = vmatprep.mubr.msk.f32.mxu1 %vm10175_vm0, %v10176_v4  ;;  %v8331_v39 = vld [vmem:[%s11794_s19 + $0x28] sm:$0xff] }
 0xccc   :  { %9389 = vmatprep.subr.mxu1 %v10176_v4 }
 0xcce   :  { %9382 = vmatmul.mubr.msk.f32.vlgmr.msra.gmra.mrb[30].mxu1 %vm255_vm2, %v3586_v36 }
 0xccf   :  { %9390 = vmatpush3.msra.mxu1 %v8314_v42  ;;  %9391 = vmatprep.mubr.msk.f32.mxu1 %vm10175_vm0, %v10176_v4  ;;  %v8334_v42 = vld [vmem:[%s11794_s19 + $0x30] sm:$0xff] }
 0xcd0   :  { %9399 = vmatprep.subr.mxu1 %v10176_v4 }
 0xcd2   :  { %9392 = vmatmul.mubr.msk.f32.vlgmr.msra.gmra.mrb[32].mxu1 %vm255_vm2, %v3586_v36  ;;  %v8325_v36 = vld [vmem:[%s11794_s19 + $0x18] sm:$0xff] }
 0xcd3   :  { %9401 = vmatprep.mubr.msk.f32.mxu1 %vm10175_vm0, %v10176_v4  ;;  %9400 = vmatpush3.msra.mxu1 %v4190_v6 }
 0xcd4   :  { %9409 = vmatprep.subr.mxu1 %v10176_v4 }
 0xd99   :  { %v3663_v46 = vpop.f32.mrb[26].mxu1 }
 0xd9a   :  { %v9363_v52 = vpop.f32.mrb[27].mxu1  ;;  %9365 = vmatpush3.msra.mxu0 %v3663_v46  ;;  %v8337_v46 = vld [vmem:[%s11794_s19 + $0x38] sm:$0xff] }
 0xd9b   :  { %9367 = vmatmul.mubr.msk.f32.vlgmr.msra.gmra.mrb[26].mxu0 %vm255_vm2, %v10170_v58  ;;  %9374 = vmatprep.subr.mxu0 %v10176_v4  ;;  %v8340_v52 = vld [vmem:[%s11794_s19 + $0x40] sm:$0xff] }
 0xd9c   :  { %9376 = vmatprep.mubr.msk.f32.mxu0 %vm10175_vm0, %v10176_v4 }
 0xd9d   :  { %v3810_v19 = vpop.f32.mrb[28].mxu1 }
 0xd9e   :  { %v9373_v21 = vpop.f32.mrb[29].mxu1  ;;  %9375 = vmatpush3.msra.mxu0 %v3810_v19 }
 0xd9f   :  { %9384 = vmatprep.subr.mxu0 %v10176_v4  ;;  %v10171_v21 = vld [vmem:[%s11783_s6] sm:$0xff] }
 0xda1   :  { %v3957_v25 = vpop.f32.mrb[30].mxu1 }
 0xda2   :  { %v9383_v61 = vpop.f32.mrb[31].mxu1 }
 0xda3   :  { %9377 = vmatmul.mubr.msk.f32.vlgmr.msra.gmra.mrb[26].mxu0 %vm255_vm2, %v3815_v43  ;;  %v4412_v43 = vpop.permute.xlu0 %4411 }
 0xda4   :  { %9385 = vmatpush3.msra.mxu0 %v3957_v25  ;;  %9386 = vmatprep.mubr.msk.f32.mxu0 %vm10175_vm0, %v10176_v4 }
 0xda5   :  { %v4104_v63 = vpop.f32.mrb[32].mxu1  ;;  %9394 = vmatprep.subr.mxu0 %v10176_v4 }
 0xda6   :  { %v9393_v1 = vpop.f32.mrb[33].mxu1 }
 0xdab   :  { %9387 = vmatmul.mubr.msk.f32.vlgmr.msra.gmra.mrb[26].mxu0 %vm255_vm2, %v3962_v2  ;;  %v4559_v2 = vpop.permute.xlu1 %4558 }
 0xdac   :  { %9395 = vmatpush3.msra.mxu0 %v4104_v63  ;;  %9396 = vmatprep.mubr.msk.f32.mxu0 %vm10175_vm0, %v10176_v4 }
 0xdad   :  { %9404 = vmatprep.subr.mxu0 %v10176_v4 }
 0xdb3   :  { %9397 = vmatmul.mubr.msk.f32.vlgmr.msra.gmra.mrb[26].mxu0 %vm255_vm2, %v4109_v3 }
 0xdb4   :  { %9406 = vmatprep.mubr.msk.f32.mxu0 %vm10175_vm0, %v10176_v4 }
 0xe86   :  { %v4178_v13 = vpop.f32.mrb[26].mxu0 }
 0xe87   :  { %v10062_v14 = vadd.f32 %v4178_v13, %v3591_v8  ;;  %v9398_v23 = vpop.f32.mrb[27].mxu0 }
 0xe88   :  { %v4706_v23 = vpop.permute.xlu0 %4705 }
 0xe89   :  { %v4183_v28 = vmax.f32 %v10062_v14, 0.0 }
 0xe8b   :  { %9402 = vmatmul.mubr.msk.f32.vlgmr.msra.gmra.mrb[34].mxu1 %vm255_vm2, %v4183_v28 }
 0xe8c   :  { %9410 = vmatpush3.msra.mxu1 %v8319_v32  ;;  %9411 = vmatprep.mubr.msk.f32.mxu1 %vm10175_vm0, %v10176_v4 }
 0xe8d   :  { %9419 = vmatprep.subr.mxu1 %v10176_v4 }
 0xe8f   :  { %9412 = vmatmul.mubr.msk.f32.vlgmr.msra.gmra.mrb[36].mxu1 %vm255_vm2, %v4183_v28 }
 0xe90   :  { %9420 = vmatpush3.msra.mxu1 %v8322_v33  ;;  %9421 = vmatprep.mubr.msk.f32.mxu1 %vm10175_vm0, %v10176_v4 }
 0xe91   :  { %9429 = vmatprep.subr.mxu1 %v10176_v4 }
 0xe93   :  { %9422 = vmatmul.mubr.msk.f32.vlgmr.msra.gmra.mrb[38].mxu1 %vm255_vm2, %v4183_v28 }
 0xe94   :  { %9430 = vmatpush3.msra.mxu1 %v8325_v36  ;;  %9431 = vmatprep.mubr.msk.f32.mxu1 %vm10175_vm0, %v10176_v4  ;;  %v4853_v36 = vpop.permute.xlu1 %4852 }
 0xe95   :  { %9439 = vmatprep.subr.mxu1 %v10176_v4 }
 0xe97   :  { %9432 = vmatmul.mubr.msk.f32.vlgmr.msra.gmra.mrb[40].mxu1 %vm255_vm2, %v4183_v28 }
 0xe98   :  { %9440 = vmatpush3.msra.mxu1 %v8328_v38  ;;  %9441 = vmatprep.mubr.msk.f32.mxu1 %vm10175_vm0, %v10176_v4 }
 0xe99   :  { %9449 = vmatprep.subr.mxu1 %v10176_v4 }
 0xe9b   :  { %9442 = vmatmul.mubr.msk.f32.vlgmr.msra.gmra.mrb[42].mxu1 %vm255_vm2, %v4183_v28 }
 0xe9c   :  { %9450 = vmatpush3.msra.mxu1 %v8331_v39  ;;  %9451 = vmatprep.mubr.msk.f32.mxu1 %vm10175_vm0, %v10176_v4 }
 0xe9d   :  { %9459 = vmatprep.subr.mxu1 %v10176_v4 }
 0xe9f   :  { %9452 = vmatmul.mubr.msk.f32.vlgmr.msra.gmra.mrb[44].mxu1 %vm255_vm2, %v4183_v28 }
 0xea0   :  { %9460 = vmatpush3.msra.mxu1 %v8334_v42  ;;  %9461 = vmatprep.mubr.msk.f32.mxu1 %vm10175_vm0, %v10176_v4  ;;  %v5000_v42 = vpop.permute.xlu0 %4999 }
 0xea1   :  { %9469 = vmatprep.subr.mxu1 %v10176_v4 }
 0xea3   :  { %9462 = vmatmul.mubr.msk.f32.vlgmr.msra.gmra.mrb[46].mxu1 %vm255_vm2, %v4183_v28 }
 0xea4   :  { %9470 = vmatpush3.msra.mxu1 %v8337_v46  ;;  %9471 = vmatprep.mubr.msk.f32.mxu1 %vm10175_vm0, %v10176_v4  ;;  %v5147_v46 = vpop.permute.xlu1 %5146 }
 0xea5   :  { %9479 = vmatprep.subr.mxu1 %v10176_v4 }
 0xea7   :  { %9472 = vmatmul.mubr.msk.f32.vlgmr.msra.gmra.mrb[48].mxu1 %vm255_vm2, %v4183_v28 }
 0xea8   :  { %9480 = vmatpush3.msra.mxu1 %v8340_v52  ;;  %9481 = vmatprep.mubr.msk.f32.mxu1 %vm10175_vm0, %v10176_v4  ;;  %v5294_v52 = vpop.permute.xlu0 %5293 }
 0xea9   :  { %10005 = vmatprep.subr.bf16.mxu1 %v10174_v0 }
 0xeab   :  { %9482 = vmatmul.mubr.msk.f32.vlgmr.msra.gmra.mrb[50].mxu1 %vm255_vm2, %v4183_v28 }
 0xeac   :  { %10007 = vmatpush3.bf16.msra.mxu1 %v11053_v55  ;;  %9497 = vmatprep.mubr.msk.f32.mxu1 %vm10175_vm0, %v10176_v4 }
 0xead   :  { %10008 = vmatprep.subr.bf16.mxu1 %v10174_v0 }
 0xeb0   :  { %10010 = vmatpush3.bf16.msra.mxu1 %v11100_v12 }
 0xeb1   :  { %10017 = vmatprep.subr.bf16.mxu1 %v10174_v0 }
 0xf5e   :  { %v4260_v58 = vpop.f32.mrb[34].mxu1 }
 0xf5f   :  { %v9403_v19 = vpop.f32.mrb[35].mxu1  ;;  %9405 = vmatpush3.msra.mxu0 %v4260_v58  ;;  %v5441_v58 = vpop.permute.xlu1 %5440 }
 0xf60   :  { %9407 = vmatmul.mubr.msk.f32.vlgmr.msra.gmra.mrb[28].mxu0 %vm255_vm2, %v10171_v21  ;;  %9414 = vmatprep.subr.mxu0 %v10176_v4  ;;  %v4188_v19 = vpop.permute.xlu0 %4187 }
 0xf61   :  { %9416 = vmatprep.mubr.msk.f32.mxu0 %vm10175_vm0, %v10176_v4 }
 0xf62   :  { %v4407_v55 = vpop.f32.mrb[36].mxu1 }
 0xf63   :  { %v9413_v25 = vpop.f32.mrb[37].mxu1  ;;  %9415 = vmatpush3.msra.mxu0 %v4407_v55 }
 0xf64   :  { %9424 = vmatprep.subr.mxu0 %v10176_v4 }
 0xf66   :  { %v4554_v12 = vpop.f32.mrb[38].mxu1 }
 0xf67   :  { %v9423_v61 = vpop.f32.mrb[39].mxu1 }
 0xf68   :  { %9417 = vmatmul.mubr.msk.f32.vlgmr.msra.gmra.mrb[28].mxu0 %vm255_vm2, %v4412_v43 }
 0xf69   :  { %9425 = vmatpush3.msra.mxu0 %v4554_v12  ;;  %9426 = vmatprep.mubr.msk.f32.mxu0 %vm10175_vm0, %v10176_v4 }
 0xf6a   :  { %v4701_v63 = vpop.f32.mrb[40].mxu1  ;;  %9434 = vmatprep.subr.mxu0 %v10176_v4 }
 0xf6b   :  { %v9433_v1 = vpop.f32.mrb[41].mxu1 }
 0xf6e   :  { %v4848_v3 = vpop.f32.mrb[42].mxu1 }
 0xf6f   :  { %v9443_v6 = vpop.f32.mrb[43].mxu1 }
 0xf70   :  { %9427 = vmatmul.mubr.msk.f32.vlgmr.msra.gmra.mrb[28].mxu0 %vm255_vm2, %v4559_v2 }
 0xf71   :  { %9435 = vmatpush3.msra.mxu0 %v4701_v63  ;;  %9436 = vmatprep.mubr.msk.f32.mxu0 %vm10175_vm0, %v10176_v4 }
 0xf72   :  { %v4995_v8 = vpop.f32.mrb[44].mxu1  ;;  %9444 = vmatprep.subr.mxu0 %v10176_v4 }
 0xf73   :  { %v9453_v13 = vpop.f32.mrb[45].mxu1 }
 0xf74   :  { %v8377_v13 = vld [vmem:[%s11796_s21 + $0x18] sm:$0xff] }
 0xf76   :  { %v5142_v14 = vpop.f32.mrb[46].mxu1 }
 0xf77   :  { %v9463_v28 = vpop.f32.mrb[47].mxu1 }
 0xf78   :  { %9437 = vmatmul.mubr.msk.f32.vlgmr.msra.gmra.mrb[28].mxu0 %vm255_vm2, %v4706_v23  ;;  %v10173_v28 = vld [vmem:[%s11786_s7] sm:$0x7] }
 0xf79   :  { %9445 = vmatpush3.msra.mxu0 %v4848_v3  ;;  %9446 = vmatprep.mubr.msk.f32.mxu0 %vm10175_vm0, %v10176_v4 }
 0xf7a   :  { %v5289_v32 = vpop.f32.mrb[48].mxu1  ;;  %9454 = vmatprep.subr.mxu0 %v10176_v4 }
 0xf7b   :  { %v9473_v33 = vpop.f32.mrb[49].mxu1 }
 0xf7e   :  { %v5436_v38 = vpop.f32.mrb[50].mxu1 }
 0xf7f   :  { %v9483_v39 = vpop.f32.mrb[51].mxu1 }
 0xf80   :  { %9447 = vmatmul.mubr.msk.f32.vlgmr.msra.gmra.mrb[28].mxu0 %vm255_vm2, %v4853_v36  ;;  %v7732_v36 = vpop.permute.xlu1 %7731 }
 0xf81   :  { %9455 = vmatpush3.msra.mxu0 %v4995_v8  ;;  %9456 = vmatprep.mubr.msk.f32.mxu0 %vm10175_vm0, %v10176_v4 }
 0xf82   :  { %9464 = vmatprep.subr.mxu0 %v10176_v4 }
 0xf88   :  { %9457 = vmatmul.mubr.msk.f32.vlgmr.msra.gmra.mrb[28].mxu0 %vm255_vm2, %v5000_v42 }
 0xf89   :  { %9465 = vmatpush3.msra.mxu0 %v5142_v14  ;;  %9466 = vmatprep.mubr.msk.f32.mxu0 %vm10175_vm0, %v10176_v4 }
 0xf8a   :  { %9474 = vmatprep.subr.mxu0 %v10176_v4 }
 0xf90   :  { %9467 = vmatmul.mubr.msk.f32.vlgmr.msra.gmra.mrb[28].mxu0 %vm255_vm2, %v5147_v46 }
 0xf91   :  { %9475 = vmatpush3.msra.mxu0 %v5289_v32  ;;  %9476 = vmatprep.mubr.msk.f32.mxu0 %vm10175_vm0, %v10176_v4 }
 0xf92   :  { %9484 = vmatprep.subr.mxu0 %v10176_v4 }
 0xf98   :  { %9477 = vmatmul.mubr.msk.f32.vlgmr.msra.gmra.mrb[28].mxu0 %vm255_vm2, %v5294_v52  ;;  %v7879_v52 = vpop.permute.xlu0 %7878 }
 0xf99   :  { %9485 = vmatpush3.msra.mxu0 %v5436_v38  ;;  %9486 = vmatprep.mubr.msk.f32.mxu0 %vm10175_vm0, %v10176_v4 }
 0xf9a   :  { %9500 = vmatprep.subr.mxu0 %v10176_v4 }
 0xfa0   :  { %9487 = vmatmul.mubr.msk.f32.vlgmr.msra.gmra.mrb[28].mxu0 %vm255_vm2, %v5441_v58  ;;  %v8026_v58 = vpop.permute.xlu1 %8025 }
 0xfa1   :  { %9502 = vmatprep.mubr.msk.f32.mxu0 %vm10175_vm0, %v10176_v4 }
0x1073   :  { %v5510_v21 = vpop.f32.mrb[28].mxu0 }
0x1074   :  { %v10063_v55 = vadd.f32 %v5510_v21, %v4188_v19  ;;  %v9488_v25 = vpop.f32.mrb[29].mxu0  ;;  %v7508_v19 = vpop.permute.xlu0 %7507 }
0x1076   :  { %v11559_v12 = vmax.f32 %v10063_v55, 0.0 }
0x1078   :  { %9498 = vmatmul.mubr.msk.f32.vlgmr.msra.gmra.mrb[52].mxu1 %vm1637_vm3, %v11559_v12 }
0x1079   :  { %10019 = vmatpush3.bf16.msra.mxu1 %v11075_v57  ;;  %9529 = vmatprep.mubr.msk.f32.mxu1 %vm10175_vm0, %v10176_v4 }
0x107a   :  { %10020 = vmatprep.subr.bf16.mxu1 %v10174_v0 }
0x107d   :  { %10022 = vmatpush3.bf16.msra.mxu1 %v11092_v62 }
0x107e   :  { %10023 = vmatprep.subr.bf16.mxu1 %v10174_v0 }
0x1080   :  { %9530 = vmatmul.mubr.msk.f32.vlgmr.msra.gmra.mrb[54].mxu1 %vm1637_vm3, %v11559_v12 }
0x1081   :  { %10025 = vmatpush3.bf16.msra.mxu1 %v11259_v7  ;;  %9545 = vmatprep.mubr.msk.f32.mxu1 %vm10175_vm0, %v10176_v4 }
0x1082   :  { %10026 = vmatprep.subr.bf16.mxu1 %v10174_v0 }
0x1085   :  { %10028 = vmatpush3.bf16.msra.mxu1 %v11269_v17 }
0x1086   :  { %10029 = vmatprep.subr.bf16.mxu1 %v10174_v0 }
0x1088   :  { %9546 = vmatmul.mubr.msk.f32.vlgmr.msra.gmra.mrb[56].mxu1 %vm1637_vm3, %v11559_v12 }
0x1089   :  { %10031 = vmatpush3.bf16.msra.mxu1 %v11115_v9  ;;  %9561 = vmatprep.mubr.msk.f32.mxu1 %vm10175_vm0, %v10176_v4  ;;  %v10172_v9 = vld [vmem:[%s11818_s3] sm:$0xff] }
0x108a   :  { %10032 = vmatprep.subr.bf16.mxu1 %v10174_v0 }
0x108d   :  { %10034 = vmatpush3.bf16.msra.mxu1 %v11130_v16 }
0x108e   :  { %10041 = vmatprep.subr.bf16.mxu1 %v10174_v0 }
0x1090   :  { %9562 = vmatmul.mubr.msk.f32.vlgmr.msra.gmra.mrb[58].mxu1 %vm1637_vm3, %v11559_v12 }
0x1091   :  { %10043 = vmatpush3.bf16.msra.mxu1 %v11168_v31  ;;  %9593 = vmatprep.mubr.msk.f32.mxu1 %vm10175_vm0, %v10176_v4 }
0x1092   :  { %10044 = vmatprep.subr.bf16.mxu1 %v10174_v0 }
0x1095   :  { %10046 = vmatpush3.bf16.msra.mxu1 %v11180_v34 }
0x1096   :  { %10047 = vmatprep.subr.bf16.mxu1 %v10174_v0 }
0x1098   :  { %9594 = vmatmul.mubr.msk.f32.vlgmr.msra.gmra.mrb[60].mxu1 %vm1637_vm3, %v11559_v12 }
0x1099   :  { %10049 = vmatpush3.bf16.msra.mxu1 %v11305_v35  ;;  %9609 = vmatprep.mubr.msk.f32.mxu1 %vm10175_vm0, %v10176_v4 }
0x109a   :  { %10050 = vmatprep.subr.bf16.mxu1 %v10174_v0 }
0x109d   :  { %10052 = vmatpush3.bf16.msra.mxu1 %v11315_v41 }
0x109e   :  { %10053 = vmatprep.subr.bf16.mxu1 %v10174_v0 }
0x10a0   :  { %9610 = vmatmul.mubr.msk.f32.vlgmr.msra.gmra.mrb[62].mxu1 %vm1637_vm3, %v11559_v12 }
0x10a1   :  { %10055 = vmatpush3.bf16.msra.mxu1 %v11192_v37  ;;  %9625 = vmatprep.mubr.msk.f32.mxu1 %vm10175_vm0, %v10176_v4 }
0x10a2   :  { %10056 = vmatprep.subr.bf16.mxu1 %v10174_v0 }
0x10a5   :  { %10058 = vmatpush3.bf16.msra.mxu1 %v11204_v40 }
0x10a6   :  { %9638 = vmatprep.subr.mxu1 %v10176_v4 }
0x10a8   :  { %9626 = vmatmul.mubr.msk.f32.vlgmr.msra.gmra.mrb[64].mxu1 %vm1637_vm3, %v11559_v12 }
0x10a9   :  { %9640 = vmatprep.mubr.msk.f32.mxu1 %vm10175_vm0, %v10176_v4 }
0x114b   :  { %v5585_v57 = vpop.f32.mrb[52].mxu1 }
0x114c   :  { %v9499_v62 = vpop.f32.mrb[53].mxu1  ;;  %9501 = vmatpush3.msra.mxu0 %v5585_v57 }
0x114d   :  { %10011 = vmatprep.subr.bf16.mxu0 %v10174_v0  ;;  %9503 = vmatmul.mubr.msk.f32.vlgmr.msra.gmra.mrb[30].mxu0 %vm255_vm2, %v10172_v9 }
0x114e   :  { %10013 = vmatpush3.bf16.msra.mxu0 %v11221_v44  ;;  %9513 = vmatprep.mubr.msk.f32.mxu0 %vm10175_vm0, %v10176_v4 }
0x114f   :  { %10014 = vmatprep.subr.bf16.mxu0 %v10174_v0 }
0x1152   :  { %10016 = vmatpush3.bf16.msra.mxu0 %v11235_v54 }
0x1153   :  { %v5867_v16 = vpop.f32.mrb[54].mxu1  ;;  %9516 = vmatprep.subr.mxu0 %v10176_v4 }
0x1154   :  { %v9531_v31 = vpop.f32.mrb[55].mxu1 }
0x1155   :  { %9514 = vmatmul.mubr.msk.f32.vlgmr.msra.gmra.mrb[32].mxu0 %vm1637_vm3, %v11559_v12 }
0x1156   :  { %9518 = vmatprep.mubr.msk.f32.mxu0 %vm10175_vm0, %v10176_v4 }
0x115b   :  { %v6008_v34 = vpop.f32.mrb[56].mxu1 }
0x115c   :  { %v9547_v37 = vpop.f32.mrb[57].mxu1 }
0x1163   :  { %v6149_v40 = vpop.f32.mrb[58].mxu1 }
0x1164   :  { %v9563_v44 = vpop.f32.mrb[59].mxu1 }
0x116b   :  { %v6431_v7 = vpop.f32.mrb[60].mxu1 }
0x116c   :  { %v9595_v17 = vpop.f32.mrb[61].mxu1 }
0x1173   :  { %v6572_v35 = vpop.f32.mrb[62].mxu1 }
0x1174   :  { %v9611_v41 = vpop.f32.mrb[63].mxu1 }
0x117b   :  { %v6713_v43 = vpop.f32.mrb[64].mxu1 }
0x117c   :  { %v9627_v54 = vpop.f32.mrb[65].mxu1 }
0x1228   :  { %v5726_v61 = vpop.f32.mrb[32].mxu0 }
0x1229   :  { %v9515_v63 = vpop.f32.mrb[33].mxu0  ;;  %9517 = vmatpush3.msra.mxu0 %v5726_v61 }
0x122a   :  { %9519 = vmatmul.mubr.msk.f32.vlgmr.msra.gmra.mrb[30].mxu0 %vm255_vm2, %v10795_v15  ;;  %9532 = vmatprep.subr.mxu0 %v10176_v4 }
0x122b   :  { %9533 = vmatpush3.msra.mxu0 %v5867_v16  ;;  %9534 = vmatprep.mubr.msk.f32.mxu0 %vm10175_vm0, %v10176_v4 }
0x122c   :  { %9548 = vmatprep.subr.mxu0 %v10176_v4 }
0x1232   :  { %9535 = vmatmul.mubr.msk.f32.vlgmr.msra.gmra.mrb[30].mxu0 %vm255_vm2, %v10809_v20 }
0x1233   :  { %9549 = vmatpush3.msra.mxu0 %v6008_v34  ;;  %9550 = vmatprep.mubr.msk.f32.mxu0 %vm10175_vm0, %v10176_v4 }
0x1234   :  { %9564 = vmatprep.subr.mxu0 %v10176_v4 }
0x123a   :  { %9551 = vmatmul.mubr.msk.f32.vlgmr.msra.gmra.mrb[30].mxu0 %vm255_vm2, %v10868_v47 }
0x123b   :  { %9565 = vmatpush3.msra.mxu0 %v6149_v40  ;;  %9566 = vmatprep.mubr.msk.f32.mxu0 %vm10175_vm0, %v10176_v4 }
0x123c   :  { %10035 = vmatprep.subr.bf16.mxu0 %v10174_v0 }
0x1242   :  { %9567 = vmatmul.mubr.msk.f32.vlgmr.msra.gmra.mrb[30].mxu0 %vm255_vm2, %v10877_v50 }
0x1243   :  { %10037 = vmatpush3.bf16.msra.mxu0 %v11144_v24  ;;  %9577 = vmatprep.mubr.msk.f32.mxu0 %vm10175_vm0, %v10176_v4 }
0x1244   :  { %10038 = vmatprep.subr.bf16.mxu0 %v10174_v0 }
0x1247   :  { %10040 = vmatpush3.bf16.msra.mxu0 %v11156_v11 }
0x1248   :  { %9580 = vmatprep.subr.mxu0 %v10176_v4 }
0x124a   :  { %9578 = vmatmul.mubr.msk.f32.vlgmr.msra.gmra.mrb[34].mxu0 %vm1637_vm3, %v11559_v12 }
0x124b   :  { %9582 = vmatprep.mubr.msk.f32.mxu0 %vm10175_vm0, %v10176_v4 }
0x131d   :  { %v6290_v15 = vpop.f32.mrb[34].mxu0 }
0x131e   :  { %v9579_v20 = vpop.f32.mrb[35].mxu0  ;;  %9581 = vmatpush3.msra.mxu0 %v6290_v15 }
0x131f   :  { %9583 = vmatmul.mubr.msk.f32.vlgmr.msra.gmra.mrb[30].mxu0 %vm255_vm2, %v10891_v53  ;;  %9596 = vmatprep.subr.mxu0 %v10176_v4 }
0x1320   :  { %9597 = vmatpush3.msra.mxu0 %v6431_v7  ;;  %9598 = vmatprep.mubr.msk.f32.mxu0 %vm10175_vm0, %v10176_v4 }
0x1321   :  { %9612 = vmatprep.subr.mxu0 %v10176_v4 }
0x1327   :  { %9599 = vmatmul.mubr.msk.f32.vlgmr.msra.gmra.mrb[30].mxu0 %vm255_vm2, %v10950_v18 }
0x1328   :  { %9613 = vmatpush3.msra.mxu0 %v6572_v35  ;;  %9614 = vmatprep.mubr.msk.f32.mxu0 %vm10175_vm0, %v10176_v4 }
0x1329   :  { %9628 = vmatprep.subr.mxu0 %v10176_v4 }
0x132f   :  { %9615 = vmatmul.mubr.msk.f32.vlgmr.msra.gmra.mrb[30].mxu0 %vm255_vm2, %v10965_v27 }
0x1330   :  { %9629 = vmatpush3.msra.mxu0 %v6713_v43  ;;  %9630 = vmatprep.mubr.msk.f32.mxu0 %vm10175_vm0, %v10176_v4 }
0x1331   :  { %9633 = vmatprep.subr.mxu0 %v10176_v4 }
0x1337   :  { %9631 = vmatmul.mubr.msk.f32.vlgmr.msra.gmra.mrb[30].mxu0 %vm255_vm2, %v11077_v60 }
0x1338   :  { %9634 = vmatpush3.msra.mxu0 %v11344_v48  ;;  %9635 = vmatprep.mubr.msk.f32.mxu0 %vm10175_vm0, %v10176_v4 }
0x1339   :  { %9643 = vmatprep.subr.mxu0 %v10176_v4 }
0x140a   :  { %v6783_v0 = vpop.f32.mrb[30].mxu0 }
0x140b   :  { %v10064_v47 = vadd.f32 %v6783_v0, %v11112_v5  ;;  %v9632_v50 = vpop.f32.mrb[31].mxu0 }
0x140d   :  { %v6788_v53 = vmax.f32 %v10064_v47, 0.0 }
0x140f   :  { %9636 = vmatmul.mubr.msk.f32.vlgmr.msra.gmra.mrb[36].mxu0 %vm255_vm2, %v6788_v53 }
0x1410   :  { %9644 = vmatpush3.msra.mxu0 %v11349_v49  ;;  %9645 = vmatprep.mubr.msk.f32.mxu0 %vm10175_vm0, %v10176_v4 }
0x1411   :  { %9653 = vmatprep.subr.mxu0 %v10176_v4 }
0x1413   :  { %9646 = vmatmul.mubr.msk.f32.vlgmr.msra.gmra.mrb[38].mxu0 %vm255_vm2, %v6788_v53 }
0x1414   :  { %9654 = vmatpush3.msra.mxu0 %v11361_v22  ;;  %9655 = vmatprep.mubr.msk.f32.mxu0 %vm10175_vm0, %v10176_v4 }
0x1415   :  { %9663 = vmatprep.subr.mxu0 %v10176_v4 }
0x1417   :  { %9656 = vmatmul.mubr.msk.f32.vlgmr.msra.gmra.mrb[40].mxu0 %vm255_vm2, %v6788_v53 }
0x1418   :  { %9664 = vmatpush3.msra.mxu0 %v11372_v56  ;;  %9665 = vmatprep.mubr.msk.f32.mxu0 %vm10175_vm0, %v10176_v4 }
0x1419   :  { %9673 = vmatprep.subr.mxu0 %v10176_v4 }
0x141b   :  { %9666 = vmatmul.mubr.msk.f32.vlgmr.msra.gmra.mrb[42].mxu0 %vm255_vm2, %v6788_v53 }
0x141c   :  { %9675 = vmatprep.mubr.msk.f32.mxu0 %vm10175_vm0, %v10176_v4 }
0x14e2   :  { %v6858_v18 = vpop.f32.mrb[36].mxu0 }
0x14e3   :  { %v9637_v27 = vpop.f32.mrb[37].mxu0  ;;  %9639 = vmatpush3.msra.mxu1 %v6858_v18 }
0x14e4   :  { %9641 = vmatmul.mubr.msk.f32.vlgmr.msra.gmra.mrb[66].mxu1 %vm255_vm2, %v11285_v29  ;;  %9648 = vmatprep.subr.mxu1 %v10176_v4 }
0x14e5   :  { %9650 = vmatprep.mubr.msk.f32.mxu1 %vm10175_vm0, %v10176_v4 }
0x14e6   :  { %v6999_v60 = vpop.f32.mrb[38].mxu0 }
0x14e7   :  { %v9647_v5 = vpop.f32.mrb[39].mxu0  ;;  %9649 = vmatpush3.msra.mxu1 %v6999_v60 }
0x14e8   :  { %9658 = vmatprep.subr.mxu1 %v10176_v4 }
0x14ea   :  { %v7140_v24 = vpop.f32.mrb[40].mxu0 }
0x14eb   :  { %v9657_v11 = vpop.f32.mrb[41].mxu0 }
0x14ec   :  { %9651 = vmatmul.mubr.msk.f32.vlgmr.msra.gmra.mrb[66].mxu1 %vm255_vm2, %v11292_v30  ;;  %v8369_v30 = vld [vmem:[%s11795_s20 + $0x20] sm:$0xff] }
0x14ed   :  { %9659 = vmatpush3.msra.mxu1 %v7140_v24  ;;  %9660 = vmatprep.mubr.msk.f32.mxu1 %vm10175_vm0, %v10176_v4 }
0x14ee   :  { %v7281_v29 = vpop.f32.mrb[42].mxu0  ;;  %9668 = vmatprep.subr.mxu1 %v10176_v4  ;;  %9674 = vmatpush3.msra.mxu0 %v8369_v30 }
0x14ef   :  { %v9667_v48 = vpop.f32.mrb[43].mxu0  ;;  %9683 = vmatprep.subr.mxu0 %v10176_v4 }
0x14f4   :  { %9661 = vmatmul.mubr.msk.f32.vlgmr.msra.gmra.mrb[66].mxu1 %vm255_vm2, %v11326_v45 }
0x14f5   :  { %9669 = vmatpush3.msra.mxu1 %v7281_v29  ;;  %9670 = vmatprep.mubr.msk.f32.mxu1 %vm10175_vm0, %v10176_v4 }
0x14f6   :  { %9678 = vmatprep.subr.mxu1 %v10176_v4 }
0x14fc   :  { %9671 = vmatmul.mubr.msk.f32.vlgmr.msra.gmra.mrb[66].mxu1 %vm255_vm2, %v11335_v10 }
0x14fd   :  { %9680 = vmatprep.mubr.msk.f32.mxu1 %vm10175_vm0, %v10176_v4 }
0x15cf   :  { %v7351_v45 = vpop.f32.mrb[66].mxu1 }
0x15d0   :  { %v10065_v49 = vadd.f32 %v7351_v45, %v11355_v51  ;;  %v9672_v22 = vpop.f32.mrb[67].mxu1  ;;  %v7510_v51 = vld [vmem:[%s11796_s21] sm:$0xff] }
0x15d2   :  { %v7356_v56 = vmax.f32 %v10065_v49, 0.0 }
0x15d4   :  { %9676 = vmatmul.mubr.msk.f32.vlgmr.msra.gmra.mrb[44].mxu0 %vm255_vm2, %v7356_v56 }
0x15d5   :  { %9685 = vmatprep.mubr.msk.f32.mxu0 %vm10175_vm0, %v10176_v4  ;;  %9684 = vmatpush3.msra.mxu0 %v7510_v51 }
0x15d6   :  { %9693 = vmatprep.subr.mxu0 %v10176_v4 }
0x16a7   :  { %v7428_v10 = vpop.f32.mrb[44].mxu0 }
0x16a8   :  { %v9677_v1 = vpop.f32.mrb[45].mxu0  ;;  %9679 = vmatpush3.msra.mxu1 %v7428_v10 }
0x16a9   :  { %9681 = vmatmul.mubr.msk.f32.vlgmr.msra.gmra.mrb[68].mxu1 %vm255_vm2, %v11384_v59  ;;  %9688 = vmatprep.subr.mxu1 %v10176_v4  ;;  %v8374_v59 = vld [vmem:[%s11796_s21 + $0x8] sm:$0xff] }
0x16aa   :  { %9690 = vmatprep.mubr.msk.f32.mxu1 %vm10175_vm0, %v10176_v4 }
0x177c   :  { %v7498_v2 = vpop.f32.mrb[68].mxu1 }
0x177d   :  { %v7502_v3 = vadd.f32 %v7498_v2, %v11407_v26  ;;  %v9682_v6 = vpop.f32.mrb[69].mxu1  ;;  %v8380_v26 = vld [vmem:[%s11796_s21 + $0x20] sm:$0xff] }
0x177f   :  { %v7503_v8 = vmax.f32 %v7502_v3, 0.0 }
0x1781   :  { %9686 = vmatmul.mubr.msk.f32.vlgmr.msra.gmra.mrb[46].mxu0 %vm255_vm2, %v7503_v8 }
0x1782   :  { %9694 = vmatpush3.msra.mxu0 %v8374_v59  ;;  %9695 = vmatprep.mubr.msk.f32.mxu0 %vm10175_vm0, %v10176_v4 }
0x1783   :  { %9703 = vmatprep.subr.mxu0 %v10176_v4 }
0x1785   :  { %9696 = vmatmul.mubr.msk.f32.vlgmr.msra.gmra.mrb[48].mxu0 %vm255_vm2, %v7503_v8 }
0x1786   :  { %9704 = vmatpush3.msra.mxu0 %v8377_v13  ;;  %9705 = vmatprep.mubr.msk.f32.mxu0 %vm10175_vm0, %v10176_v4 }
0x1787   :  { %9713 = vmatprep.subr.mxu0 %v10176_v4 }
0x1789   :  { %9706 = vmatmul.mubr.msk.f32.vlgmr.msra.gmra.mrb[50].mxu0 %vm255_vm2, %v7503_v8 }
0x178a   :  { %9714 = vmatpush3.msra.mxu0 %v8380_v26  ;;  %9715 = vmatprep.mubr.msk.f32.mxu0 %vm10175_vm0, %v10176_v4 }
0x178d   :  { %9716 = vmatmul.mubr.msk.f32.vlgmr.msra.gmra.mrb[52].mxu0 %vm255_vm2, %v7503_v8 }
0x1854   :  { %v7580_v14 = vpop.f32.mrb[46].mxu0 }
0x1855   :  { %v9687_v23 = vpop.f32.mrb[47].mxu0  ;;  %9689 = vmatpush3.msra.mxu1 %v7580_v14 }
0x1856   :  { %9691 = vmatmul.mubr.msk.f32.vlgmr.msra.gmra.mrb[70].mxu1 %vm255_vm2, %v10173_v28  ;;  %9698 = vmatprep.subr.mxu1 %v10176_v4 }
0x1857   :  { %9700 = vmatprep.mubr.msk.f32.mxu1 %vm10175_vm0, %v10176_v4 }
0x1858   :  { %v7727_v32 = vpop.f32.mrb[48].mxu0 }
0x1859   :  { %v9697_v33 = vpop.f32.mrb[49].mxu0  ;;  %9699 = vmatpush3.msra.mxu1 %v7727_v32 }
0x185a   :  { %9708 = vmatprep.subr.mxu1 %v10176_v4 }
0x185c   :  { %v7874_v38 = vpop.f32.mrb[50].mxu0 }
0x185d   :  { %v9707_v39 = vpop.f32.mrb[51].mxu0 }
0x185e   :  { %9701 = vmatmul.mubr.msk.f32.vlgmr.msra.gmra.mrb[70].mxu1 %vm255_vm2, %v7732_v36 }
0x185f   :  { %9709 = vmatpush3.msra.mxu1 %v7874_v38  ;;  %9710 = vmatprep.mubr.msk.f32.mxu1 %vm10175_vm0, %v10176_v4 }
0x1860   :  { %v8021_v42 = vpop.f32.mrb[52].mxu0  ;;  %9718 = vmatprep.subr.mxu1 %v10176_v4 }
0x1861   :  { %v9717_v46 = vpop.f32.mrb[53].mxu0 }
0x1866   :  { %9711 = vmatmul.mubr.msk.f32.vlgmr.msra.gmra.mrb[70].mxu1 %vm255_vm2, %v7879_v52 }
0x1867   :  { %9719 = vmatpush3.msra.mxu1 %v8021_v42  ;;  %9720 = vmatprep.mubr.msk.f32.mxu1 %vm10175_vm0, %v10176_v4 }
0x186e   :  { %9721 = vmatmul.mubr.msk.f32.vlgmr.msra.gmra.mrb[70].mxu1 %vm255_vm2, %v8026_v58 }
0x1941   :  { %v8095_v21 = vpop.f32.mrb[70].mxu1 }
0x1942   :  { %v10066_v55 = vadd.f32 %v8095_v21, %v7508_v19  ;;  %v9722_v25 = vpop.f32.mrb[71].mxu1 }
0x1944   :  { %v8100_v12 = vmax.f32 %v10066_v55, 0.0 }
0x1946   :  { %8101 = vst [vmem:[%s11797_s22] sm:$0x7] %v8100_v12 }

</bundles_post_ra>
